<compile_context>
chip_gen: v7x
topology: tpu7x:2x2x1
jax: 0.10.0
libtpu: 0.0.40
codegen_flags: <defaults>
</compile_context>

<pallas_src>
import jax
import jax.numpy as jnp
import numpy as np
from jax.experimental import pallas as pl
from jax.experimental.pallas import tpu as pltpu


def _bottleneck_kernel(x_ref, w1_ref, s1_ref, b1_ref,
                       w2_ref, s2_ref, b2_ref,
                       w3_ref, s3_ref, b3_ref,
                       o_ref, pad_ref):
    """One image (one batch element) per grid step.

    x_ref  : (1, H, W, Cin)     bf16 input activations (NHWC)
    w1_ref : (Cin, Cw)          bf16 1x1 conv weights (in, out)
    w2_ref : (9, Cw, Cw)        bf16 3x3 conv weights, leading index = kh*3 + kw
    w3_ref : (Cw, Cout)         bf16 1x1 conv weights (in, out)
    s*_ref / b*_ref : (1, C)    f32 folded BatchNorm scale / bias
    o_ref  : (1, H, W, Cout)    bf16 output
    pad_ref: (H+2, W+2, Cw)     bf16 scratch: zero-padded conv1 output for the 3x3 conv
    """
    _, H, W, Cin = x_ref.shape
    Cw = w1_ref.shape[1]
    Cout = w3_ref.shape[1]
    M = H * W

    x = x_ref[...].reshape(M, Cin)                       # bf16, lane-dense (Cin = 128)

    # ---- conv1 (1x1) + bn1 + relu : one MXU matmul, f32 accumulate ----
    y1 = jnp.dot(x, w1_ref[...], preferred_element_type=jnp.float32)
    y1 = jnp.maximum(y1 * s1_ref[...] + b1_ref[...], 0.0)

    # ---- stage zero-padded conv1 output in VMEM for the 3x3 conv ----
    # Zero only the 1-pixel halo; the interior is fully overwritten right below.
    # (Re-done every step: the scratch persists across grid iterations and the batch
    #  axis may be sharded across TensorCores, so a step-0-only init is not safe.)
    pdt = pad_ref.dtype
    pad_ref[0:1, :, :] = jnp.zeros((1, W + 2, Cw), pdt)
    pad_ref[H + 1:H + 2, :, :] = jnp.zeros((1, W + 2, Cw), pdt)
    pad_ref[:, 0:1, :] = jnp.zeros((H + 2, 1, Cw), pdt)
    pad_ref[:, W + 1:W + 2, :] = jnp.zeros((H + 2, 1, Cw), pdt)
    pad_ref[1:H + 1, 1:W + 1, :] = y1.reshape(H, W, Cw).astype(pdt)

    # ---- conv2 (3x3, stride=1, pad=1): 9 accumulating MXU matmuls ----
    # Each tap reads its shifted window directly from pad_ref (no im2col concat),
    # accumulating in one f32 register tile.
    acc = jnp.zeros((M, Cw), jnp.float32)
    for kh in range(3):
        for kw in range(3):
            tap = pad_ref[kh:kh + H, kw:kw + W, :].reshape(M, Cw)
            acc = acc + jnp.dot(tap, w2_ref[kh * 3 + kw],
                                preferred_element_type=jnp.float32)
    y2 = jnp.maximum(acc * s2_ref[...] + b2_ref[...], 0.0)

    # ---- conv3 (1x1) + bn3 ----
    y3 = jnp.dot(y2.astype(w3_ref.dtype), w3_ref[...],
                 preferred_element_type=jnp.float32)
    y3 = y3 * s3_ref[...] + b3_ref[...]

    # ---- residual add (identity path, Cin == Cout) + relu in f32; store bf16 ----
    # TODO(synk): identity is the bf16-rounded input (DMA saving); carry an f32 copy of
    # the input if bit-tighter parity with the f32 PyTorch identity is required.
    out = jnp.maximum(y3 + x.astype(jnp.float32), 0.0)
    o_ref[...] = out.reshape(1, H, W, Cout).astype(o_ref.dtype)


def _prep_kernel_params(params):
    """f32 master params -> kernel params (bf16 MXU weights)."""
    w1, s1, b1, w2, s2, b2, w3, s3, b3 = params
    return (w1.astype(jnp.bfloat16), s1, b1,
            w2.astype(jnp.bfloat16), s2, b2,
            w3.astype(jnp.bfloat16), s3, b3)


def bottleneck_forward_nhwc(x_nhwc, kernel_params):
    """Core entry point. x_nhwc: (N, H, W, Cin). Returns (N, H, W, Cout) bf16."""
    w1, s1, b1, w2, s2, b2, w3, s3, b3 = kernel_params
    N, H, W, Cin = x_nhwc.shape
    Cw = w1.shape[1]
    Cout = w3.shape[1]
    assert Cin == Cout, "Bottleneck without downsample requires inplanes == planes*4"

    x_bf16 = x_nhwc.astype(jnp.bfloat16)

    def resident(shape):
        # Constant block index across the batch grid -> operand stays VMEM-resident.
        nd = len(shape)
        return pl.BlockSpec(shape, lambda n, _nd=nd: (0,) * _nd)

    # TODO(synk): for real ResNet sizes (large H*W), additionally tile the H axis per
    # grid step (with a 1-row halo) and consider fusing several chained blocks per
    # pallas_call (weights resident) to amortize per-call/per-step overhead.
    return pl.pallas_call(
        _bottleneck_kernel,
        out_shape=jax.ShapeDtypeStruct((N, H, W, Cout), jnp.bfloat16),
        grid=(N,),   # one image per step; "parallel" lets v7x use both TensorCores
        in_specs=[
            pl.BlockSpec((1, H, W, Cin), lambda n: (n, 0, 0, 0)),
            resident(w1.shape), resident(s1.shape), resident(b1.shape),
            resident(w2.shape), resident(s2.shape), resident(b2.shape),
            resident(w3.shape), resident(s3.shape), resident(b3.shape),
        ],
        out_specs=pl.BlockSpec((1, H, W, Cout), lambda n: (n, 0, 0, 0)),
        scratch_shapes=[pltpu.VMEM((H + 2, W + 2, Cw), jnp.bfloat16)],
        compiler_params=pltpu.CompilerParams(
            dimension_semantics=("parallel",),
            vmem_limit_bytes=64 * 1024 * 1024),
    )(x_bf16, w1, s1, b1, w2, s2, b2, w3, s3, b3)


def bottleneck_forward(x_nchw, params):
    """PyTorch-layout entry point: (N, Cin, H, W) -> (N, Cout, H, W) f32.

    The NCHW<->NHWC transposes and the bf16->f32 cast are boundary-only; when chaining
    many blocks convert the layout once per network and call bottleneck_forward_nhwc.
    """
    kparams = _prep_kernel_params(params)
    x_nhwc = jnp.transpose(x_nchw, (0, 2, 3, 1))
    out_nhwc = bottleneck_forward_nhwc(x_nhwc, kparams)
    return jnp.transpose(out_nhwc, (0, 3, 1, 2)).astype(jnp.float32)


def _make_params(key, inplanes, planes, base_width=64, groups=1, expansion=4):
    """f32 master parameters (conv weights + eval-mode BN folded to scale/bias)."""
    width = int(planes * (base_width / 64.0)) * groups
    cout = planes * expansion
    eps = 1e-5
    ks = jax.random.split(key, 15)

    def bn(kg, kb, km, kv, c):
        gamma = jax.random.uniform(kg, (c,), jnp.float32, 0.5, 1.5)
        beta = 0.1 * jax.random.normal(kb, (c,), jnp.float32)
        mean = 0.1 * jax.random.normal(km, (c,), jnp.float32)
        var = jax.random.uniform(kv, (c,), jnp.float32, 0.5, 1.5)
        scale = gamma / jnp.sqrt(var + eps)
        bias = beta - mean * scale
        return scale.reshape(1, c), bias.reshape(1, c)

    w1 = 0.1 * jax.random.normal(ks[0], (inplanes, width), jnp.float32)
    s1, b1 = bn(ks[1], ks[2], ks[3], ks[4], width)
    w2 = 0.1 * jax.random.normal(ks[5], (9, width, width), jnp.float32)
    s2, b2 = bn(ks[6], ks[7], ks[8], ks[9], width)
    w3 = 0.1 * jax.random.normal(ks[10], (width, cout), jnp.float32)
    s3, b3 = bn(ks[11], ks[12], ks[13], ks[14], cout)
    return (w1, s1, b1, w2, s2, b2, w3, s3, b3)


def _reference(x_nchw, params, match_bf16):
    """Pure-JAX/XLA reference (NHWC internally).

    match_bf16=True reproduces the kernel's bf16 MXU operand rounding (f32 accumulate)
    for a tight check; match_bf16=False is the pure-f32 module math.
    """
    w1, s1, b1, w2, s2, b2, w3, s3, b3 = params
    Cw = w1.shape[1]
    prec = jax.lax.Precision.HIGHEST

    def q(a):
        return a.astype(jnp.bfloat16).astype(jnp.float32) if match_bf16 else a

    x = q(jnp.transpose(x_nchw, (0, 2, 3, 1)).astype(jnp.float32))
    y = jnp.einsum('nhwc,cd->nhwd', x, q(w1), precision=prec)
    y = jax.nn.relu(y * s1 + b1)
    w2_hwio = w2.reshape(3, 3, Cw, Cw)
    y = jax.lax.conv_general_dilated(
        q(y), q(w2_hwio), window_strides=(1, 1), padding=((1, 1), (1, 1)),
        dimension_numbers=('NHWC', 'HWIO', 'NHWC'), precision=prec)
    y = jax.nn.relu(y * s2 + b2)
    y = jnp.einsum('nhwc,cd->nhwd', q(y), q(w3), precision=prec)
    y = y * s3 + b3
    y = jax.nn.relu(y + x)
    return jnp.transpose(y, (0, 3, 1, 2))


if __name__ == "__main__":
    # Bottleneck(inplanes=128, planes=32) -> width=32, out channels = 128 (== inplanes),
    # stride=1, downsample=None.  Input NCHW: (2, 128, 16, 16).
    inplanes, planes = 128, 32
    N, H, W = 2, 16, 16

    key = jax.random.PRNGKey(0)
    kx, kp = jax.random.split(key)
    x = jax.random.normal(kx, (N, inplanes, H, W), jnp.float32)
    params = _make_params(kp, inplanes, planes)

    out = jax.block_until_ready(bottleneck_forward(x, params))

    # Tight-ish check vs. a reference with the same bf16 MXU operand rounding
    # (kernel additionally rounds the output to bf16 -> <= ~1 bf16 ulp extra).
    ref_bf16 = jax.block_until_ready(_reference(x, params, match_bf16=True))
    np.testing.assert_allclose(np.asarray(out), np.asarray(ref_bf16),
                               rtol=1e-2, atol=1e-2)

    # Loose check vs. the pure-f32 module math (bf16 quantization error budget).
    ref_f32 = jax.block_until_ready(_reference(x, params, match_bf16=False))
    np.testing.assert_allclose(np.asarray(out), np.asarray(ref_f32),
                               rtol=5e-2, atol=5e-2)

    print("KERNEL_OK")
</pallas_src>

<mosaic_0001>
module attributes {stable_mosaic.version = 11 : i64} {
  func.func @_bottleneck_kernel(%arg0: i32, %arg1: memref<1x16x16x128xbf16, #tpu.memory_space<vmem>>, %arg2: memref<128x32xbf16, #tpu.memory_space<vmem>>, %arg3: memref<1x32xf32, #tpu.memory_space<vmem>>, %arg4: memref<1x32xf32, #tpu.memory_space<vmem>>, %arg5: memref<9x32x32xbf16, #tpu.memory_space<vmem>>, %arg6: memref<1x32xf32, #tpu.memory_space<vmem>>, %arg7: memref<1x32xf32, #tpu.memory_space<vmem>>, %arg8: memref<32x128xbf16, #tpu.memory_space<vmem>>, %arg9: memref<1x128xf32, #tpu.memory_space<vmem>>, %arg10: memref<1x128xf32, #tpu.memory_space<vmem>>, %arg11: memref<1x16x16x128xbf16, #tpu.memory_space<vmem>>, %arg12: memref<18x18x32xbf16, #tpu.memory_space<vmem>>) attributes {dimension_semantics = [#tpu.dimension_semantics<parallel>], iteration_bounds = array<i64: 2>, scalar_prefetch = 0 : i64, scratch_operands = 1 : i64, tpu.core_type = #tpu.core_type<tc>, window_params = [{transform_indices = @transform_0, window_bounds = array<i64: 1, 16, 16, 128>}, {pipeline_mode = #tpu.pipeline_mode<synchronous>, transform_indices = @transform_1, window_bounds = array<i64: 128, 32>}, {pipeline_mode = #tpu.pipeline_mode<synchronous>, transform_indices = @transform_2, window_bounds = array<i64: 1, 32>}, {pipeline_mode = #tpu.pipeline_mode<synchronous>, transform_indices = @transform_3, window_bounds = array<i64: 1, 32>}, {pipeline_mode = #tpu.pipeline_mode<synchronous>, transform_indices = @transform_4, window_bounds = array<i64: 9, 32, 32>}, {pipeline_mode = #tpu.pipeline_mode<synchronous>, transform_indices = @transform_5, window_bounds = array<i64: 1, 32>}, {pipeline_mode = #tpu.pipeline_mode<synchronous>, transform_indices = @transform_6, window_bounds = array<i64: 1, 32>}, {pipeline_mode = #tpu.pipeline_mode<synchronous>, transform_indices = @transform_7, window_bounds = array<i64: 32, 128>}, {pipeline_mode = #tpu.pipeline_mode<synchronous>, transform_indices = @transform_8, window_bounds = array<i64: 1, 128>}, {pipeline_mode = #tpu.pipeline_mode<synchronous>, transform_indices = @transform_9, window_bounds = array<i64: 1, 128>}, {transform_indices = @transform_10, window_bounds = array<i64: 1, 16, 16, 128>}]} {
    %c0 = arith.constant 0 : index
    %c0_0 = arith.constant 0 : index
    %c0_1 = arith.constant 0 : index
    %c0_2 = arith.constant 0 : index
    %0 = vector.load %arg1[%c0, %c0_0, %c0_1, %c0_2] : memref<1x16x16x128xbf16, #tpu.memory_space<vmem>>, vector<1x16x16x128xbf16>
    %1 = vector.shape_cast %0 : vector<1x16x16x128xbf16> to vector<256x128xbf16>
    %c0_3 = arith.constant 0 : index
    %c0_4 = arith.constant 0 : index
    %2 = vector.load %arg2[%c0_3, %c0_4] : memref<128x32xbf16, #tpu.memory_space<vmem>>, vector<128x32xbf16>
    %cst = arith.constant dense<0.000000e+00> : vector<256x32xf32>
    %3 = tpu.matmul %1, %2, %cst {dimension_numbers = #tpu.dot_dimension_numbers<[1], [0], [0], [1], [0, 0, 1, 1], [], []>} : vector<256x128xbf16>, vector<128x32xbf16>, vector<256x32xf32> -> vector<256x32xf32>
    %c0_5 = arith.constant 0 : index
    %c0_6 = arith.constant 0 : index
    %4 = vector.load %arg3[%c0_5, %c0_6] : memref<1x32xf32, #tpu.memory_space<vmem>>, vector<1x32xf32>
    %5 = vector.broadcast %4 : vector<1x32xf32> to vector<256x32xf32>
    %6 = arith.mulf %3, %5 : vector<256x32xf32>
    %c0_7 = arith.constant 0 : index
    %c0_8 = arith.constant 0 : index
    %7 = vector.load %arg4[%c0_7, %c0_8] : memref<1x32xf32, #tpu.memory_space<vmem>>, vector<1x32xf32>
    %8 = vector.broadcast %7 : vector<1x32xf32> to vector<256x32xf32>
    %9 = arith.addf %6, %8 : vector<256x32xf32>
    %cst_9 = arith.constant 0.000000e+00 : f32
    %10 = vector.broadcast %cst_9 : f32 to vector<256x32xf32>
    %11 = arith.maximumf %9, %10 : vector<256x32xf32>
    %cst_10 = arith.constant 0.000000e+00 : bf16
    %12 = vector.broadcast %cst_10 : bf16 to vector<1x18x32xbf16>
    %c0_11 = arith.constant 0 : index
    %c0_12 = arith.constant 0 : index
    %c0_13 = arith.constant 0 : index
    %13 = vector.load %arg12[%c0_11, %c0_12, %c0_13] : memref<18x18x32xbf16, #tpu.memory_space<vmem>>, vector<1x18x32xbf16>
    tpu.vector_store %arg12[%c0_11, %c0_12, %c0_13], %12 {strides = array<i32>} : memref<18x18x32xbf16, #tpu.memory_space<vmem>>, vector<1x18x32xbf16>,
    %cst_14 = arith.constant 0.000000e+00 : bf16
    %14 = vector.broadcast %cst_14 : bf16 to vector<1x18x32xbf16>
    %c17 = arith.constant 17 : index
    %c0_15 = arith.constant 0 : index
    %c0_16 = arith.constant 0 : index
    %15 = vector.load %arg12[%c17, %c0_15, %c0_16] : memref<18x18x32xbf16, #tpu.memory_space<vmem>>, vector<1x18x32xbf16>
    tpu.vector_store %arg12[%c17, %c0_15, %c0_16], %14 {strides = array<i32>} : memref<18x18x32xbf16, #tpu.memory_space<vmem>>, vector<1x18x32xbf16>,
    %cst_17 = arith.constant 0.000000e+00 : bf16
    %16 = vector.broadcast %cst_17 : bf16 to vector<18x1x32xbf16>
    %c0_18 = arith.constant 0 : index
    %c0_19 = arith.constant 0 : index
    %c0_20 = arith.constant 0 : index
    %17 = vector.load %arg12[%c0_18, %c0_19, %c0_20] : memref<18x18x32xbf16, #tpu.memory_space<vmem>>, vector<18x1x32xbf16>
    tpu.vector_store %arg12[%c0_18, %c0_19, %c0_20], %16 {strides = array<i32>} : memref<18x18x32xbf16, #tpu.memory_space<vmem>>, vector<18x1x32xbf16>,
    %cst_21 = arith.constant 0.000000e+00 : bf16
    %18 = vector.broadcast %cst_21 : bf16 to vector<18x1x32xbf16>
    %c0_22 = arith.constant 0 : index
    %c17_23 = arith.constant 17 : index
    %c0_24 = arith.constant 0 : index
    %19 = vector.load %arg12[%c0_22, %c17_23, %c0_24] : memref<18x18x32xbf16, #tpu.memory_space<vmem>>, vector<18x1x32xbf16>
    tpu.vector_store %arg12[%c0_22, %c17_23, %c0_24], %18 {strides = array<i32>} : memref<18x18x32xbf16, #tpu.memory_space<vmem>>, vector<18x1x32xbf16>,
    %20 = vector.shape_cast %11 : vector<256x32xf32> to vector<16x16x32xf32>
    %21 = arith.truncf %20 : vector<16x16x32xf32> to vector<16x16x32xbf16>
    %c1 = arith.constant 1 : index
    %c1_25 = arith.constant 1 : index
    %c0_26 = arith.constant 0 : index
    %22 = vector.load %arg12[%c1, %c1_25, %c0_26] : memref<18x18x32xbf16, #tpu.memory_space<vmem>>, vector<16x16x32xbf16>
    tpu.vector_store %arg12[%c1, %c1_25, %c0_26], %21 {strides = array<i32>} : memref<18x18x32xbf16, #tpu.memory_space<vmem>>, vector<16x16x32xbf16>,
    %cst_27 = arith.constant 0.000000e+00 : f32
    %23 = vector.broadcast %cst_27 : f32 to vector<256x32xf32>
    %c0_28 = arith.constant 0 : index
    %c0_29 = arith.constant 0 : index
    %c0_30 = arith.constant 0 : index
    %24 = vector.load %arg12[%c0_28, %c0_29, %c0_30] : memref<18x18x32xbf16, #tpu.memory_space<vmem>>, vector<16x16x32xbf16>
    %25 = vector.shape_cast %24 : vector<16x16x32xbf16> to vector<256x32xbf16>
    %c0_31 = arith.constant 0 : index
    %c0_32 = arith.constant 0 : index
    %c0_33 = arith.constant 0 : index
    %26 = vector.load %arg5[%c0_31, %c0_32, %c0_33] : memref<9x32x32xbf16, #tpu.memory_space<vmem>>, vector<1x32x32xbf16>
    %27 = vector.shape_cast %26 : vector<1x32x32xbf16> to vector<32x32xbf16>
    %cst_34 = arith.constant dense<0.000000e+00> : vector<256x32xf32>
    %28 = tpu.matmul %25, %27, %cst_34 {dimension_numbers = #tpu.dot_dimension_numbers<[1], [0], [0], [1], [0, 0, 1, 1], [], []>} : vector<256x32xbf16>, vector<32x32xbf16>, vector<256x32xf32> -> vector<256x32xf32>
    %29 = arith.addf %23, %28 : vector<256x32xf32>
    %c0_35 = arith.constant 0 : index
    %c1_36 = arith.constant 1 : index
    %c0_37 = arith.constant 0 : index
    %30 = vector.load %arg12[%c0_35, %c1_36, %c0_37] : memref<18x18x32xbf16, #tpu.memory_space<vmem>>, vector<16x16x32xbf16>
    %31 = vector.shape_cast %30 : vector<16x16x32xbf16> to vector<256x32xbf16>
    %c1_38 = arith.constant 1 : index
    %c0_39 = arith.constant 0 : index
    %c0_40 = arith.constant 0 : index
    %32 = vector.load %arg5[%c1_38, %c0_39, %c0_40] : memref<9x32x32xbf16, #tpu.memory_space<vmem>>, vector<1x32x32xbf16>
    %33 = vector.shape_cast %32 : vector<1x32x32xbf16> to vector<32x32xbf16>
    %cst_41 = arith.constant dense<0.000000e+00> : vector<256x32xf32>
    %34 = tpu.matmul %31, %33, %cst_41 {dimension_numbers = #tpu.dot_dimension_numbers<[1], [0], [0], [1], [0, 0, 1, 1], [], []>} : vector<256x32xbf16>, vector<32x32xbf16>, vector<256x32xf32> -> vector<256x32xf32>
    %35 = arith.addf %29, %34 : vector<256x32xf32>
    %c0_42 = arith.constant 0 : index
    %c2 = arith.constant 2 : index
    %c0_43 = arith.constant 0 : index
    %36 = vector.load %arg12[%c0_42, %c2, %c0_43] : memref<18x18x32xbf16, #tpu.memory_space<vmem>>, vector<16x16x32xbf16>
    %37 = vector.shape_cast %36 : vector<16x16x32xbf16> to vector<256x32xbf16>
    %c2_44 = arith.constant 2 : index
    %c0_45 = arith.constant 0 : index
    %c0_46 = arith.constant 0 : index
    %38 = vector.load %arg5[%c2_44, %c0_45, %c0_46] : memref<9x32x32xbf16, #tpu.memory_space<vmem>>, vector<1x32x32xbf16>
    %39 = vector.shape_cast %38 : vector<1x32x32xbf16> to vector<32x32xbf16>
    %cst_47 = arith.constant dense<0.000000e+00> : vector<256x32xf32>
    %40 = tpu.matmul %37, %39, %cst_47 {dimension_numbers = #tpu.dot_dimension_numbers<[1], [0], [0], [1], [0, 0, 1, 1], [], []>} : vector<256x32xbf16>, vector<32x32xbf16>, vector<256x32xf32> -> vector<256x32xf32>
    %41 = arith.addf %35, %40 : vector<256x32xf32>
    %c1_48 = arith.constant 1 : index
    %c0_49 = arith.constant 0 : index
    %c0_50 = arith.constant 0 : index
    %42 = vector.load %arg12[%c1_48, %c0_49, %c0_50] : memref<18x18x32xbf16, #tpu.memory_space<vmem>>, vector<16x16x32xbf16>
    %43 = vector.shape_cast %42 : vector<16x16x32xbf16> to vector<256x32xbf16>
    %c3 = arith.constant 3 : index
    %c0_51 = arith.constant 0 : index
    %c0_52 = arith.constant 0 : index
    %44 = vector.load %arg5[%c3, %c0_51, %c0_52] : memref<9x32x32xbf16, #tpu.memory_space<vmem>>, vector<1x32x32xbf16>
    %45 = vector.shape_cast %44 : vector<1x32x32xbf16> to vector<32x32xbf16>
    %cst_53 = arith.constant dense<0.000000e+00> : vector<256x32xf32>
    %46 = tpu.matmul %43, %45, %cst_53 {dimension_numbers = #tpu.dot_dimension_numbers<[1], [0], [0], [1], [0, 0, 1, 1], [], []>} : vector<256x32xbf16>, vector<32x32xbf16>, vector<256x32xf32> -> vector<256x32xf32>
    %47 = arith.addf %41, %46 : vector<256x32xf32>
    %c1_54 = arith.constant 1 : index
    %c1_55 = arith.constant 1 : index
    %c0_56 = arith.constant 0 : index
    %48 = vector.load %arg12[%c1_54, %c1_55, %c0_56] : memref<18x18x32xbf16, #tpu.memory_space<vmem>>, vector<16x16x32xbf16>
    %49 = vector.shape_cast %48 : vector<16x16x32xbf16> to vector<256x32xbf16>
    %c4 = arith.constant 4 : index
    %c0_57 = arith.constant 0 : index
    %c0_58 = arith.constant 0 : index
    %50 = vector.load %arg5[%c4, %c0_57, %c0_58] : memref<9x32x32xbf16, #tpu.memory_space<vmem>>, vector<1x32x32xbf16>
    %51 = vector.shape_cast %50 : vector<1x32x32xbf16> to vector<32x32xbf16>
    %cst_59 = arith.constant dense<0.000000e+00> : vector<256x32xf32>
    %52 = tpu.matmul %49, %51, %cst_59 {dimension_numbers = #tpu.dot_dimension_numbers<[1], [0], [0], [1], [0, 0, 1, 1], [], []>} : vector<256x32xbf16>, vector<32x32xbf16>, vector<256x32xf32> -> vector<256x32xf32>
    %53 = arith.addf %47, %52 : vector<256x32xf32>
    %c1_60 = arith.constant 1 : index
    %c2_61 = arith.constant 2 : index
    %c0_62 = arith.constant 0 : index
    %54 = vector.load %arg12[%c1_60, %c2_61, %c0_62] : memref<18x18x32xbf16, #tpu.memory_space<vmem>>, vector<16x16x32xbf16>
    %55 = vector.shape_cast %54 : vector<16x16x32xbf16> to vector<256x32xbf16>
    %c5 = arith.constant 5 : index
    %c0_63 = arith.constant 0 : index
    %c0_64 = arith.constant 0 : index
    %56 = vector.load %arg5[%c5, %c0_63, %c0_64] : memref<9x32x32xbf16, #tpu.memory_space<vmem>>, vector<1x32x32xbf16>
    %57 = vector.shape_cast %56 : vector<1x32x32xbf16> to vector<32x32xbf16>
    %cst_65 = arith.constant dense<0.000000e+00> : vector<256x32xf32>
    %58 = tpu.matmul %55, %57, %cst_65 {dimension_numbers = #tpu.dot_dimension_numbers<[1], [0], [0], [1], [0, 0, 1, 1], [], []>} : vector<256x32xbf16>, vector<32x32xbf16>, vector<256x32xf32> -> vector<256x32xf32>
    %59 = arith.addf %53, %58 : vector<256x32xf32>
    %c2_66 = arith.constant 2 : index
    %c0_67 = arith.constant 0 : index
    %c0_68 = arith.constant 0 : index
    %60 = vector.load %arg12[%c2_66, %c0_67, %c0_68] : memref<18x18x32xbf16, #tpu.memory_space<vmem>>, vector<16x16x32xbf16>
    %61 = vector.shape_cast %60 : vector<16x16x32xbf16> to vector<256x32xbf16>
    %c6 = arith.constant 6 : index
    %c0_69 = arith.constant 0 : index
    %c0_70 = arith.constant 0 : index
    %62 = vector.load %arg5[%c6, %c0_69, %c0_70] : memref<9x32x32xbf16, #tpu.memory_space<vmem>>, vector<1x32x32xbf16>
    %63 = vector.shape_cast %62 : vector<1x32x32xbf16> to vector<32x32xbf16>
    %cst_71 = arith.constant dense<0.000000e+00> : vector<256x32xf32>
    %64 = tpu.matmul %61, %63, %cst_71 {dimension_numbers = #tpu.dot_dimension_numbers<[1], [0], [0], [1], [0, 0, 1, 1], [], []>} : vector<256x32xbf16>, vector<32x32xbf16>, vector<256x32xf32> -> vector<256x32xf32>
    %65 = arith.addf %59, %64 : vector<256x32xf32>
    %c2_72 = arith.constant 2 : index
    %c1_73 = arith.constant 1 : index
    %c0_74 = arith.constant 0 : index
    %66 = vector.load %arg12[%c2_72, %c1_73, %c0_74] : memref<18x18x32xbf16, #tpu.memory_space<vmem>>, vector<16x16x32xbf16>
    %67 = vector.shape_cast %66 : vector<16x16x32xbf16> to vector<256x32xbf16>
    %c7 = arith.constant 7 : index
    %c0_75 = arith.constant 0 : index
    %c0_76 = arith.constant 0 : index
    %68 = vector.load %arg5[%c7, %c0_75, %c0_76] : memref<9x32x32xbf16, #tpu.memory_space<vmem>>, vector<1x32x32xbf16>
    %69 = vector.shape_cast %68 : vector<1x32x32xbf16> to vector<32x32xbf16>
    %cst_77 = arith.constant dense<0.000000e+00> : vector<256x32xf32>
    %70 = tpu.matmul %67, %69, %cst_77 {dimension_numbers = #tpu.dot_dimension_numbers<[1], [0], [0], [1], [0, 0, 1, 1], [], []>} : vector<256x32xbf16>, vector<32x32xbf16>, vector<256x32xf32> -> vector<256x32xf32>
    %71 = arith.addf %65, %70 : vector<256x32xf32>
    %c2_78 = arith.constant 2 : index
    %c2_79 = arith.constant 2 : index
    %c0_80 = arith.constant 0 : index
    %72 = vector.load %arg12[%c2_78, %c2_79, %c0_80] : memref<18x18x32xbf16, #tpu.memory_space<vmem>>, vector<16x16x32xbf16>
    %73 = vector.shape_cast %72 : vector<16x16x32xbf16> to vector<256x32xbf16>
    %c8 = arith.constant 8 : index
    %c0_81 = arith.constant 0 : index
    %c0_82 = arith.constant 0 : index
    %74 = vector.load %arg5[%c8, %c0_81, %c0_82] : memref<9x32x32xbf16, #tpu.memory_space<vmem>>, vector<1x32x32xbf16>
    %75 = vector.shape_cast %74 : vector<1x32x32xbf16> to vector<32x32xbf16>
    %cst_83 = arith.constant dense<0.000000e+00> : vector<256x32xf32>
    %76 = tpu.matmul %73, %75, %cst_83 {dimension_numbers = #tpu.dot_dimension_numbers<[1], [0], [0], [1], [0, 0, 1, 1], [], []>} : vector<256x32xbf16>, vector<32x32xbf16>, vector<256x32xf32> -> vector<256x32xf32>
    %77 = arith.addf %71, %76 : vector<256x32xf32>
    %c0_84 = arith.constant 0 : index
    %c0_85 = arith.constant 0 : index
    %78 = vector.load %arg6[%c0_84, %c0_85] : memref<1x32xf32, #tpu.memory_space<vmem>>, vector<1x32xf32>
    %79 = vector.broadcast %78 : vector<1x32xf32> to vector<256x32xf32>
    %80 = arith.mulf %77, %79 : vector<256x32xf32>
    %c0_86 = arith.constant 0 : index
    %c0_87 = arith.constant 0 : index
    %81 = vector.load %arg7[%c0_86, %c0_87] : memref<1x32xf32, #tpu.memory_space<vmem>>, vector<1x32xf32>
    %82 = vector.broadcast %81 : vector<1x32xf32> to vector<256x32xf32>
    %83 = arith.addf %80, %82 : vector<256x32xf32>
    %cst_88 = arith.constant 0.000000e+00 : f32
    %84 = vector.broadcast %cst_88 : f32 to vector<256x32xf32>
    %85 = arith.maximumf %83, %84 : vector<256x32xf32>
    %86 = arith.truncf %85 : vector<256x32xf32> to vector<256x32xbf16>
    %c0_89 = arith.constant 0 : index
    %c0_90 = arith.constant 0 : index
    %87 = vector.load %arg8[%c0_89, %c0_90] : memref<32x128xbf16, #tpu.memory_space<vmem>>, vector<32x128xbf16>
    %cst_91 = arith.constant dense<0.000000e+00> : vector<256x128xf32>
    %88 = tpu.matmul %86, %87, %cst_91 {dimension_numbers = #tpu.dot_dimension_numbers<[1], [0], [0], [1], [0, 0, 1, 1], [], []>} : vector<256x32xbf16>, vector<32x128xbf16>, vector<256x128xf32> -> vector<256x128xf32>
    %c0_92 = arith.constant 0 : index
    %c0_93 = arith.constant 0 : index
    %89 = vector.load %arg9[%c0_92, %c0_93] : memref<1x128xf32, #tpu.memory_space<vmem>>, vector<1x128xf32>
    %90 = vector.broadcast %89 : vector<1x128xf32> to vector<256x128xf32>
    %91 = arith.mulf %88, %90 : vector<256x128xf32>
    %c0_94 = arith.constant 0 : index
    %c0_95 = arith.constant 0 : index
    %92 = vector.load %arg10[%c0_94, %c0_95] : memref<1x128xf32, #tpu.memory_space<vmem>>, vector<1x128xf32>
    %93 = vector.broadcast %92 : vector<1x128xf32> to vector<256x128xf32>
    %94 = arith.addf %91, %93 : vector<256x128xf32>
    %95 = arith.extf %1 : vector<256x128xbf16> to vector<256x128xf32>
    %96 = arith.addf %94, %95 : vector<256x128xf32>
    %cst_96 = arith.constant 0.000000e+00 : f32
    %97 = vector.broadcast %cst_96 : f32 to vector<256x128xf32>
    %98 = arith.maximumf %96, %97 : vector<256x128xf32>
    %99 = vector.shape_cast %98 : vector<256x128xf32> to vector<1x16x16x128xf32>
    %100 = arith.truncf %99 : vector<1x16x16x128xf32> to vector<1x16x16x128xbf16>
    %c0_97 = arith.constant 0 : index
    %c0_98 = arith.constant 0 : index
    %c0_99 = arith.constant 0 : index
    %c0_100 = arith.constant 0 : index
    %101 = vector.load %arg11[%c0_97, %c0_98, %c0_99, %c0_100] : memref<1x16x16x128xbf16, #tpu.memory_space<vmem>>, vector<1x16x16x128xbf16>
    tpu.vector_store %arg11[%c0_97, %c0_98, %c0_99, %c0_100], %100 {strides = array<i32>} : memref<1x16x16x128xbf16, #tpu.memory_space<vmem>>, vector<1x16x16x128xbf16>,
    return
  }
  func.func @transform_0(%arg0: i32) -> (i32, i32, i32, i32) {
    %c0_i32 = arith.constant 0 : i32
    %c0_i32_0 = arith.constant 0 : i32
    %c0_i32_1 = arith.constant 0 : i32
    %c0_i32_2 = arith.constant 0 : i32
    return %arg0, %c0_i32, %c0_i32_0, %c0_i32_1 : i32, i32, i32, i32
  }
  func.func @transform_1(%arg0: i32) -> (i32, i32) {
    %c0_i32 = arith.constant 0 : i32
    %c0_i32_0 = arith.constant 0 : i32
    %c0_i32_1 = arith.constant 0 : i32
    return %c0_i32, %c0_i32_0 : i32, i32
  }
  func.func @transform_2(%arg0: i32) -> (i32, i32) {
    %c0_i32 = arith.constant 0 : i32
    %c0_i32_0 = arith.constant 0 : i32
    %c0_i32_1 = arith.constant 0 : i32
    return %c0_i32, %c0_i32_0 : i32, i32
  }
  func.func @transform_3(%arg0: i32) -> (i32, i32) {
    %c0_i32 = arith.constant 0 : i32
    %c0_i32_0 = arith.constant 0 : i32
    %c0_i32_1 = arith.constant 0 : i32
    return %c0_i32, %c0_i32_0 : i32, i32
  }
  func.func @transform_4(%arg0: i32) -> (i32, i32, i32) {
    %c0_i32 = arith.constant 0 : i32
    %c0_i32_0 = arith.constant 0 : i32
    %c0_i32_1 = arith.constant 0 : i32
    %c0_i32_2 = arith.constant 0 : i32
    return %c0_i32, %c0_i32_0, %c0_i32_1 : i32, i32, i32
  }
  func.func @transform_5(%arg0: i32) -> (i32, i32) {
    %c0_i32 = arith.constant 0 : i32
    %c0_i32_0 = arith.constant 0 : i32
    %c0_i32_1 = arith.constant 0 : i32
    return %c0_i32, %c0_i32_0 : i32, i32
  }
  func.func @transform_6(%arg0: i32) -> (i32, i32) {
    %c0_i32 = arith.constant 0 : i32
    %c0_i32_0 = arith.constant 0 : i32
    %c0_i32_1 = arith.constant 0 : i32
    return %c0_i32, %c0_i32_0 : i32, i32
  }
  func.func @transform_7(%arg0: i32) -> (i32, i32) {
    %c0_i32 = arith.constant 0 : i32
    %c0_i32_0 = arith.constant 0 : i32
    %c0_i32_1 = arith.constant 0 : i32
    return %c0_i32, %c0_i32_0 : i32, i32
  }
  func.func @transform_8(%arg0: i32) -> (i32, i32) {
    %c0_i32 = arith.constant 0 : i32
    %c0_i32_0 = arith.constant 0 : i32
    %c0_i32_1 = arith.constant 0 : i32
    return %c0_i32, %c0_i32_0 : i32, i32
  }
  func.func @transform_9(%arg0: i32) -> (i32, i32) {
    %c0_i32 = arith.constant 0 : i32
    %c0_i32_0 = arith.constant 0 : i32
    %c0_i32_1 = arith.constant 0 : i32
    return %c0_i32, %c0_i32_0 : i32, i32
  }
  func.func @transform_10(%arg0: i32) -> (i32, i32, i32, i32) {
    %c0_i32 = arith.constant 0 : i32
    %c0_i32_0 = arith.constant 0 : i32
    %c0_i32_1 = arith.constant 0 : i32
    %c0_i32_2 = arith.constant 0 : i32
    return %arg0, %c0_i32, %c0_i32_0, %c0_i32_1 : i32, i32, i32, i32
  }
}

</mosaic_0001>

<bundles_post_ra>
// kernel: tpu_custom_call.1
= control target key start
LH: loop header
LB: loop body
LE: loop exit
PB: predicated region body
PF: predicated region fallthrough
CT: control target
= control target key end

     0   :  { %s11687_s0 = inlined_call_operand.hbm [shape: bf16[2,16,16,128], index: 0, kind: input, shape index: {}]   ;;  %s11688_s1 = inlined_call_operand.hbm [shape: bf16[128,32], index: 1, kind: input, shape index: {}]   ;;  %s11689_s2 = inlined_call_operand.hbm [shape: f32[1,32], index: 2, kind: input, shape index: {}]   ;;  %s11690_s3 = inlined_call_operand.hbm [shape: f32[1,32], index: 3, kind: input, shape index: {}]   ;;  %s11691_s4 = inlined_call_operand.hbm [shape: bf16[9,32,32], index: 4, kind: input, shape index: {}]   ;;  %s11692_s5 = inlined_call_operand.hbm [shape: f32[1,32], index: 5, kind: input, shape index: {}]   ;;  %s11693_s6 = inlined_call_operand.hbm [shape: f32[1,32], index: 6, kind: input, shape index: {}]   ;;  %s11694_s7 = inlined_call_operand.hbm [shape: bf16[32,128], index: 7, kind: input, shape index: {}]   ;;  %s11695_s8 = inlined_call_operand.hbm [shape: f32[1,128], index: 8, kind: input, shape index: {}]   ;;  %s11696_s9 = inlined_call_operand.hbm [shape: f32[1,128], index: 9, kind: input, shape index: {}]   ;;  %s11697_s10 = inlined_call_operand.hbm [shape: bf16[2,16,16,128], index: 10, kind: output, shape index: {}]  }
   0x1   :  { %11730 = sst [smem:[#allocation44_spill]] %s11688_s1 }
   0x2   :  { %11731 = sst [smem:[#allocation45_spill]] %s11689_s2 }
   0x3   :  { %11732 = sst [smem:[#allocation46_spill]] %s11697_s10 }
   0x4   :  { %15 = vsyncpa [#allocation4], 0 }
   0x5   :  { %17 = vsyncpa [#allocation4 + $0x1], 0 }
   0x6   :  { %18 = vsyncpa [#allocation7], 0 }
   0x7   :  { %19 = vsyncpa [#allocation10], 0 }
   0x8   :  { %20 = vsyncpa [#allocation13], 0 }
   0x9   :  { %21 = vsyncpa [#allocation16], 0 }
   0xa   :  { %22 = vsyncpa [#allocation19], 0 }
   0xb   :  { %23 = vsyncpa [#allocation5], 0 }
   0xc   :  { %25 = vsyncpa [#allocation5 + $0x1], 0  ;;  %s9414_s13 = smov 0   ;;  %s9416_s14 = smov 0  }
   0xd   :  { %s9418_s15 = smov 0   ;;  %s9420_s16 = smov 0  }
   0xe LB: > { %s9343_s17 = smov [#allocation6]   ;;  %s9435_s19 = sadd.s32 4294967295, %s9341_s16   ;;  %s9341_s16 = sphi %s9420_s16, %s11848_s16   ;;  %s9337_s15 = sphi %s9418_s15, %s11847_s15   ;;  %s9333_s14 = sphi %s9416_s14, %s11846_s14   ;;  %s9329_s13 = sphi %s9414_s13, %s11845_s13  }
   0xf   : > { %s289_s18 = sshll.u32 %s9343_s17, 4  ;;  %p7140_p0 = scmp.ge.s32.totalorder %s9341_s16, 1  ;;  %s9440_s18 = int_to_ptr.vmem [resolvable:$true] %s289_s18 }
  0x10   : > { %p11702_p1 = scmp.eq.s32.totalorder %s9435_s19, 0  ;;  %p277_p2 = scmp.lt.s32.totalorder %s9341_s16, 3 }
  0x11   : > { %s9344_s21 = smov [#allocation9]   ;;  %s9345_s24 = smov [#allocation12]  }
  0x12   : > { %p9442_p3 = pnand %p7140_p0, %p277_p2  ;;  %s314_s22 = sshll.u32 %s9344_s21, 4  ;;  %s9455_s22 = int_to_ptr.vmem [resolvable:$true] %s314_s22 }
  0x13   : > { %s338_s25 = sshll.u32 %s9345_s24, 4  ;;  %s11736_s1 = sld [smem:[#allocation44_spill]]  ;;  %s9457_s25 = int_to_ptr.vmem [resolvable:$true] %s338_s25 }
  0x14   : > { %s11733_s20 = scalar_select %p9442_p3, 1, 0 }
  0x15   : > { %p8710_p5 = pneg %p9442_p3 }
  0x16   : > { %11734 = sst [smem:[#allocation28_spill]] %s11733_s20 }
  0x17   : > { %p9451_p6 = pnand %p8710_p5, %p11702_p1 }
  0x19   : > { %s8973_s28 = scalar_lea.hbm %s11736_s1, 1024  ;;  %p9467_p8 = pneg %p9451_p6 }
  0x1a   : > { %p8974_p7 = scmp.ne.s32.totalorder %s11736_s1, %s8973_s28  ;;  %p8980_p11 = scmp.lt.u32.totalorder %s8973_s28, %s11736_s1 }
  0x1c   : > { %p8976_p9 = pnand %p9467_p8, %p8974_p7 }
  0x1e   : > { %p8977_p10 = pneg %p8976_p9 }
  0x20   : > { %p8982_p12 = pnand %p8980_p11, %p8977_p10 }
  0x22   : > { %8985 = shalt.err (!%p8982_p12)
}
  0x23   : > { %s8986_s21 = scalar_lea.vmem %s9440_s18, 1024  ;;  %p8994_p5 = scmp.lt.s32.totalorder %s9440_s18, %s9440_s18 }
  0x24   : > { %p8987_p13 = scmp.ne.s32.totalorder %s9440_s18, %s8986_s21  ;;  %p8995_p4 = scmp.lt.s32.totalorder %s8986_s21, %s8986_s21 }
  0x26   : > { %p8989_p0 = pnand %p8987_p13, %p9467_p8  ;;  %p8996_p7 = por %p8995_p4, %p8994_p5 }
  0x28   : > { %p8990_p2 = pneg %p8989_p0 }
  0x2a   : > { %p8997_p9 = pnand %p8996_p7, %p8990_p2 }
  0x2c   : > { %9000 = shalt.err (!%p8997_p9)
}
  0x2d   : > { %s11700_s24 = smov 64   ;;  %s11704_s26 = smov 4  }
  0x2e   : > { %8713 = dma.hbm_to_vmem [thread:$0]  (!%p9451_p6), %s11736_s1, 1024, %s9440_s18, [#allocation7], %s11700_s24, %s11700_s24, %s11704_s26  }
  0x2f   : > { %s9001_s12 = scalar_lea.hbm %s11690_s3, 16 }
  0x30   : > { %p9002_p4 = scmp.ne.s32.totalorder %s11690_s3, %s9001_s12  ;;  %p9008_p12 = scmp.lt.u32.totalorder %s9001_s12, %s11690_s3 }
  0x32   : > { %p9004_p10 = pnand %p9002_p4, %p9467_p8 }
  0x34   : > { %p9005_p11 = pneg %p9004_p10 }
  0x36   : > { %p9010_p13 = pnand %p9008_p12, %p9005_p11 }
  0x38   : > { %9013 = shalt.err (!%p9010_p13)
}
  0x39   : > { %s9014_s18 = scalar_lea.vmem %s9455_s22, 16  ;;  %s9021_s27 = scalar_lea.vmem %s9455_s22, 32 }
  0x3a   : > { %p9015_p0 = scmp.ne.s32.totalorder %s9455_s22, %s9014_s18  ;;  %p9022_p7 = scmp.lt.s32.totalorder %s9455_s22, %s9455_s22 }
  0x3b   : > { %p9023_p9 = scmp.lt.s32.totalorder %s9021_s27, %s9014_s18 }
  0x3c   : > { %p9017_p2 = pnand %p9015_p0, %p9467_p8 }
  0x3d   : > { %p9024_p4 = por %p9023_p9, %p9022_p7 }
  0x3e   : > { %p9018_p5 = pneg %p9017_p2 }
  0x40   : > { %p9025_p10 = pnand %p9024_p4, %p9018_p5 }
  0x42   : > { %9028 = shalt.err (!%p9025_p10)
}
  0x43   : > { %8719 = dma.hbm_to_vmem [thread:$0]  (!%p9451_p6), %s11690_s3, 16, %s9455_s22, [#allocation10]  }
  0x44   : > { %s9029_s30 = scalar_lea.hbm %s11692_s5, 16 }
  0x45   : > { %p9030_p11 = scmp.ne.s32.totalorder %s11692_s5, %s9029_s30  ;;  %p9036_p0 = scmp.lt.u32.totalorder %s9029_s30, %s11692_s5 }
  0x47   : > { %p9032_p12 = pnand %p9030_p11, %p9467_p8 }
  0x49   : > { %p9033_p13 = pneg %p9032_p12 }
  0x4b   : > { %p9038_p2 = pnand %p9036_p0, %p9033_p13 }
  0x4d   : > { %9041 = shalt.err (!%p9038_p2)
}
  0x4e   : > { %s9042_s22 = scalar_lea.vmem %s9457_s25, 16  ;;  %s9049_s27 = scalar_lea.vmem %s9457_s25, 32 }
  0x4f   : > { %p9043_p5 = scmp.ne.s32.totalorder %s9457_s25, %s9042_s22  ;;  %p9050_p4 = scmp.lt.s32.totalorder %s9457_s25, %s9457_s25 }
  0x50   : > { %p9051_p10 = scmp.lt.s32.totalorder %s9049_s27, %s9042_s22 }
  0x51   : > { %p9045_p7 = pnand %p9043_p5, %p9467_p8 }
  0x52   : > { %p9052_p11 = por %p9051_p10, %p9050_p4 }
  0x53   : > { %p9046_p9 = pneg %p9045_p7 }
  0x55   : > { %p9053_p12 = pnand %p9052_p11, %p9046_p9 }
  0x57   : > { %9056 = shalt.err (!%p9053_p12)
}
  0x58   : > { %8725 = dma.hbm_to_vmem [thread:$0]  (!%p9451_p6), %s11692_s5, 16, %s9457_s25, [#allocation13]  }
  0x59   : > { %s9348_s28 = smov [#allocation15]   ;;  %s9349_s30 = smov [#allocation8]  }
  0x5a   : > { %s359_s29 = sshll.u32 %s9348_s28, 4  ;;  %s303_s12 = sshll.u32 %s9349_s30, 4  ;;  %s360_s29 = int_to_ptr.vmem [resolvable:$true] %s359_s29  ;;  %s304_s12 = int_to_ptr.vmem [resolvable:$true] %s303_s12 }
  0x5b   : > { %s9057_s18 = scalar_lea.hbm %s11694_s7, 256 }
  0x5c   : > { %p9058_p13 = scmp.ne.s32.totalorder %s11694_s7, %s9057_s18  ;;  %p9064_p5 = scmp.lt.u32.totalorder %s9057_s18, %s11694_s7 }
  0x5e   : > { %p9060_p0 = pnand %p9058_p13, %p9467_p8 }
  0x60   : > { %p9061_p2 = pneg %p9060_p0 }
  0x62   : > { %p9066_p7 = pnand %p9064_p5, %p9061_p2 }
  0x64   : > { %9069 = shalt.err (!%p9066_p7)
}
  0x65   : > { %s9070_s25 = scalar_lea.vmem %s360_s29, 256  ;;  %p9078_p11 = scmp.lt.s32.totalorder %s360_s29, %s360_s29 }
  0x66   : > { %p9071_p9 = scmp.ne.s32.totalorder %s360_s29, %s9070_s25  ;;  %p9079_p12 = scmp.lt.s32.totalorder %s9070_s25, %s9070_s25 }
  0x68   : > { %p9073_p4 = pnand %p9071_p9, %p9467_p8  ;;  %p9080_p1 = por %p9079_p12, %p9078_p11 }
  0x6a   : > { %p9074_p10 = pneg %p9073_p4 }
  0x6c   : > { %p9081_p3 = pnand %p9080_p1, %p9074_p10 }
  0x6e   : > { %9084 = shalt.err (!%p9081_p3)
}
  0x6f   : > { %s11738_s20 = smov 64   ;;  %s11739_s2 = sld [smem:[#allocation45_spill]] }
  0x70   : > { %8731 = dma.hbm_to_vmem [thread:$0]  (!%p9451_p6), %s11694_s7, 256, %s360_s29, [#allocation16], %s11738_s20, %s11738_s20, %s11704_s26  }
  0x75   : > { %s9085_s21 = scalar_lea.hbm %s11739_s2, 16 }
  0x76   : > { %p9086_p1 = scmp.ne.s32.totalorder %s11739_s2, %s9085_s21  ;;  %p9092_p0 = scmp.lt.u32.totalorder %s9085_s21, %s11739_s2 }
  0x78   : > { %p9088_p3 = pnand %p9086_p1, %p9467_p8 }
  0x7a   : > { %p9089_p13 = pneg %p9088_p3 }
  0x7c   : > { %p9094_p2 = pnand %p9092_p0, %p9089_p13 }
  0x7e   : > { %9097 = shalt.err (!%p9094_p2)
}
  0x7f   : > { %s9098_s25 = scalar_lea.vmem %s304_s12, 16  ;;  %s9105_s29 = scalar_lea.vmem %s304_s12, 32 }
  0x80   : > { %p9099_p5 = scmp.ne.s32.totalorder %s304_s12, %s9098_s25  ;;  %p9106_p4 = scmp.lt.s32.totalorder %s304_s12, %s304_s12 }
  0x81   : > { %p9107_p10 = scmp.lt.s32.totalorder %s9105_s29, %s9098_s25 }
  0x82   : > { %p9101_p7 = pnand %p9099_p5, %p9467_p8 }
  0x83   : > { %p9108_p11 = por %p9107_p10, %p9106_p4 }
  0x84   : > { %p9102_p9 = pneg %p9101_p7 }
  0x86   : > { %p9109_p12 = pnand %p9108_p11, %p9102_p9 }
  0x88   : > { %9112 = shalt.err (!%p9109_p12)
}
  0x89   : > { %8716 = dma.hbm_to_vmem [thread:$0]  (!%p9451_p6), %s11739_s2, 16, %s304_s12, [#allocation7]  }
  0x8a   : > { %s9350_s30 = smov [#allocation11]   ;;  %s9351_s21 = smov [#allocation14]  }
  0x8b   : > { %s324_s17 = sshll.u32 %s9350_s30, 4  ;;  %s349_s18 = sshll.u32 %s9351_s21, 4  ;;  %s325_s17 = int_to_ptr.vmem [resolvable:$true] %s324_s17  ;;  %s350_s18 = int_to_ptr.vmem [resolvable:$true] %s349_s18 }
  0x8c   : > { %s9113_s10 = scalar_lea.hbm %s11691_s4, 2304 }
  0x8d   : > { %p9114_p1 = scmp.ne.s32.totalorder %s11691_s4, %s9113_s10  ;;  %p9120_p0 = scmp.lt.u32.totalorder %s9113_s10, %s11691_s4 }
  0x8f   : > { %p9116_p3 = pnand %p9114_p1, %p9467_p8 }
  0x91   : > { %p9117_p13 = pneg %p9116_p3 }
  0x93   : > { %p9122_p2 = pnand %p9120_p0, %p9117_p13 }
  0x95   : > { %9125 = shalt.err (!%p9122_p2)
}
  0x96   : > { %s9126_s12 = scalar_lea.vmem %s325_s17, 2304  ;;  %p9134_p4 = scmp.lt.s32.totalorder %s325_s17, %s325_s17 }
  0x97   : > { %p9127_p5 = scmp.ne.s32.totalorder %s325_s17, %s9126_s12  ;;  %p9135_p10 = scmp.lt.s32.totalorder %s9126_s12, %s9126_s12 }
  0x99   : > { %p9129_p7 = pnand %p9127_p5, %p9467_p8  ;;  %p9136_p11 = por %p9135_p10, %p9134_p4 }
  0x9b   : > { %p9130_p9 = pneg %p9129_p7 }
  0x9d   : > { %p9137_p12 = pnand %p9136_p11, %p9130_p9 }
  0x9f   : > { %9140 = shalt.err (!%p9137_p12)
}
  0xa0   : > { %s11740_s28 = smov 4   ;;  %s9141_s27 = scalar_lea.hbm %s11693_s6, 16 }
  0xa1   : > { %8722 = dma.hbm_to_vmem [thread:$0]  (!%p9451_p6), %s11691_s4, 2304, %s325_s17, [#allocation10], %s11738_s20, %s11738_s20, %s11740_s28  }
  0xa2   : > { %p9142_p1 = scmp.ne.s32.totalorder %s11693_s6, %s9141_s27  ;;  %p9148_p0 = scmp.lt.u32.totalorder %s9141_s27, %s11693_s6 }
  0xa4   : > { %p9144_p3 = pnand %p9142_p1, %p9467_p8 }
  0xa6   : > { %p9145_p13 = pneg %p9144_p3 }
  0xa8   : > { %p9150_p2 = pnand %p9148_p0, %p9145_p13 }
  0xaa   : > { %9153 = shalt.err (!%p9150_p2)
}
  0xab   : > { %s9154_s12 = scalar_lea.vmem %s350_s18, 16  ;;  %s9161_s17 = scalar_lea.vmem %s350_s18, 32 }
  0xac   : > { %p9155_p5 = scmp.ne.s32.totalorder %s350_s18, %s9154_s12  ;;  %p9162_p4 = scmp.lt.s32.totalorder %s350_s18, %s350_s18 }
  0xad   : > { %p9163_p10 = scmp.lt.s32.totalorder %s9161_s17, %s9154_s12 }
  0xae   : > { %p9157_p7 = pnand %p9155_p5, %p9467_p8 }
  0xaf   : > { %p9164_p11 = por %p9163_p10, %p9162_p4 }
  0xb0   : > { %p9158_p9 = pneg %p9157_p7 }
  0xb2   : > { %p9165_p12 = pnand %p9164_p11, %p9158_p9 }
  0xb4   : > { %9168 = shalt.err (!%p9165_p12)
}
  0xb5   : > { %8728 = dma.hbm_to_vmem [thread:$0]  (!%p9451_p6), %s11693_s6, 16, %s350_s18, [#allocation13]  }
  0xb6   : > { %s9352_s21 = smov [#allocation17]   ;;  %s9353_s27 = smov [#allocation18]  }
  0xb7   : > { %s373_s22 = sshll.u32 %s9352_s21, 4  ;;  %s384_s10 = sshll.u32 %s9353_s27, 4  ;;  %s374_s22 = int_to_ptr.vmem [resolvable:$true] %s373_s22  ;;  %s385_s10 = int_to_ptr.vmem [resolvable:$true] %s384_s10 }
  0xb8   : > { %s9169_s24 = scalar_lea.hbm %s11695_s8, 16 }
  0xb9   : > { %p9170_p1 = scmp.ne.s32.totalorder %s11695_s8, %s9169_s24  ;;  %p9176_p0 = scmp.lt.u32.totalorder %s9169_s24, %s11695_s8 }
  0xbb   : > { %p9172_p3 = pnand %p9170_p1, %p9467_p8 }
  0xbd   : > { %p9173_p13 = pneg %p9172_p3 }
  0xbf   : > { %p9178_p2 = pnand %p9176_p0, %p9173_p13 }
  0xc1   : > { %9181 = shalt.err (!%p9178_p2)
}
  0xc2   : > { %s9182_s18 = scalar_lea.vmem %s374_s22, 16  ;;  %s9189_s30 = scalar_lea.vmem %s374_s22, 32 }
  0xc3   : > { %p9183_p5 = scmp.ne.s32.totalorder %s374_s22, %s9182_s18  ;;  %p9190_p4 = scmp.lt.s32.totalorder %s374_s22, %s374_s22 }
  0xc4   : > { %p9191_p10 = scmp.lt.s32.totalorder %s9189_s30, %s9182_s18 }
  0xc5   : > { %p9185_p7 = pnand %p9183_p5, %p9467_p8 }
  0xc6   : > { %p9192_p11 = por %p9191_p10, %p9190_p4 }
  0xc7   : > { %p9186_p9 = pneg %p9185_p7 }
  0xc9   : > { %p9193_p12 = pnand %p9192_p11, %p9186_p9 }
  0xcb   : > { %9196 = shalt.err (!%p9193_p12)
}
  0xcc   : > { %8734 = dma.hbm_to_vmem [thread:$0]  (!%p9451_p6), %s11695_s8, 16, %s374_s22, [#allocation16]  }
  0xcd   : > { %s9197_s29 = scalar_lea.hbm %s11696_s9, 16 }
  0xce   : > { %p9198_p1 = scmp.ne.s32.totalorder %s11696_s9, %s9197_s29  ;;  %p9204_p0 = scmp.lt.u32.totalorder %s9197_s29, %s11696_s9 }
  0xd0   : > { %p9200_p3 = pnand %p9198_p1, %p9467_p8 }
  0xd2   : > { %p9201_p13 = pneg %p9200_p3 }
  0xd4   : > { %p9206_p2 = pnand %p9204_p0, %p9201_p13 }
  0xd6   : > { %9209 = shalt.err (!%p9206_p2)
}
  0xd7   : > { %s9210_s18 = scalar_lea.vmem %s385_s10, 16  ;;  %s9217_s22 = scalar_lea.vmem %s385_s10, 32 }
  0xd8   : > { %p9211_p5 = scmp.ne.s32.totalorder %s385_s10, %s9210_s18  ;;  %p9218_p4 = scmp.lt.s32.totalorder %s385_s10, %s385_s10 }
  0xd9   : > { %p9219_p10 = scmp.lt.s32.totalorder %s9217_s22, %s9210_s18 }
  0xda   : > { %p9213_p7 = pnand %p9211_p5, %p9467_p8 }
  0xdb   : > { %p9220_p11 = por %p9219_p10, %p9218_p4 }
  0xdc   : > { %p9214_p9 = pneg %p9213_p7 }
  0xde   : > { %p9221_p12 = pnand %p9220_p11, %p9214_p9 }
  0xe0   : > { %9224 = shalt.err (!%p9221_p12)
}
  0xe1   : > { %8737 = dma.hbm_to_vmem [thread:$0]  (!%p9451_p6), %s11696_s9, 16, %s385_s10, [#allocation19]  }
  0xe2   : > { %s7139_s11 = sadd.s32 4294967294, %s9341_s16   ;;  %s9655_s23 = sadd.s32 1, %s9341_s16  }
  0xe3   : > { %s38_s27 = sadd.s32 1, %s9337_s15  ;;  %s35_s1 = ssub.s32 %s9341_s16, %s9655_s23 }
  0xe4   : > { %p45_p8 = scmp.ne.s32.totalorder %s9337_s15, %s9333_s14  ;;  %p36_p1 = scmp.eq.s32.totalorder %s35_s1, 0 }
  0xe5   : > { %p46_p3 = scmp.eq.s32.totalorder %s9341_s16, 0  ;;  %p51_p13 = scmp.ne.s32.totalorder %s9333_s14, %s9329_s13 }
  0xe6   : > { %p264_p0 = scmp.eq.s32.totalorder %s9435_s19, 1  ;;  %p11741_p5 = scmp.eq.s32.totalorder %s9435_s19, 0 }
  0xe7   : > { %s9667_s25 = scalar_select %p36_p1, %s9337_s15, %s38_s27  }
  0xe8   : > { %p47_p2 = por %p46_p3, %p45_p8  ;;  %p9671_p7 = por %p11741_p5, %p51_p13 }
  0xe9   : > { %p9675_p6 = por %p264_p0, %p45_p8  ;;  %p270_p9 = scmp.eq.s32.totalorder %s7139_s11, 1 }
  0xea   : > { %p8755_p4 = scmp.lt.s32.totalorder %s9341_s16, 2  ;;  %s395_s24 = sand.u32 1, %s9337_s15  }
  0xeb   : > { %s11743_s10 = scalar_select %p9675_p6, 1, 0 }
  0xec   : > { %p9681_p10 = por %p270_p9, %p51_p13  ;;  %s7151_s17 = sshll.u32 %s395_s24, 7 }
  0xed   : > { %s7637_s26 = sshll.u32 %s9341_s16, 11  ;;  %s399_s21 = scalar_lea.vmem [#allocation3], %s7151_s17 }
  0xee   : > { %s11744_s12 = scalar_select %p9681_p10, 1, 0 }
  0xef   : > { %s9689_s30 = scalar_lea.hbm %s11687_s0, %s7637_s26  ;;  %s406_s27 = sshll.u32 %s399_s21, 4  ;;  %s9695_s27 = int_to_ptr.vmem [resolvable:$true] %s406_s27 }
  0xf0   : > { %p9691_p11 = pnand %p8755_p4, %p47_p2  ;;  %s9697_s1 = scalar_lea.sflag [#allocation4], %s395_s24 }
  0xf1   : > { %s9225_s2 = scalar_lea.hbm %s9689_s30, 2048  ;;  %s9230_s18 = scalar_lea.hbm %s11687_s0, 4096 }
  0xf2   : > { %p9226_p12 = scmp.ne.s32.totalorder %s9689_s30, %s9225_s2  ;;  %p9227_p8 = pneg %p9691_p11 }
  0xf3   : > { %p9231_p13 = scmp.lt.u32.totalorder %s9689_s30, %s11687_s0  ;;  %p9232_p0 = scmp.lt.u32.totalorder %s9230_s18, %s9225_s2 }
  0xf4   : > { %p9228_p1 = pnand %p9227_p8, %p9226_p12  ;;  %p9234_p5 = scmp.lt.u32.totalorder %s9225_s2, %s9689_s30 }
  0xf5   : > { %p9233_p2 = por %p9232_p0, %p9231_p13 }
  0xf6   : > { %p9229_p3 = pneg %p9228_p1 }
  0xf7   : > { %p9235_p9 = por %p9234_p5, %p9233_p2 }
  0xf9   : > { %p9236_p4 = pnand %p9235_p9, %p9229_p3 }
  0xfb   : > { %9239 = shalt.err (!%p9236_p4)
}
  0xfc   : > { %s9240_s24 = scalar_lea.vmem %s9695_s27, 2048  ;;  %s9354_s17 = smov [#allocation3]  }
  0xfd   : > { %p9241_p12 = scmp.ne.s32.totalorder %s9695_s27, %s9240_s24  ;;  %s9245_s26 = sshll.u32 %s9354_s17, 4  ;;  %s9246_s26 = int_to_ptr.vmem [resolvable:$false] %s9245_s26 }
  0xfe   : > { %s9247_s22 = scalar_lea.vmem %s9246_s26, 4096  ;;  %p9248_p6 = scmp.lt.s32.totalorder %s9695_s27, %s9246_s26 }
  0xff   : > { %p9243_p1 = pnand %p9241_p12, %p9227_p8  ;;  %p9249_p13 = scmp.lt.s32.totalorder %s9247_s22, %s9240_s24 }
 0x101   : > { %p9244_p10 = pneg %p9243_p1  ;;  %p9250_p0 = por %p9249_p13, %p9248_p6 }
 0x103   : > { %p9251_p2 = pnand %p9250_p0, %p9244_p10 }
 0x105   : > { %9254 = shalt.err (!%p9251_p2)
}
 0x106   : > { %8741 = dma.hbm_to_vmem [thread:$0]  (!%p9691_p11), %s9689_s30, 2048, %s9695_s27, %s9697_s1, %s11738_s20, %s11738_s20, %s11740_s28  }
 0x107   : > { %s11746_s2 = sld [smem:[#allocation28_spill]] }
 0x10d   : > { %p11747_p8 = scmp.ne.s32.totalorder %s11746_s2, 0 }
 0x10f   : > { %418 = sbr.rel (%p11747_p8) target bundleno = 1495 (0x5d7), region = 60 }
 0x116   : > { %s9731_s18 = sand.u32 1, %s9333_s14  }
 0x117   : > { %s7155_s21 = sshll.u32 %s9731_s18, 7  ;;  %s421_s24 = scalar_lea.sflag [#allocation4], %s9731_s18 }
 0x118   : > { %s9737_s11 = scalar_lea.vmem [#allocation3], %s7155_s21 }
 0x119   : > { %9300 = dma.done.wait (%p9671_p7), %s421_s24, 2048  }
 0x11a   : > { %9302 = vsyncadd (%p9671_p7), %s421_s24, 4294965248  ;;  %p11748_p6 = scmp.eq.s32.totalorder %s9435_s19, 0 }
 0x11c   : > { %9304 = dma.done.wait (%p11748_p6), [#allocation7], 1040   ;;  %p11749_p10 = pmov %p11748_p6 }
 0x11d   : > { %p11750_p11 = pmov %p11748_p6 }
 0x11e   : > { %9306 = vsyncadd (%p11749_p10), [#allocation7], 4294966256 }
 0x11f   : > { %9308 = dma.done.wait (%p11750_p11), [#allocation10], 2320   ;;  %p11751_p3 = pmov %p11748_p6 }
 0x121   : > { %9310 = vsyncadd (%p11751_p3), [#allocation10], 4294964976  ;;  %p11752_p5 = pmov %p11751_p3 }
 0x122   : > { %p11753_p9 = pmov %p11751_p3 }
 0x123   : > { %9312 = dma.done.wait (%p11752_p5), [#allocation13], 32  }
 0x124   : > { %9314 = vsyncadd (%p11753_p9), [#allocation13], 4294967264  ;;  %p11754_p7 = pmov %p11751_p3 }
 0x125   : > { %p11755_p4 = pmov %p11751_p3 }
 0x126   : > { %9316 = dma.done.wait (%p11754_p7), [#allocation16], 272  }
 0x127   : > { %9318 = vsyncadd (%p11755_p4), [#allocation16], 4294967024  ;;  %p11756_p12 = pmov %p11751_p3 }
 0x128   : > { %p11757_p1 = pmov %p11751_p3 }
 0x129   : > { %9320 = dma.done.wait (%p11756_p12), [#allocation19], 16  }
 0x12a   : > { %9322 = vsyncadd (%p11757_p1), [#allocation19], 4294967280  ;;  %v8812_v0 = vld [vmem:[#allocation6] sm:$0xff]   ;;  %v8813_v1 = vld [vmem:[#allocation6 + $0x8] sm:$0xff]   ;;  %vm964_vm0 = vcmask 253952   ;;  %v11758_v24 = vmov 0 }
 0x12b   : > { %8002 = vmatprep.subr.bf16.mxu0 %v8812_v0  ;;  %v8814_v2 = vld [vmem:[#allocation6 + $0x10] sm:$0xff]   ;;  %v8815_v3 = vld [vmem:[#allocation6 + $0x18] sm:$0xff]   ;;  %v498_v4 = vld [vmem:[%s9737_s11] sm:$0xff]   ;;  %vm971_vm1 = vsmask.f32 256  ;;  %v11761_v29 = vmov 0 }
 0x12c   : > { %8003 = vmatpush3.bf16.msra.mxu0 %v8812_v0  ;;  %8018 = vmatprep.mubr.bf16.mxu0 %v498_v4  ;;  %v8816_v5 = vld [vmem:[#allocation6 + $0x20] sm:$0xff]   ;;  %v8817_v6 = vld [vmem:[#allocation6 + $0x28] sm:$0xff]   ;;  %v8818_v7 = vld [vmem:[#allocation6 + $0x30] sm:$0xff]   ;;  %vm1027_vm3 = vsmask.f32 7938  ;;  %vm961_vm5 = vcmask 257024  }
 0x12d   : > { %8004 = vmatprep.subr.bf16.mxu0 %v8813_v1  ;;  %v8819_v8 = vld [vmem:[#allocation6 + $0x38] sm:$0xff]   ;;  %v500_v9 = vld [vmem:[%s9737_s11 + $0x8] sm:$0xff]   ;;  %v502_v10 = vld [vmem:[%s9737_s11 + $0x10] sm:$0xff]   ;;  %v9355_v38 = vmov 0   ;;  %vm1668_vm6 = vsmask.f32 3328 }
 0x12e   : > { %v504_v11 = vld [vmem:[%s9737_s11 + $0x18] sm:$0xff]   ;;  %v506_v12 = vld [vmem:[%s9737_s11 + $0x20] sm:$0xff]   ;;  %v508_v13 = vld [vmem:[%s9737_s11 + $0x28] sm:$0xff]   ;;  %962 = vst.msk [vmem:[#allocation2] sm:$0xf] %vm961_vm5, %v9355_v38  ;;  %vm2120_vm9 = vcmask 261120  }
 0x12f   : > { %v510_v14 = vld [vmem:[%s9737_s11 + $0x30] sm:$0xff]   ;;  %v512_v15 = vld [vmem:[%s9737_s11 + $0x38] sm:$0xff]   ;;  %v514_v16 = vld [vmem:[%s9737_s11 + $0x40] sm:$0xff]   ;;  %963 = vst.msk [vmem:[#allocation2 + $0x4] sm:$0xf] %vm961_vm5, %v9355_v38  ;;  %vm2679_vm13 = vcmask 1042432  }
 0x130   : > { %8005 = vmatpush3.bf16.msra.mxu0 %v8813_v1  ;;  %v516_v17 = vld [vmem:[%s9737_s11 + $0x48] sm:$0xff]   ;;  %v518_v18 = vld [vmem:[%s9737_s11 + $0x50] sm:$0xff]   ;;  %v520_v19 = vld [vmem:[%s9737_s11 + $0x58] sm:$0xff]   ;;  %965 = vst.msk [vmem:[#allocation2 + $0x8] sm:$0x1] %vm964_vm0, %v9355_v38  ;;  %vm2680_vm14 = vcmask 1046532  }
 0x131   : > { %8006 = vmatprep.subr.bf16.mxu0 %v8814_v2  ;;  %v522_v20 = vld [vmem:[%s9737_s11 + $0x60] sm:$0xff]   ;;  %v524_v21 = vld [vmem:[%s9737_s11 + $0x68] sm:$0xff]   ;;  %v526_v22 = vld [vmem:[%s9737_s11 + $0x70] sm:$0xff]   ;;  %967 = vst.msk [vmem:[#allocation2 + $0xcc] sm:$0xf] %vm961_vm5, %v9355_v38  ;;  %s11556_s20 = scalar_lea.vmem [#allocation20], %s7155_s21 }
 0x132   : > { %v528_v23 = vld [vmem:[%s9737_s11 + $0x78] sm:$0xff]   ;;  %vm9781_vm2 = vmand %vm964_vm0, %vm971_vm1  ;;  %v979_v25 = vld [vmem:[#allocation2 + $0x18] sm:$0x1]  ;;  %968 = vst.msk [vmem:[#allocation2 + $0xd0] sm:$0xf] %vm961_vm5, %v9355_v38  ;;  %s7702_s28 = sshll.u32 %s9435_s19, 11 }
 0x133   : > { %v11759_v24 = vsel %vm9781_vm2, 4294967295, %v11758_v24  ;;  %v980_v26 = vsel %vm9781_vm2, 0, %v979_v25  ;;  %v976_v27 = vld [vmem:[#allocation2 + $0xc] sm:$0x1]  ;;  %vm9791_vm4 = vmand %vm964_vm0, %vm1027_vm3  ;;  %v1035_v30 = vld [vmem:[#allocation2 + $0x20] sm:$0x1] }
 0x134   : > { %8007 = vmatpush3.bf16.msra.mxu0 %v8814_v2  ;;  %11760 = vst [vmem:[#allocation29_spill] sm:$0xff] %v11759_v24  ;;  %981 = vst [vmem:[#allocation2 + $0x18] sm:$0x1] %v980_v26  ;;  %v977_v28 = vsel %vm9781_vm2, 0, %v976_v27  ;;  %v11762_v29 = vsel %vm9791_vm4, 4294967295, %v11761_v29  ;;  %v1036_v31 = vsel %vm9791_vm4, 0, %v1035_v30 }
 0x135   : > { %8008 = vmatprep.subr.bf16.mxu0 %v8815_v3  ;;  %11763 = vst [vmem:[#allocation30_spill] sm:$0xff] %v11762_v29  ;;  %978 = vst [vmem:[#allocation2 + $0xc] sm:$0x1] %v977_v28  ;;  %v1032_v32 = vld [vmem:[#allocation2 + $0x14] sm:$0x1]  ;;  %v8836_v58 = vld [vmem:[#allocation11 + $0x10] sm:$0xff]  }
 0x136   : > { %1037 = vst [vmem:[#allocation2 + $0x20] sm:$0x1] %v1036_v31  ;;  %v1033_v33 = vsel %vm9791_vm4, 0, %v1032_v32  ;;  %v985_v34 = vld [vmem:[#allocation2 + $0x30] sm:$0x1]  ;;  %vm9894_vm11 = vmand %vm961_vm5, %vm1027_vm3  ;;  %s6980_s29 = sshll.u32 %s11556_s20, 4  ;;  %s11641_s29 = int_to_ptr.vmem [resolvable:$true] %s6980_s29 }
 0x137   : > { %1034 = vst [vmem:[#allocation2 + $0x14] sm:$0x1] %v1033_v33  ;;  %v986_v35 = vsel %vm9781_vm2, 0, %v985_v34  ;;  %v982_v36 = vld [vmem:[#allocation2 + $0x24] sm:$0x1]  ;;  %vm10553_vm15 = vmor %vm2679_vm13, %vm2680_vm14  ;;  %s11841_s1 = sld [smem:[#allocation46_spill]] }
 0x138   : > { %8009 = vmatpush3.bf16.msra.mxu0 %v8815_v3  ;;  %987 = vst [vmem:[#allocation2 + $0x30] sm:$0x1] %v986_v35  ;;  %v983_v37 = vsel %vm9781_vm2, 0, %v982_v36  ;;  %969 = vst.msk [vmem:[#allocation2 + $0xd4] sm:$0x1] %vm964_vm0, %v9355_v38  ;;  %v8839_v35 = vld [vmem:[#allocation11 + $0x38] sm:$0xff]  }
 0x139   : > { %8010 = vmatprep.subr.bf16.mxu0 %v8816_v5  ;;  %984 = vst [vmem:[#allocation2 + $0x24] sm:$0x1] %v983_v37  ;;  %v1041_v39 = vld [vmem:[#allocation2 + $0x38] sm:$0x1]  ;;  %v1038_v41 = vld [vmem:[#allocation2 + $0x2c] sm:$0x1] }
 0x13a   : > { %v1042_v40 = vsel %vm9791_vm4, 0, %v1041_v39  ;;  %v1039_v42 = vsel %vm9791_vm4, 0, %v1038_v41  ;;  %v991_v43 = vld [vmem:[#allocation2 + $0x48] sm:$0x1]  ;;  %v973_v44 = vld [vmem:[#allocation2] sm:$0x1] }
 0x13b   : > { %1043 = vst [vmem:[#allocation2 + $0x38] sm:$0x1] %v1042_v40  ;;  %1040 = vst [vmem:[#allocation2 + $0x2c] sm:$0x1] %v1039_v42  ;;  %v992_v45 = vsel %vm9781_vm2, 0, %v991_v43  ;;  %v974_v47 = vsel %vm9781_vm2, 0, %v973_v44 }
 0x13c   : > { %8011 = vmatpush3.bf16.msra.mxu0 %v8816_v5  ;;  %v988_v46 = vld [vmem:[#allocation2 + $0x3c] sm:$0x1]  ;;  %993 = vst [vmem:[#allocation2 + $0x48] sm:$0x1] %v992_v45  ;;  %v1047_v49 = vld [vmem:[#allocation2 + $0x50] sm:$0x1] }
 0x13d   : > { %8012 = vmatprep.subr.bf16.mxu0 %v8817_v6  ;;  %v989_v48 = vsel %vm9781_vm2, 0, %v988_v46  ;;  %975 = vst [vmem:[#allocation2] sm:$0x1] %v974_v47  ;;  %v1048_v50 = vsel %vm9791_vm4, 0, %v1047_v49  ;;  %v1044_v51 = vld [vmem:[#allocation2 + $0x44] sm:$0x1]  ;;  %s11639_s17 = scalar_lea.hbm %s11841_s1, %s7702_s28 }
 0x13e   : > { %990 = vst [vmem:[#allocation2 + $0x3c] sm:$0x1] %v989_v48  ;;  %1049 = vst [vmem:[#allocation2 + $0x50] sm:$0x1] %v1048_v50  ;;  %v1045_v52 = vsel %vm9791_vm4, 0, %v1044_v51  ;;  %v9858_v42 = vld [vmem:[#allocation11 + $0x40] sm:$0xff]  }
 0x13f   : > { %v1029_v53 = vld [vmem:[#allocation2 + $0x8] sm:$0x1]  ;;  %1046 = vst [vmem:[#allocation2 + $0x44] sm:$0x1] %v1045_v52  ;;  %v997_v55 = vld [vmem:[#allocation2 + $0x60] sm:$0x1] }
 0x140   : > { %8013 = vmatpush3.bf16.msra.mxu0 %v8817_v6  ;;  %v1030_v54 = vsel %vm9791_vm4, 0, %v1029_v53  ;;  %v998_v56 = vsel %vm9781_vm2, 0, %v997_v55  ;;  %v994_v57 = vld [vmem:[#allocation2 + $0x54] sm:$0x1]  ;;  %v1617_v61 = vld [vmem:[#allocation2 + $0x4] sm:$0xf] }
 0x141   : > { %8014 = vmatprep.subr.bf16.mxu0 %v8818_v7  ;;  %1031 = vst [vmem:[#allocation2 + $0x8] sm:$0x1] %v1030_v54  ;;  %999 = vst [vmem:[#allocation2 + $0x60] sm:$0x1] %v998_v56  ;;  %v995_v59 = vsel %vm9781_vm2, 0, %v994_v57  ;;  %v1681_v1 = vshll.u32 %v1617_v61, 16 }
 0x142   : > { %996 = vst [vmem:[#allocation2 + $0x54] sm:$0x1] %v995_v59  ;;  %v1053_v0 = vld [vmem:[#allocation2 + $0x68] sm:$0x1]  ;;  %v1685_v2 = vshrl.u32 %v1617_v61, 16  ;;  %s6967_s19 = scalar_lea.sflag [#allocation5], %s9731_s18 }
 0x143   : > { %v1054_v3 = vsel %vm9791_vm4, 0, %v1053_v0  ;;  %v1050_v4 = vld [vmem:[#allocation2 + $0x5c] sm:$0x1]  ;;  %vm1669_vm7 = vsmask.f32 7440  ;;  %s9255_s26 = scalar_lea.vmem %s11641_s29, 2048 }
 0x144   : > { %8015 = vmatpush3.bf16.msra.mxu0 %v8818_v7  ;;  %v1616_v60 = vld [vmem:[#allocation2] sm:$0xf]  ;;  %1055 = vst [vmem:[#allocation2 + $0x68] sm:$0x1] %v1054_v3  ;;  %v1051_v7 = vsel %vm9791_vm4, 0, %v1050_v4  ;;  %vm9835_vm8 = vmor %vm1668_vm6, %vm1669_vm7  ;;  %p9256_p13 = scmp.ne.s32.totalorder %s11641_s29, %s9255_s26  ;;  %p11842_p0 = scmp.ne.s32.totalorder %s11743_s10, 0 }
 0x145   : > { %8016 = vmatprep.subr.bf16.mxu0 %v8819_v8  ;;  %v1672_v62 = vshrl.u32 %v1616_v60, 16  ;;  %v1675_v63 = vshll.u32 %v1616_v60, 16  ;;  %1052 = vst [vmem:[#allocation2 + $0x5c] sm:$0x1] %v1051_v7  ;;  %v1059_v26 = vld [vmem:[#allocation2 + $0x80] sm:$0x1] }
 0x146   : > { %v1060_v28 = vsel %vm9791_vm4, 0, %v1059_v26  ;;  %v1056_v31 = vld [vmem:[#allocation2 + $0x74] sm:$0x1]  ;;  %v1009_v33 = vld [vmem:[#allocation2 + $0x90] sm:$0x1]  ;;  %p9257_p2 = pnand %p9256_p13, %p11842_p0  ;;  %s9356_s22 = smov [#allocation20]  }
 0x147   : > { %v1674_v6 = vrot.slane %v1672_v62, 4  ;;  %1061 = vst [vmem:[#allocation2 + $0x80] sm:$0x1] %v1060_v28  ;;  %v1057_v32 = vsel %vm9791_vm4, 0, %v1056_v31  ;;  %v1010_v34 = vsel %vm9781_vm2, 0, %v1009_v33  ;;  %s9259_s2 = sshll.u32 %s9356_s22, 4  ;;  %s9260_s2 = int_to_ptr.vmem [resolvable:$false] %s9259_s2 }
 0x148   : > { %8017 = vmatpush3.bf16.msra.mxu0 %v8819_v8  ;;  %v1652_v5 = vld [vmem:[#allocation2 + $0x8] sm:$0x1]  ;;  %v1677_v8 = vrot.slane %v1675_v63, 5  ;;  %1058 = vst [vmem:[#allocation2 + $0x74] sm:$0x1] %v1057_v32  ;;  %p9258_p8 = pneg %p9257_p2  ;;  %s9261_s21 = scalar_lea.vmem %s9260_s2, 4096 }
 0x149   : > { %8050 = vmatprep.subr.bf16.mxu0 %v8836_v58  ;;  %1011 = vst [vmem:[#allocation2 + $0x90] sm:$0x1] %v1010_v34  ;;  %v1006_v36 = vld [vmem:[#allocation2 + $0x84] sm:$0x1]  ;;  %v1065_v37 = vld [vmem:[#allocation2 + $0x98] sm:$0x1]  ;;  %p9262_p6 = scmp.lt.s32.totalorder %s11641_s29, %s9260_s2  ;;  %p9263_p10 = scmp.lt.s32.totalorder %s9261_s21, %s9255_s26 }
 0x14a   : > { %v1007_v38 = vsel %vm9781_vm2, 0, %v1006_v36  ;;  %v1066_v39 = vsel %vm9791_vm4, 0, %v1065_v37  ;;  %v1062_v40 = vld [vmem:[#allocation2 + $0x8c] sm:$0x1]  ;;  %v1015_v43 = vld [vmem:[#allocation2 + $0xa8] sm:$0x1] }
 0x14b   : > { %8019 = vmatmul.mubr.bf16.vlgmr.msra.gmra.mrb[0].mxu0 %v500_v9  ;;  %v8837_v9 = vld [vmem:[#allocation11 + $0x18] sm:$0xff]   ;;  %1008 = vst [vmem:[#allocation2 + $0x84] sm:$0x1] %v1007_v38  ;;  %1067 = vst [vmem:[#allocation2 + $0x98] sm:$0x1] %v1066_v39  ;;  %v1063_v41 = vsel %vm9791_vm4, 0, %v1062_v40  ;;  %p9264_p11 = por %p9263_p10, %p9262_p6 }
 0x14c   : > { %8022 = vmatprep.mubr.bf16.mxu0 %v502_v10  ;;  %8051 = vmatpush3.bf16.msra.mxu0 %v8836_v58  ;;  %v1683_v10 = vrot.slane %v1681_v1, 5  ;;  %1064 = vst [vmem:[#allocation2 + $0x8c] sm:$0x1] %v1063_v41  ;;  %v1016_v44 = vsel %vm9781_vm2, 0, %v1015_v43  ;;  %v1012_v45 = vld [vmem:[#allocation2 + $0x9c] sm:$0x1] }
 0x14d   : > { %8052 = vmatprep.subr.bf16.mxu0 %v8837_v9  ;;  %1017 = vst [vmem:[#allocation2 + $0xa8] sm:$0x1] %v1016_v44  ;;  %v1013_v46 = vsel %vm9781_vm2, 0, %v1012_v45  ;;  %v1071_v47 = vld [vmem:[#allocation2 + $0xb0] sm:$0x1]  ;;  %p9265_p3 = pnand %p9264_p11, %p9258_p8 }
 0x14e   : > { %v1068_v48 = vld [vmem:[#allocation2 + $0xa4] sm:$0x1]  ;;  %1014 = vst [vmem:[#allocation2 + $0x9c] sm:$0x1] %v1013_v46  ;;  %v1072_v49 = vsel %vm9791_vm4, 0, %v1071_v47 }
 0x14f   : > { %v1069_v50 = vsel %vm9791_vm4, 0, %v1068_v48  ;;  %1073 = vst [vmem:[#allocation2 + $0xb0] sm:$0x1] %v1072_v49  ;;  %v1021_v51 = vld [vmem:[#allocation2 + $0xc0] sm:$0x1] }
 0x150   : > { %8053 = vmatpush3.bf16.msra.mxu0 %v8837_v9  ;;  %1070 = vst [vmem:[#allocation2 + $0xa4] sm:$0x1] %v1069_v50  ;;  %v1022_v52 = vsel %vm9781_vm2, 0, %v1021_v51  ;;  %v1018_v53 = vld [vmem:[#allocation2 + $0xb4] sm:$0x1] }
 0x151   : > { %1023 = vst [vmem:[#allocation2 + $0xc0] sm:$0x1] %v1022_v52  ;;  %v1077_v54 = vld [vmem:[#allocation2 + $0xc8] sm:$0x1]  ;;  %v1019_v55 = vsel %vm9781_vm2, 0, %v1018_v53 }
 0x152   : > { %v1078_v56 = vsel %vm9791_vm4, 0, %v1077_v54  ;;  %v1074_v57 = vld [vmem:[#allocation2 + $0xbc] sm:$0x1]  ;;  %1020 = vst [vmem:[#allocation2 + $0xb4] sm:$0x1] %v1019_v55 }
 0x153   : > { %8023 = vmatmul.mubr.bf16.gmra.mrb[4].mxu0 %v504_v11  ;;  %v1687_v11 = vrot.slane %v1685_v2, 4  ;;  %1079 = vst [vmem:[#allocation2 + $0xc8] sm:$0x1] %v1078_v56  ;;  %v1075_v58 = vsel %vm9791_vm4, 0, %v1074_v57  ;;  %v9877_v59 = vld [vmem:[#allocation8] ss:$0 sm:$0xff] }
 0x154   : > { %8026 = vmatprep.mubr.bf16.mxu0 %v506_v12  ;;  %v1691_v12 = vshll.u32 %v1652_v5, 16  ;;  %1076 = vst [vmem:[#allocation2 + $0xbc] sm:$0x1] %v1075_v58  ;;  %v9879_v61 = vld [vmem:[#allocation9] ss:$0 sm:$0xff] }
 0x155   : > { %vm1179_vm10 = vsmask.f32 4368  ;;  %v1504_v43 = vld [vmem:[#allocation2 + $0xc] sm:$0xf]  ;;  %v1515_v49 = vld [vmem:[#allocation2 + $0x20] sm:$0x1] }
 0x156   : > { %vm9901_vm12 = vmor %vm971_vm1, %vm1179_vm10  ;;  %v1508_v55 = vld [vmem:[#allocation2 + $0x14] sm:$0x1] }
 0x15b   : > { %8027 = vmatmul.mubr.bf16.gmra.mrb[8].mxu0 %v508_v13  ;;  %v1678_v13 = vor.u32 %v1677_v8, %v1674_v6 }
 0x15c   : > { %8030 = vmatprep.mubr.bf16.mxu0 %v510_v14  ;;  %v1688_v14 = vor.u32 %v1687_v11, %v1683_v10 }
 0x163   : > { %8031 = vmatmul.mubr.bf16.gmra.mrb[12].mxu0 %v512_v15  ;;  %v1693_v15 = vrot.slane %v1691_v12, 5 }
 0x164   : > { %8034 = vmatprep.mubr.bf16.mxu0 %v514_v16  ;;  %v1003_v16 = vld [vmem:[#allocation2 + $0x78] sm:$0x1] }
 0x16b   : > { %8035 = vmatmul.mubr.bf16.gmra.mrb[16].mxu0 %v516_v17  ;;  %v1679_v17 = vrot.slane %v1678_v13, 4 }
 0x16c   : > { %8038 = vmatprep.mubr.bf16.mxu0 %v518_v18  ;;  %v1004_v18 = vsel %vm9781_vm2, 0, %v1003_v16 }
 0x16d   : > { %1005 = vst [vmem:[#allocation2 + $0x78] sm:$0x1] %v1004_v18  ;;  %v1684_v25 = vsel %vm9835_vm8, %v1679_v17, %v1683_v10 }
 0x173   : > { %8039 = vmatmul.mubr.bf16.gmra.mrb[20].mxu0 %v520_v19  ;;  %v1000_v19 = vld [vmem:[#allocation2 + $0x6c] sm:$0x1] }
 0x174   : > { %8042 = vmatprep.mubr.bf16.mxu0 %v522_v20 }
 0x17b   : > { %8043 = vmatmul.mubr.bf16.gmra.mrb[24].mxu0 %v524_v21  ;;  %v1689_v21 = vrot.slane %v1688_v14, 4 }
 0x17c   : > { %8046 = vmatprep.mubr.bf16.mxu0 %v526_v22  ;;  %v8838_v22 = vld [vmem:[#allocation11 + $0x30] sm:$0xff]  }
 0x17d   : > { %v1694_v27 = vsel %vm9835_vm8, %v1689_v21, %v1693_v15  ;;  %8410 = vmatprep.subr.bf16.mxu1 %v8838_v22 }
 0x17e   : > { %v7224_v30 = vcombine.low %v1684_v25, %v1694_v27  ;;  %8412 = vmatpush3.bf16.msra.mxu1 %v8838_v22 }
 0x17f   : > { %8411 = vmatprep.subr.bf16.mxu1 %v8839_v35 }
 0x182   : > { %8413 = vmatpush3.bf16.msra.mxu1 %v8839_v35  ;;  %v1511_v35 = vld [vmem:[#allocation2 + $0x18] sm:$0xf] }
 0x183   : > { %8047 = vmatmul.mubr.bf16.gmra.mrb[28].mxu0 %v528_v23  ;;  %v1001_v23 = vsel %vm9781_vm2, 0, %v1000_v19  ;;  %8194 = vmatprep.subr.bf16.mxu1 %v9858_v42 }
 0x184   : > { %1002 = vst [vmem:[#allocation2 + $0x6c] sm:$0x1] %v1001_v23  ;;  %8054 = vmatprep.mubr.msk.bf16.mxu0 %vm2120_vm9, %v7224_v30 }
 0x21e   : > { %v8020_v60 = vpop.f32.mrb[0].mxu0 }
 0x21f   : > { %v860_v62 = vmul.f32 %v8020_v60, %v9877_v59  ;;  %v724_v63 = vpop.f32.mrb[1].mxu0 }
 0x220   : > { %v858_v0 = vmul.f32 %v9877_v59, %v724_v63  ;;  %v8021_v1 = vpop.f32.mrb[2].mxu0 }
 0x221   : > { %v899_v2 = vadd.f32 %v9879_v61, %v860_v62  ;;  %v861_v3 = vmul.f32 %v8021_v1, %v9877_v59  ;;  %v727_v4 = vpop.f32.mrb[3].mxu0 }
 0x222   : > { %v897_v5 = vadd.f32 %v9879_v61, %v858_v0  ;;  %v859_v6 = vmul.f32 %v9877_v59, %v727_v4 }
 0x223   : > { %v931_v7 = vmax.f32 %v899_v2, 0.0  ;;  %v900_v8 = vadd.f32 %v9879_v61, %v861_v3 }
 0x224   : > { %v929_v9 = vmax.f32 %v897_v5, 0.0  ;;  %v898_v10 = vadd.f32 %v9879_v61, %v859_v6 }
 0x225   : > { %v7640_v11 = vpack.c.bf16 %v931_v7, %v931_v7  ;;  %v932_v12 = vmax.f32 %v900_v8, 0.0 }
 0x226   : > { %v7638_v13 = vpack.c.bf16 %v929_v9, %v929_v9  ;;  %v930_v14 = vmax.f32 %v898_v10, 0.0  ;;  %v8024_v15 = vpop.f32.mrb[4].mxu0 }
 0x227   : > { %v1199_v16 = vshrl.u32 %v7640_v11, 16  ;;  %v1202_v17 = vshll.u32 %v7640_v11, 16  ;;  %v7641_v18 = vpack.c.bf16 %v932_v12, %v932_v12  ;;  %v864_v19 = vmul.f32 %v8024_v15, %v9877_v59  ;;  %v740_v21 = vpop.f32.mrb[5].mxu0  ;;  %v1525_v15 = vld [vmem:[#allocation2 + $0x30] sm:$0xf] }
 0x228   : > { %v1182_v22 = vshrl.u32 %v7638_v13, 16  ;;  %v1185_v23 = vshll.u32 %v7638_v13, 16  ;;  %v7639_v25 = vpack.c.bf16 %v930_v14, %v930_v14  ;;  %v862_v26 = vmul.f32 %v9877_v59, %v740_v21  ;;  %v8025_v27 = vpop.f32.mrb[6].mxu0 }
 0x229   : > { %v1201_v28 = vrot.slane %v1199_v16, 7  ;;  %v1207_v30 = vshrl.u32 %v7641_v18, 16  ;;  %v1210_v31 = vshll.u32 %v7641_v18, 16  ;;  %v903_v32 = vadd.f32 %v9879_v61, %v864_v19  ;;  %v743_v33 = vpop.f32.mrb[7].mxu0 }
 0x22a   : > { %v1184_v36 = vrot.slane %v1182_v22, 7  ;;  %v1190_v37 = vshrl.u32 %v7639_v25, 16  ;;  %v1193_v38 = vshll.u32 %v7639_v25, 16  ;;  %v901_v39 = vadd.f32 %v9879_v61, %v862_v26 }
 0x22b   : > { %v1204_v40 = vor.u32 %v1202_v17, %v1201_v28  ;;  %v1205_v41 = vrot.slane %v1201_v28, 4  ;;  %v1209_v44 = vrot.slane %v1207_v30, 7  ;;  %v935_v45 = vmax.f32 %v903_v32, 0.0 }
 0x22c   : > { %v1187_v46 = vor.u32 %v1185_v23, %v1184_v36  ;;  %v1188_v47 = vrot.slane %v1184_v36, 4  ;;  %v1192_v50 = vrot.slane %v1190_v37, 7  ;;  %v933_v51 = vmax.f32 %v901_v39, 0.0  ;;  %v1518_v23 = vld [vmem:[#allocation2 + $0x24] sm:$0xf] }
 0x22d   : > { %v1512_v52 = vsel %vm9894_vm11, %v1204_v40, %v1511_v35  ;;  %v1212_v53 = vor.u32 %v1210_v31, %v1209_v44  ;;  %v1214_v54 = vrot.slane %v1209_v44, 4  ;;  %v7644_v56 = vpack.c.bf16 %v935_v45, %v935_v45 }
 0x22e   : > { %1513 = vst [vmem:[#allocation2 + $0x18] sm:$0xf] %v1512_v52  ;;  %v1505_v57 = vsel %vm9894_vm11, %v1187_v46, %v1504_v43  ;;  %v1195_v58 = vor.u32 %v1193_v38, %v1192_v50  ;;  %v1197_v60 = vrot.slane %v1192_v50, 4  ;;  %v7642_v62 = vpack.c.bf16 %v933_v51, %v933_v51  ;;  %v8028_v63 = vpop.f32.mrb[8].mxu0 }
 0x22f   : > { %1506 = vst [vmem:[#allocation2 + $0xc] sm:$0xf] %v1505_v57  ;;  %v1213_v0 = vsel %vm9901_vm12, %v1205_v41, %v1212_v53  ;;  %v1516_v1 = vsel %vm9781_vm2, %v1214_v54, %v1515_v49  ;;  %v1233_v2 = vshrl.u32 %v7644_v56, 16  ;;  %v1236_v3 = vshll.u32 %v7644_v56, 16  ;;  %v756_v4 = vpop.f32.mrb[9].mxu0 }
 0x230   : > { %1514 = vst.msk [vmem:[#allocation2 + $0x1c] sm:$0xf] %vm961_vm5, %v1213_v0  ;;  %1517 = vst [vmem:[#allocation2 + $0x20] sm:$0x1] %v1516_v1  ;;  %v1196_v5 = vsel %vm9901_vm12, %v1188_v47, %v1195_v58  ;;  %v1509_v6 = vsel %vm9781_vm2, %v1197_v60, %v1508_v55  ;;  %v1216_v7 = vshrl.u32 %v7642_v62, 16  ;;  %v1219_v8 = vshll.u32 %v7642_v62, 16 }
 0x231   : > { %v8029_v9 = vpop.f32.mrb[10].mxu0  ;;  %1507 = vst.msk [vmem:[#allocation2 + $0x10] sm:$0xf] %vm961_vm5, %v1196_v5  ;;  %1510 = vst [vmem:[#allocation2 + $0x14] sm:$0x1] %v1509_v6  ;;  %v9919_v10 = vrot.slane %v1233_v2, 7  ;;  %v865_v11 = vmul.f32 %v8025_v27, %v9877_v59  ;;  %v863_v12 = vmul.f32 %v9877_v59, %v743_v33  ;;  %v868_v13 = vmul.f32 %v8028_v63, %v9877_v59 }
 0x232   : > { %v759_v14 = vpop.f32.mrb[11].mxu0  ;;  %v9924_v16 = vrot.slane %v1216_v7, 7  ;;  %v866_v17 = vmul.f32 %v9877_v59, %v756_v4  ;;  %v869_v18 = vmul.f32 %v8029_v9, %v9877_v59  ;;  %v1529_v2 = vld [vmem:[#allocation2 + $0x38] sm:$0x1]  ;;  %v1522_v6 = vld [vmem:[#allocation2 + $0x2c] sm:$0x1] }
 0x233   : > { %v867_v19 = vmul.f32 %v9877_v59, %v759_v14  ;;  %v1238_v21 = vor.u32 %v1236_v3, %v9919_v10  ;;  %v1239_v22 = vrot.slane %v9919_v10, 4  ;;  %v904_v25 = vadd.f32 %v9879_v61, %v865_v11 }
 0x234   : > { %v902_v26 = vadd.f32 %v9879_v61, %v863_v12  ;;  %v1221_v27 = vor.u32 %v1219_v8, %v9924_v16  ;;  %v1222_v28 = vrot.slane %v9924_v16, 4  ;;  %v907_v30 = vadd.f32 %v9879_v61, %v868_v13  ;;  %v1539_v8 = vld [vmem:[#allocation2 + $0x48] sm:$0xf]  ;;  %v1532_v16 = vld [vmem:[#allocation2 + $0x3c] sm:$0xf] }
 0x235   : > { %v905_v31 = vadd.f32 %v9879_v61, %v866_v17  ;;  %v1526_v32 = vsel %vm9894_vm11, %v1238_v21, %v1525_v15  ;;  %v936_v33 = vmax.f32 %v904_v25, 0.0  ;;  %v908_v36 = vadd.f32 %v9879_v61, %v869_v18 }
 0x236   : > { %v934_v35 = vmax.f32 %v902_v26, 0.0  ;;  %1527 = vst [vmem:[#allocation2 + $0x30] sm:$0xf] %v1526_v32  ;;  %v1519_v37 = vsel %vm9894_vm11, %v1221_v27, %v1518_v23  ;;  %v939_v38 = vmax.f32 %v907_v30, 0.0  ;;  %v906_v40 = vadd.f32 %v9879_v61, %v867_v19  ;;  %v8032_v41 = vpop.f32.mrb[12].mxu0 }
 0x237   : > { %v937_v39 = vmax.f32 %v905_v31, 0.0  ;;  %1520 = vst [vmem:[#allocation2 + $0x24] sm:$0xf] %v1519_v37  ;;  %v7645_v43 = vpack.c.bf16 %v936_v33, %v936_v33  ;;  %v940_v45 = vmax.f32 %v908_v36, 0.0  ;;  %v872_v46 = vmul.f32 %v8032_v41, %v9877_v59  ;;  %v772_v47 = vpop.f32.mrb[13].mxu0 }
 0x238   : > { %v7643_v44 = vpack.c.bf16 %v934_v35, %v934_v35  ;;  %v7648_v49 = vpack.c.bf16 %v939_v38, %v939_v38  ;;  %v938_v51 = vmax.f32 %v906_v40, 0.0  ;;  %v870_v52 = vmul.f32 %v9877_v59, %v772_v47  ;;  %v8033_v53 = vpop.f32.mrb[14].mxu0 }
 0x239   : > { %v7646_v50 = vpack.c.bf16 %v937_v39, %v937_v39  ;;  %v1241_v54 = vshrl.u32 %v7645_v43, 16  ;;  %v1244_v55 = vshll.u32 %v7645_v43, 16  ;;  %v775_v58 = vpop.f32.mrb[15].mxu0  ;;  %v7649_v4 = vpack.c.bf16 %v940_v45, %v940_v45 }
 0x23a   : > { %v1224_v56 = vshrl.u32 %v7643_v44, 16  ;;  %v1227_v57 = vshll.u32 %v7643_v44, 16  ;;  %v1267_v60 = vshrl.u32 %v7648_v49, 16  ;;  %v1270_v62 = vshll.u32 %v7648_v49, 16  ;;  %v1536_v44 = vld [vmem:[#allocation2 + $0x44] sm:$0x1] }
 0x23b   : > { %v1250_v63 = vshrl.u32 %v7646_v50, 16  ;;  %v1253_v0 = vshll.u32 %v7646_v50, 16  ;;  %v1243_v1 = vrot.slane %v1241_v54, 7  ;;  %v7647_v5 = vpack.c.bf16 %v938_v51, %v938_v51  ;;  %v9970_v49 = vld [vmem:[#allocation11] sm:$0xff]  }
 0x23c   : > { %v1226_v3 = vrot.slane %v1224_v56, 7  ;;  %v1269_v7 = vrot.slane %v1267_v60, 7  ;;  %v911_v10 = vadd.f32 %v9879_v61, %v872_v46  ;;  %v909_v11 = vadd.f32 %v9879_v61, %v870_v52  ;;  %8086 = vmatprep.subr.bf16.mxu0 %v9970_v49 }
 0x23d   : > { %v9945_v9 = vrot.slane %v1250_v63, 7  ;;  %v1246_v12 = vor.u32 %v1244_v55, %v1243_v1  ;;  %v1248_v13 = vrot.slane %v1243_v1, 4  ;;  %v1275_v33 = vshrl.u32 %v7649_v4, 16 }
 0x23e   : > { %v1229_v14 = vor.u32 %v1227_v57, %v1226_v3  ;;  %v1231_v15 = vrot.slane %v1226_v3, 4  ;;  %v1272_v17 = vor.u32 %v1270_v62, %v1269_v7  ;;  %v1273_v18 = vrot.slane %v1269_v7, 4  ;;  %v8036_v23 = vpop.f32.mrb[16].mxu0 }
 0x23f   : > { %v1255_v19 = vor.u32 %v1253_v0, %v9945_v9  ;;  %v1256_v21 = vrot.slane %v9945_v9, 4  ;;  %v1247_v25 = vsel %vm9901_vm12, %v1239_v22, %v1246_v12  ;;  %v1530_v26 = vsel %vm9781_vm2, %v1248_v13, %v1529_v2  ;;  %v788_v31 = vpop.f32.mrb[17].mxu0 }
 0x240   : > { %v1230_v27 = vsel %vm9901_vm12, %v1222_v28, %v1229_v14  ;;  %v1523_v30 = vsel %vm9781_vm2, %v1231_v15, %v1522_v6  ;;  %1528 = vst.msk [vmem:[#allocation2 + $0x34] sm:$0xf] %vm961_vm5, %v1247_v25  ;;  %1531 = vst [vmem:[#allocation2 + $0x38] sm:$0x1] %v1530_v26  ;;  %v1540_v32 = vsel %vm9894_vm11, %v1272_v17, %v1539_v8  ;;  %v1278_v35 = vshll.u32 %v7649_v4, 16  ;;  %v8037_v36 = vpop.f32.mrb[18].mxu0 }
 0x241   : > { %1521 = vst.msk [vmem:[#allocation2 + $0x28] sm:$0xf] %vm961_vm5, %v1230_v27  ;;  %1524 = vst [vmem:[#allocation2 + $0x2c] sm:$0x1] %v1523_v30  ;;  %v1533_v22 = vsel %vm9894_vm11, %v1255_v19, %v1532_v16  ;;  %v1543_v28 = vld [vmem:[#allocation2 + $0x50] sm:$0x1]  ;;  %v873_v45 = vmul.f32 %v8033_v53, %v9877_v59  ;;  %v871_v46 = vmul.f32 %v9877_v59, %v775_v58 }
 0x242   : > { %1541 = vst [vmem:[#allocation2 + $0x48] sm:$0xf] %v1540_v32  ;;  %1534 = vst [vmem:[#allocation2 + $0x3c] sm:$0xf] %v1533_v22  ;;  %v1258_v37 = vshrl.u32 %v7647_v5, 16  ;;  %v1261_v38 = vshll.u32 %v7647_v5, 16  ;;  %v876_v47 = vmul.f32 %v8036_v23, %v9877_v59  ;;  %v874_v54 = vmul.f32 %v9877_v59, %v788_v31 }
 0x243   : > { %v943_v39 = vmax.f32 %v911_v10, 0.0  ;;  %v941_v40 = vmax.f32 %v909_v11, 0.0  ;;  %v9965_v41 = vpop.f32.mrb[19].mxu0  ;;  %v1277_v43 = vrot.slane %v1275_v33, 7  ;;  %v912_v57 = vadd.f32 %v9879_v61, %v873_v45  ;;  %v1553_v8 = vld [vmem:[#allocation2 + $0x60] sm:$0xf] }
 0x244   : > { %v1260_v50 = vrot.slane %v1258_v37, 7  ;;  %v910_v60 = vadd.f32 %v9879_v61, %v871_v46  ;;  %v915_v13 = vadd.f32 %v9879_v61, %v876_v47  ;;  %v913_v14 = vadd.f32 %v9879_v61, %v874_v54 }
 0x245   : > { %v7652_v51 = vpack.c.bf16 %v943_v39, %v943_v39  ;;  %v7650_v52 = vpack.c.bf16 %v941_v40, %v941_v40  ;;  %v1280_v55 = vor.u32 %v1278_v35, %v1277_v43  ;;  %v1282_v56 = vrot.slane %v1277_v43, 4  ;;  %v9999_v35 = vld [vmem:[#allocation2 + $0xc] sm:$0xf]  ;;  %v1557_v40 = vld [vmem:[#allocation2 + $0x68] sm:$0x1] }
 0x246   : > { %v1263_v53 = vor.u32 %v1261_v38, %v1260_v50  ;;  %v1265_v62 = vrot.slane %v1260_v50, 4  ;;  %v9980_v4 = vpop.f32.mrb[20].mxu0  ;;  %v944_v9 = vmax.f32 %v912_v57, 0.0  ;;  %v942_v12 = vmax.f32 %v910_v60, 0.0  ;;  %v1550_v43 = vld [vmem:[#allocation2 + $0x5c] sm:$0x1] }
 0x247   : > { %v1301_v58 = vshrl.u32 %v7652_v51, 16  ;;  %v1304_v63 = vshll.u32 %v7652_v51, 16  ;;  %v1281_v0 = vsel %vm9901_vm12, %v1273_v18, %v1280_v55  ;;  %v1544_v1 = vsel %vm9781_vm2, %v1282_v56, %v1543_v28  ;;  %v9987_v10 = vpop.f32.mrb[21].mxu0  ;;  %v1546_v18 = vld [vmem:[#allocation2 + $0x54] sm:$0xf] }
 0x248   : > { %v1284_v2 = vshrl.u32 %v7650_v52, 16  ;;  %v1287_v3 = vshll.u32 %v7650_v52, 16  ;;  %1542 = vst.msk [vmem:[#allocation2 + $0x4c] sm:$0xf] %vm961_vm5, %v1281_v0  ;;  %1545 = vst [vmem:[#allocation2 + $0x50] sm:$0x1] %v1544_v1  ;;  %v1264_v5 = vsel %vm9901_vm12, %v1256_v21, %v1263_v53  ;;  %v1537_v6 = vsel %vm9781_vm2, %v1265_v62, %v1536_v44 }
 0x249   : > { %v1303_v7 = vrot.slane %v1301_v58, 7  ;;  %1535 = vst.msk [vmem:[#allocation2 + $0x40] sm:$0xf] %vm961_vm5, %v1264_v5  ;;  %1538 = vst [vmem:[#allocation2 + $0x44] sm:$0x1] %v1537_v6  ;;  %v9992_v15 = vpop.f32.mrb[22].mxu0  ;;  %v7653_v19 = vpack.c.bf16 %v944_v9, %v944_v9  ;;  %v877_v21 = vmul.f32 %v8037_v36, %v9877_v59  ;;  %v7651_v27 = vpack.c.bf16 %v942_v12, %v942_v12 }
 0x24a   : > { %v1286_v11 = vrot.slane %v1284_v2, 7  ;;  %v9995_v23 = vpop.f32.mrb[23].mxu0  ;;  %v947_v30 = vmax.f32 %v915_v13, 0.0  ;;  %v945_v33 = vmax.f32 %v913_v14, 0.0  ;;  %v875_v46 = vmul.f32 %v9877_v59, %v9965_v41  ;;  %v1567_v56 = vld [vmem:[#allocation2 + $0x78] sm:$0xf] }
 0x24b   : > { %v1306_v16 = vor.u32 %v1304_v63, %v1303_v7  ;;  %v1307_v17 = vrot.slane %v1303_v7, 4  ;;  %v1309_v32 = vshrl.u32 %v7653_v19, 16  ;;  %v1312_v22 = vshll.u32 %v7653_v19, 16  ;;  %v8848_v41 = vld [vmem:[#allocation11 + $0x48] sm:$0xff]   ;;  %v1560_v7 = vld [vmem:[#allocation2 + $0x6c] sm:$0xf] }
 0x24c   : > { %v1289_v25 = vor.u32 %v1287_v3, %v1286_v11  ;;  %v1290_v26 = vrot.slane %v1286_v11, 4  ;;  %v1292_v37 = vshrl.u32 %v7651_v27, 16  ;;  %v1295_v36 = vshll.u32 %v7651_v27, 16  ;;  %v1619_v9 = vld [vmem:[#allocation2 + $0x10] sm:$0xf] }
 0x24d   : > { %v1554_v31 = vsel %vm9894_vm11, %v1306_v16, %v1553_v8  ;;  %v7656_v38 = vpack.c.bf16 %v947_v30, %v947_v30  ;;  %v1311_v39 = vrot.slane %v1309_v32, 7  ;;  %v7654_v44 = vpack.c.bf16 %v945_v33, %v945_v33 }
 0x24e   : > { %1555 = vst [vmem:[#allocation2 + $0x60] sm:$0xf] %v1554_v31  ;;  %v1547_v28 = vsel %vm9894_vm11, %v1289_v25, %v1546_v18  ;;  %v916_v45 = vadd.f32 %v9879_v61, %v877_v21  ;;  %v1294_v47 = vrot.slane %v1292_v37, 7  ;;  %v1696_v52 = vshrl.u32 %v9999_v35, 16  ;;  %v10009_v2 = vpop.f32.mrb[24].mxu0 }
 0x24f   : > { %1548 = vst [vmem:[#allocation2 + $0x54] sm:$0xf] %v1547_v28  ;;  %v1335_v50 = vshrl.u32 %v7656_v38, 16  ;;  %v1338_v51 = vshll.u32 %v7656_v38, 16  ;;  %v1314_v54 = vor.u32 %v1312_v22, %v1311_v39  ;;  %v1316_v55 = vrot.slane %v1311_v39, 4  ;;  %v8842_v1 = vld [vmem:[#allocation2 + $0x48] sm:$0xff]  }
 0x250   : > { %v1318_v57 = vshrl.u32 %v7654_v44, 16  ;;  %v1321_v60 = vshll.u32 %v7654_v44, 16  ;;  %v8840_v53 = vld [vmem:[#allocation2 + $0x3c] sm:$0xff]   ;;  %v1297_v62 = vor.u32 %v1295_v36, %v1294_v47  ;;  %v1299_v58 = vrot.slane %v1294_v47, 4  ;;  %v10019_v11 = vpop.f32.mrb[25].mxu0  ;;  %v8854_v28 = vld [vmem:[#allocation11 + $0x50] sm:$0xff]  }
 0x251   : > { %v10007_v63 = vrot.slane %v1335_v50, 7  ;;  %v948_v0 = vmax.f32 %v916_v45, 0.0  ;;  %v1315_v3 = vsel %vm9901_vm12, %v1307_v17, %v1314_v54  ;;  %v1558_v5 = vsel %vm9781_vm2, %v1316_v55, %v1557_v40  ;;  %8170 = vmatprep.mubr.msk.bf16.mxu1 %vm2120_vm9, %v8840_v53  ;;  %v1653_v17 = vld [vmem:[#allocation2 + $0x14] sm:$0x1]  ;;  %v1620_v18 = vld [vmem:[#allocation2 + $0x18] sm:$0xf] }
 0x252   : > { %v10015_v6 = vrot.slane %v1318_v57, 7  ;;  %v914_v8 = vadd.f32 %v9879_v61, %v875_v46  ;;  %1556 = vst.msk [vmem:[#allocation2 + $0x64] sm:$0xf] %vm961_vm5, %v1315_v3  ;;  %1559 = vst [vmem:[#allocation2 + $0x68] sm:$0x1] %v1558_v5  ;;  %v1298_v12 = vsel %vm9901_vm12, %v1290_v26, %v1297_v62  ;;  %v1551_v13 = vsel %vm9781_vm2, %v1299_v58, %v1550_v43  ;;  %v10029_v19 = vpop.f32.mrb[26].mxu0 }
 0x253   : > { %v1340_v14 = vor.u32 %v1338_v51, %v10007_v63  ;;  %v1341_v16 = vrot.slane %v10007_v63, 4  ;;  %8171 = vmatmul.mubr.msk.bf16.vlgmr.msra.gmra.mrb[0].mxu1 %vm2120_vm9, %v8842_v1  ;;  %1549 = vst.msk [vmem:[#allocation2 + $0x58] sm:$0xf] %vm961_vm5, %v1298_v12  ;;  %1552 = vst [vmem:[#allocation2 + $0x5c] sm:$0x1] %v1551_v13  ;;  %v7657_v26 = vpack.c.bf16 %v948_v0, %v948_v0  ;;  %v10035_v30 = vpop.f32.mrb[27].mxu0 }
 0x254   : > { %v1323_v21 = vor.u32 %v1321_v60, %v10015_v6  ;;  %v1324_v25 = vrot.slane %v10015_v6, 4  ;;  %v946_v27 = vmax.f32 %v914_v8, 0.0  ;;  %8195 = vmatpush3.bf16.msra.mxu1 %v9858_v42  ;;  %v1698_v32 = vrot.slane %v1696_v52, 4  ;;  %v1621_v40 = vld [vmem:[#allocation2 + $0x1c] sm:$0xf] }
 0x255   : > { %v1568_v31 = vsel %vm9894_vm11, %v1340_v14, %v1567_v56  ;;  %v1699_v22 = vshll.u32 %v9999_v35, 16  ;;  %v1705_v33 = vshll.u32 %v1619_v9, 16  ;;  %8196 = vmatprep.subr.bf16.mxu1 %v8848_v41  ;;  %v1343_v36 = vshrl.u32 %v7657_v26, 16  ;;  %v1571_v42 = vld [vmem:[#allocation2 + $0x80] sm:$0x1] }
 0x256   : > { %1569 = vst [vmem:[#allocation2 + $0x78] sm:$0xf] %v1568_v31  ;;  %v1561_v37 = vsel %vm9894_vm11, %v1323_v21, %v1560_v7  ;;  %v1346_v38 = vshll.u32 %v7657_v26, 16  ;;  %v7655_v39 = vpack.c.bf16 %v946_v27, %v946_v27  ;;  %v1709_v45 = vshrl.u32 %v1619_v9, 16  ;;  %v10042_v47 = vpop.f32.mrb[28].mxu0 }
 0x257   : > { %1562 = vst [vmem:[#allocation2 + $0x6c] sm:$0xf] %v1561_v37  ;;  %v1701_v43 = vrot.slane %v1699_v22, 5  ;;  %v1707_v44 = vrot.slane %v1705_v33, 5  ;;  %v1715_v46 = vshll.u32 %v1653_v17, 16  ;;  %v1345_v35 = vrot.slane %v1343_v36, 7 }
 0x258   : > { %v1326_v50 = vshrl.u32 %v7655_v39, 16  ;;  %v1329_v51 = vshll.u32 %v7655_v39, 16  ;;  %v1720_v52 = vshrl.u32 %v1620_v18, 16  ;;  %v10044_v54 = vpop.f32.mrb[29].mxu0  ;;  %8197 = vmatpush3.bf16.msra.mxu1 %v8848_v41  ;;  %v1564_v55 = vld [vmem:[#allocation2 + $0x74] sm:$0x1]  ;;  %v880_v36 = vmul.f32 %v9980_v4, %v9877_v59 }
 0x259   : > { %v1702_v56 = vor.u32 %v1701_v43, %v1698_v32  ;;  %v1711_v57 = vrot.slane %v1709_v45, 4  ;;  %v1717_v60 = vrot.slane %v1715_v46, 5  ;;  %v1654_v53 = vld [vmem:[#allocation2 + $0x20] sm:$0x1]  ;;  %v1723_v62 = vshll.u32 %v1620_v18, 16  ;;  %v10046_v58 = vpop.f32.mrb[30].mxu0  ;;  %8230 = vmatprep.subr.bf16.mxu1 %v8854_v28 }
 0x25a   : > { %v1348_v63 = vor.u32 %v1346_v38, %v1345_v35  ;;  %v1350_v0 = vrot.slane %v1345_v35, 4  ;;  %v1328_v1 = vrot.slane %v1326_v50, 7  ;;  %v1722_v3 = vrot.slane %v1720_v52, 4  ;;  %v8843_v9 = vld [vmem:[#allocation2 + $0x54] sm:$0xff]   ;;  %v8844_v17 = vld [vmem:[#allocation2 + $0x60] sm:$0xff]   ;;  %v10052_v18 = vpop.f32.mrb[31].mxu0 }
 0x25b   : > { %v1703_v5 = vrot.slane %v1702_v56, 4  ;;  %v1712_v6 = vor.u32 %v1711_v57, %v1707_v44  ;;  %v1725_v7 = vrot.slane %v1723_v62, 5  ;;  %v1729_v8 = vshll.u32 %v1621_v40, 16  ;;  %8174 = vmatprep.mubr.msk.bf16.mxu1 %vm2120_vm9, %v8843_v9  ;;  %v1622_v38 = vld [vmem:[#allocation2 + $0x24] sm:$0xf] }
 0x25c   : > { %v1349_v41 = vsel %vm9901_vm12, %v1341_v16, %v1348_v63  ;;  %v1572_v12 = vsel %vm9781_vm2, %v1350_v0, %v1571_v42  ;;  %v1331_v13 = vor.u32 %v1329_v51, %v1328_v1  ;;  %v1333_v14 = vrot.slane %v1328_v1, 4  ;;  %8175 = vmatmul.mubr.msk.bf16.gmra.mrb[4].mxu1 %vm2120_vm9, %v8844_v17  ;;  %v8856_v45 = vld [vmem:[#allocation11 + $0x8] sm:$0xff]   ;;  %v1655_v17 = vld [vmem:[#allocation2 + $0x2c] sm:$0x1]  ;;  %v3491_v24 = vld [vmem:[#allocation2 + $0x60] sm:$0xf] }
 0x25d   : > { %1570 = vst.msk [vmem:[#allocation2 + $0x7c] sm:$0xf] %vm961_vm5, %v1349_v41  ;;  %1573 = vst [vmem:[#allocation2 + $0x80] sm:$0x1] %v1572_v12  ;;  %v1708_v21 = vsel %vm9835_vm8, %v1703_v5, %v1707_v44  ;;  %v1713_v26 = vrot.slane %v1712_v6, 4  ;;  %v1726_v27 = vor.u32 %v1725_v7, %v1722_v3  ;;  %v1731_v31 = vrot.slane %v1729_v8, 5 }
 0x25e   : > { %v1332_v16 = vsel %vm9901_vm12, %v1324_v25, %v1331_v13  ;;  %v1565_v32 = vsel %vm9781_vm2, %v1333_v14, %v1564_v55  ;;  %v1733_v22 = vshrl.u32 %v1621_v40, 16  ;;  %v1739_v33 = vshll.u32 %v1654_v53, 16  ;;  %v1623_v44 = vld [vmem:[#allocation2 + $0x28] sm:$0xf] }
 0x25f   : > { %1563 = vst.msk [vmem:[#allocation2 + $0x70] sm:$0xf] %vm961_vm5, %v1332_v16  ;;  %1566 = vst [vmem:[#allocation2 + $0x74] sm:$0x1] %v1565_v32  ;;  %v1718_v28 = vsel %vm9835_vm8, %v1713_v26, %v1717_v60  ;;  %v1727_v37 = vrot.slane %v1726_v27, 4  ;;  %v878_v25 = vmul.f32 %v9877_v59, %v9987_v10  ;;  %v881_v43 = vmul.f32 %v9992_v15, %v9877_v59 }
 0x260   : > { %v7225_v39 = vcombine.low %v1708_v21, %v1718_v28  ;;  %v1735_v42 = vrot.slane %v1733_v22, 4  ;;  %v1741_v40 = vrot.slane %v1739_v33, 5  ;;  %v919_v35 = vadd.f32 %v9879_v61, %v880_v36  ;;  %v1581_v22 = vld [vmem:[#allocation2 + $0x90] sm:$0xf]  ;;  %v1574_v36 = vld [vmem:[#allocation2 + $0x84] sm:$0xf] }
 0x261   : > { %v1732_v46 = vsel %vm9835_vm8, %v1727_v37, %v1731_v31  ;;  %v917_v50 = vadd.f32 %v9879_v61, %v878_v25  ;;  %v879_v4 = vmul.f32 %v9877_v59, %v9995_v23  ;;  %v920_v51 = vadd.f32 %v9879_v61, %v881_v43 }
 0x262   : > { %8055 = vmatmul.mubr.msk.bf16.vlgmr.msra.gmra.mrb[32].mxu0 %vm2120_vm9, %v7225_v39  ;;  %v1736_v10 = vor.u32 %v1735_v42, %v1731_v31  ;;  %v1744_v52 = vshrl.u32 %v1622_v38, 16  ;;  %v1747_v55 = vshll.u32 %v1622_v38, 16  ;;  %v951_v15 = vmax.f32 %v919_v35, 0.0 }
 0x263   : > { %v949_v56 = vmax.f32 %v917_v50, 0.0  ;;  %v918_v57 = vadd.f32 %v9879_v61, %v879_v4  ;;  %v1753_v60 = vshll.u32 %v1623_v44, 16  ;;  %8087 = vmatpush3.bf16.msra.mxu0 %v9970_v49  ;;  %v952_v62 = vmax.f32 %v920_v51, 0.0  ;;  %v1624_v51 = vld [vmem:[#allocation2 + $0x30] sm:$0xf] }
 0x264   : > { %v1737_v53 = vrot.slane %v1736_v10, 4  ;;  %v1746_v63 = vrot.slane %v1744_v52, 4  ;;  %v1749_v0 = vrot.slane %v1747_v55, 5  ;;  %8088 = vmatprep.subr.bf16.mxu0 %v8856_v45  ;;  %v7660_v23 = vpack.c.bf16 %v951_v15, %v951_v15  ;;  %v8846_v21 = vld [vmem:[#allocation2 + $0x78] sm:$0xff]   ;;  %v1625_v52 = vld [vmem:[#allocation2 + $0x34] sm:$0xf] }
 0x265   : > { %v7658_v1 = vpack.c.bf16 %v949_v56, %v949_v56  ;;  %v950_v3 = vmax.f32 %v918_v57, 0.0  ;;  %v10082_v5 = vrot.slane %v1753_v60, 5  ;;  %v7661_v7 = vpack.c.bf16 %v952_v62, %v952_v62  ;;  %v1578_v56 = vld [vmem:[#allocation2 + $0x8c] sm:$0x1] }
 0x266   : > { %v1742_v6 = vsel %vm9835_vm8, %v1737_v53, %v1741_v40  ;;  %v1750_v8 = vor.u32 %v1749_v0, %v1746_v63  ;;  %v1757_v9 = vshrl.u32 %v1623_v44, 16  ;;  %v8845_v41 = vld [vmem:[#allocation2 + $0x6c] sm:$0xff]   ;;  %v1369_v13 = vshrl.u32 %v7660_v23, 16  ;;  %v1656_v53 = vld [vmem:[#allocation2 + $0x38] sm:$0x1] }
 0x267   : > { %v7226_v12 = vcombine.low %v1732_v46, %v1742_v6  ;;  %v1372_v49 = vshll.u32 %v7660_v23, 16  ;;  %v1352_v14 = vshrl.u32 %v7658_v1, 16  ;;  %8089 = vmatpush3.bf16.msra.mxu0 %v8856_v45  ;;  %v1355_v26 = vshll.u32 %v7658_v1, 16  ;;  %8178 = vmatprep.mubr.msk.bf16.mxu1 %vm2120_vm9, %v8845_v41  ;;  %v1585_v46 = vld [vmem:[#allocation2 + $0x98] sm:$0x1] }
 0x268   : > { %v1377_v27 = vshrl.u32 %v7661_v7, 16  ;;  %v1380_v31 = vshll.u32 %v7661_v7, 16  ;;  %v7659_v16 = vpack.c.bf16 %v950_v3, %v950_v3  ;;  %v1371_v32 = vrot.slane %v1369_v13, 7  ;;  %8179 = vmatmul.mubr.msk.bf16.gmra.mrb[8].mxu1 %vm2120_vm9, %v8846_v21 }
 0x269   : > { %8058 = vmatprep.mubr.msk.bf16.mxu0 %vm2120_vm9, %v7226_v12  ;;  %v1354_v33 = vrot.slane %v1352_v14, 7  ;;  %v1751_v28 = vrot.slane %v1750_v8, 4  ;;  %v1759_v37 = vrot.slane %v1757_v9, 4  ;;  %v1763_v42 = vshll.u32 %v1655_v17, 16 }
 0x26a   : > { %v1379_v25 = vrot.slane %v1377_v27, 7  ;;  %v1360_v38 = vshrl.u32 %v7659_v16, 16  ;;  %v1363_v39 = vshll.u32 %v7659_v16, 16  ;;  %v1374_v40 = vor.u32 %v1372_v49, %v1371_v32 }
 0x26b   : > { %v1375_v43 = vrot.slane %v1371_v32, 4  ;;  %v1357_v44 = vor.u32 %v1355_v26, %v1354_v33  ;;  %v1358_v45 = vrot.slane %v1354_v33, 4  ;;  %v1756_v10 = vsel %vm9835_vm8, %v1751_v28, %v10082_v5  ;;  %v10117_v28 = vld [vmem:[#allocation2 + $0x40] sm:$0xf] }
 0x26c   : > { %v1382_v35 = vor.u32 %v1380_v31, %v1379_v25  ;;  %v1384_v50 = vrot.slane %v1379_v25, 4  ;;  %v1362_v4 = vrot.slane %v1360_v38, 7  ;;  %v1582_v55 = vsel %vm9894_vm11, %v1374_v40, %v1581_v22 }
 0x26d   : > { %v1575_v15 = vsel %vm9894_vm11, %v1357_v44, %v1574_v36  ;;  %v1760_v57 = vor.u32 %v1759_v37, %v10082_v5  ;;  %v1765_v60 = vrot.slane %v1763_v42, 5  ;;  %1583 = vst [vmem:[#allocation2 + $0x90] sm:$0xf] %v1582_v55  ;;  %v1768_v3 = vshrl.u32 %v1624_v51, 16  ;;  %v1626_v5 = vld [vmem:[#allocation2 + $0x3c] sm:$0xf] }
 0x26e   : > { %1576 = vst [vmem:[#allocation2 + $0x84] sm:$0xf] %v1575_v15  ;;  %v1383_v62 = vsel %vm9901_vm12, %v1375_v43, %v1382_v35  ;;  %v1586_v63 = vsel %vm9781_vm2, %v1384_v50, %v1585_v46  ;;  %v1365_v0 = vor.u32 %v1363_v39, %v1362_v4  ;;  %v1367_v23 = vrot.slane %v1362_v4, 4 }
 0x26f   : > { %1584 = vst.msk [vmem:[#allocation2 + $0x94] sm:$0xf] %vm961_vm5, %v1383_v62  ;;  %1587 = vst [vmem:[#allocation2 + $0x98] sm:$0x1] %v1586_v63  ;;  %v1761_v1 = vrot.slane %v1760_v57, 4  ;;  %v1771_v6 = vshll.u32 %v1624_v51, 16  ;;  %v884_v31 = vmul.f32 %v10009_v2, %v9877_v59  ;;  %v882_v32 = vmul.f32 %v9877_v59, %v10019_v11 }
 0x270   : > { %v1777_v7 = vshll.u32 %v1625_v52, 16  ;;  %v1366_v8 = vsel %vm9901_vm12, %v1358_v45, %v1365_v0  ;;  %v1579_v9 = vsel %vm9781_vm2, %v1367_v23, %v1578_v56  ;;  %v1781_v41 = vshrl.u32 %v1625_v52, 16 }
 0x271   : > { %v1787_v12 = vshll.u32 %v1656_v53, 16  ;;  %1577 = vst.msk [vmem:[#allocation2 + $0x88] sm:$0xf] %vm961_vm5, %v1366_v8  ;;  %1580 = vst [vmem:[#allocation2 + $0x8c] sm:$0x1] %v1579_v9  ;;  %v1766_v13 = vsel %vm9835_vm8, %v1761_v1, %v1765_v60  ;;  %v1770_v49 = vrot.slane %v1768_v3, 4  ;;  %v885_v22 = vmul.f32 %v10029_v19, %v9877_v59 }
 0x272   : > { %v1773_v14 = vrot.slane %v1771_v6, 5  ;;  %v1779_v17 = vrot.slane %v1777_v7, 5  ;;  %v7227_v21 = vcombine.low %v1756_v10, %v1766_v13  ;;  %v1783_v26 = vrot.slane %v1781_v41, 4  ;;  %v1657_v53 = vld [vmem:[#allocation2 + $0x44] sm:$0x1] }
 0x273   : > { %v1789_v27 = vrot.slane %v1787_v12, 5  ;;  %v883_v33 = vmul.f32 %v9877_v59, %v10035_v30  ;;  %v923_v36 = vadd.f32 %v9879_v61, %v884_v31  ;;  %v1792_v25 = vshrl.u32 %v1626_v5, 16  ;;  %v1628_v6 = vld [vmem:[#allocation2 + $0x48] sm:$0xf]  ;;  %v1588_v13 = vld [vmem:[#allocation2 + $0x9c] sm:$0xf] }
 0x274   : > { %v1774_v16 = vor.u32 %v1773_v14, %v1770_v49  ;;  %8059 = vmatmul.mubr.msk.bf16.gmra.mrb[36].mxu0 %vm2120_vm9, %v7227_v21  ;;  %v1784_v37 = vor.u32 %v1783_v26, %v1779_v17  ;;  %v1795_v38 = vshll.u32 %v1626_v5, 16  ;;  %v921_v39 = vadd.f32 %v9879_v61, %v882_v32  ;;  %v1595_v5 = vld [vmem:[#allocation2 + $0xa8] sm:$0xf] }
 0x275   : > { %v924_v11 = vadd.f32 %v9879_v61, %v885_v22  ;;  %v922_v42 = vadd.f32 %v9879_v61, %v883_v33  ;;  %v955_v40 = vmax.f32 %v923_v36, 0.0  ;;  %v1794_v43 = vrot.slane %v1792_v25, 4  ;;  %v1592_v36 = vld [vmem:[#allocation2 + $0xa4] sm:$0x1] }
 0x276   : > { %v1775_v2 = vrot.slane %v1774_v16, 4  ;;  %v1785_v19 = vrot.slane %v1784_v37, 4  ;;  %v1797_v59 = vrot.slane %v1795_v38, 5  ;;  %v953_v44 = vmax.f32 %v921_v39, 0.0  ;;  %v8849_v56 = vld [vmem:[#allocation2 + $0x90] sm:$0xff]  }
 0x277   : > { %v956_v45 = vmax.f32 %v924_v11, 0.0  ;;  %v954_v46 = vmax.f32 %v922_v42, 0.0  ;;  %v7664_v50 = vpack.c.bf16 %v955_v40, %v955_v40  ;;  %v1801_v10 = vshll.u32 %v10117_v28, 16  ;;  %v10143_v11 = vld [vmem:[#allocation2 + $0x4c] sm:$0xf] }
 0x278   : > { %v1780_v30 = vsel %vm9835_vm8, %v1775_v2, %v1779_v17  ;;  %v1790_v35 = vsel %vm9835_vm8, %v1785_v19, %v1789_v27  ;;  %v1798_v4 = vor.u32 %v1797_v59, %v1794_v43  ;;  %v8847_v51 = vld [vmem:[#allocation2 + $0x84] sm:$0xff]   ;;  %v7662_v61 = vpack.c.bf16 %v953_v44, %v953_v44  ;;  %v1599_v27 = vld [vmem:[#allocation2 + $0xb0] sm:$0x1] }
 0x279   : > { %v7228_v52 = vcombine.low %v1780_v30, %v1790_v35  ;;  %v7665_v55 = vpack.c.bf16 %v956_v45, %v956_v45  ;;  %v7663_v15 = vpack.c.bf16 %v954_v46, %v954_v46  ;;  %v1403_v57 = vshrl.u32 %v7664_v50, 16  ;;  %8182 = vmatprep.mubr.msk.bf16.mxu1 %vm2120_vm9, %v8847_v51  ;;  %v8913_v51 = vld [vmem:[#allocation8] ss:$0 sm:$0xff] }
 0x27a   : > { %v1406_v60 = vshll.u32 %v7664_v50, 16  ;;  %v10129_v62 = vrot.slane %v1798_v4, 4  ;;  %v10131_v63 = vrot.slane %v1801_v10, 5  ;;  %v1386_v0 = vshrl.u32 %v7662_v61, 16  ;;  %8183 = vmatmul.mubr.msk.bf16.gmra.mrb[12].mxu1 %vm2120_vm9, %v8849_v56 }
 0x27b   : > { %8062 = vmatprep.mubr.msk.bf16.mxu0 %vm2120_vm9, %v7228_v52  ;;  %v1389_v23 = vshll.u32 %v7662_v61, 16  ;;  %v1411_v1 = vshrl.u32 %v7665_v55, 16  ;;  %v1414_v3 = vshll.u32 %v7665_v55, 16  ;;  %v1405_v7 = vrot.slane %v1403_v57, 7 }
 0x27c   : > { %v1394_v8 = vshrl.u32 %v7663_v15, 16  ;;  %v1397_v9 = vshll.u32 %v7663_v15, 16  ;;  %v1804_v41 = vsel %vm9835_vm8, %v10129_v62, %v10131_v63  ;;  %v1388_v12 = vrot.slane %v1386_v0, 7  ;;  %v10163_v15 = vld [vmem:[#allocation2 + $0x54] sm:$0xf] }
 0x27d   : > { %v1413_v49 = vrot.slane %v1411_v1, 7  ;;  %v1805_v14 = vshrl.u32 %v10117_v28, 16  ;;  %v1811_v17 = vshll.u32 %v1657_v53, 16  ;;  %v1408_v21 = vor.u32 %v1406_v60, %v1405_v7  ;;  %v1658_v28 = vld [vmem:[#allocation2 + $0x50] sm:$0x1] }
 0x27e   : > { %v1409_v26 = vrot.slane %v1405_v7, 4  ;;  %v1396_v31 = vrot.slane %v1394_v8, 7  ;;  %v1816_v16 = vshrl.u32 %v1628_v6, 16  ;;  %v1391_v32 = vor.u32 %v1389_v23, %v1388_v12 }
 0x27f   : > { %v1392_v22 = vrot.slane %v1388_v12, 4  ;;  %v1416_v33 = vor.u32 %v1414_v3, %v1413_v49  ;;  %v1418_v37 = vrot.slane %v1413_v49, 4  ;;  %v1596_v25 = vsel %vm9894_vm11, %v1408_v21, %v1595_v5  ;;  %v10167_v3 = vld [vmem:[#allocation11 + $0x20] sm:$0xff]  }
 0x280   : > { %v1399_v38 = vor.u32 %v1397_v9, %v1396_v31  ;;  %v1401_v2 = vrot.slane %v1396_v31, 4  ;;  %v1807_v39 = vrot.slane %v1805_v14, 4  ;;  %1597 = vst [vmem:[#allocation2 + $0xa8] sm:$0xf] %v1596_v25  ;;  %v1589_v42 = vsel %vm9894_vm11, %v1391_v32, %v1588_v13  ;;  %8122 = vmatprep.subr.bf16.mxu0 %v10167_v3  ;;  %v10178_v32 = vld [vmem:[#allocation2 + $0x58] sm:$0xf] }
 0x281   : > { %v1417_v19 = vsel %vm9901_vm12, %v1409_v26, %v1416_v33  ;;  %v1600_v40 = vsel %vm9781_vm2, %v1418_v37, %v1599_v27  ;;  %v1813_v43 = vrot.slane %v1811_v17, 5  ;;  %1590 = vst [vmem:[#allocation2 + $0x9c] sm:$0xf] %v1589_v42  ;;  %v1818_v45 = vrot.slane %v1816_v16, 4 }
 0x282   : > { %1598 = vst.msk [vmem:[#allocation2 + $0xac] sm:$0xf] %vm961_vm5, %v1417_v19  ;;  %1601 = vst [vmem:[#allocation2 + $0xb0] sm:$0x1] %v1600_v40  ;;  %v1400_v59 = vsel %vm9901_vm12, %v1392_v22, %v1399_v38  ;;  %v1593_v30 = vsel %vm9781_vm2, %v1401_v2, %v1592_v36  ;;  %v1808_v44 = vor.u32 %v1807_v39, %v10131_v63  ;;  %v1819_v46 = vshll.u32 %v1628_v6, 16 }
 0x283   : > { %1591 = vst.msk [vmem:[#allocation2 + $0xa0] sm:$0xf] %vm961_vm5, %v1400_v59  ;;  %1594 = vst [vmem:[#allocation2 + $0xa4] sm:$0x1] %v1593_v30  ;;  %v1825_v35 = vshll.u32 %v10143_v11, 16  ;;  %v1829_v50 = vshrl.u32 %v10143_v11, 16  ;;  %v888_v52 = vmul.f32 %v8913_v51, %v10042_v47  ;;  %v886_v61 = vmul.f32 %v8913_v51, %v10044_v54 }
 0x284   : > { %v1835_v4 = vshll.u32 %v1658_v28, 16  ;;  %v1809_v10 = vrot.slane %v1808_v44, 4  ;;  %v889_v55 = vmul.f32 %v8913_v51, %v10046_v58  ;;  %v1821_v56 = vrot.slane %v1819_v46, 5  ;;  %v8914_v63 = vld [vmem:[#allocation9] ss:$0 sm:$0xff] }
 0x285   : > { %v1827_v57 = vrot.slane %v1825_v35, 5  ;;  %v1831_v60 = vrot.slane %v1829_v50, 4  ;;  %v927_v0 = vadd.f32 %v8914_v63, %v888_v52  ;;  %v925_v23 = vadd.f32 %v8914_v63, %v886_v61  ;;  %v1609_v40 = vld [vmem:[#allocation2 + $0xc0] sm:$0xf]  ;;  %v1602_v44 = vld [vmem:[#allocation2 + $0xb4] sm:$0xf] }
 0x286   : > { %v1837_v53 = vrot.slane %v1835_v4, 5  ;;  %v1814_v62 = vsel %vm9835_vm8, %v1809_v10, %v1813_v43  ;;  %v928_v1 = vadd.f32 %v8914_v63, %v889_v55  ;;  %v1822_v6 = vor.u32 %v1821_v56, %v1818_v45  ;;  %v1613_v61 = vld [vmem:[#allocation2 + $0xc8] sm:$0x1]  ;;  %v10185_v55 = vld [vmem:[#allocation2 + $0x60] sm:$0xf] }
 0x287   : > { %v7229_v47 = vcombine.low %v1804_v41, %v1814_v62  ;;  %v1832_v54 = vor.u32 %v1831_v60, %v1827_v57  ;;  %v887_v58 = vmul.f32 %v8913_v51, %v10052_v18  ;;  %v959_v7 = vmax.f32 %v927_v0, 0.0 }
 0x288   : > { %v957_v5 = vmax.f32 %v925_v23, 0.0  ;;  %v960_v8 = vmax.f32 %v928_v1, 0.0  ;;  %v1840_v9 = vshrl.u32 %v10163_v15, 16  ;;  %v1823_v12 = vrot.slane %v1822_v6, 4  ;;  %v1606_v23 = vld [vmem:[#allocation2 + $0xbc] sm:$0x1] }
 0x289   : > { %8063 = vmatmul.mubr.msk.bf16.gmra.mrb[40].mxu0 %vm2120_vm9, %v7229_v47  ;;  %v1833_v13 = vrot.slane %v1832_v54, 4  ;;  %v926_v49 = vadd.f32 %v8914_v63, %v887_v58  ;;  %v1843_v14 = vshll.u32 %v10163_v15, 16  ;;  %v7668_v17 = vpack.c.bf16 %v959_v7, %v959_v7  ;;  %v8851_v33 = vld [vmem:[#allocation2 + $0xa8] sm:$0xff]   ;;  %v10191_v6 = vld [vmem:[#allocation2 + $0x64] sm:$0xf] }
 0x28a   : > { %v7666_v41 = vpack.c.bf16 %v957_v5, %v957_v5  ;;  %v7669_v21 = vpack.c.bf16 %v960_v8, %v960_v8  ;;  %v1842_v26 = vrot.slane %v1840_v9, 4  ;;  %v8850_v27 = vld [vmem:[#allocation2 + $0x9c] sm:$0xff]   ;;  %v1828_v18 = vsel %vm9835_vm8, %v1823_v12, %v1827_v57  ;;  %v1660_v12 = vld [vmem:[#allocation2 + $0x68] sm:$0x1] }
 0x28b   : > { %v1838_v31 = vsel %vm9835_vm8, %v1833_v13, %v1837_v53  ;;  %v958_v16 = vmax.f32 %v926_v49, 0.0  ;;  %v1845_v22 = vrot.slane %v1843_v14, 5  ;;  %v1437_v36 = vshrl.u32 %v7668_v17, 16  ;;  %8186 = vmatprep.mubr.msk.bf16.mxu1 %vm2120_vm9, %v8850_v27  ;;  %v1659_v53 = vld [vmem:[#allocation2 + $0x5c] sm:$0x1] }
 0x28c   : > { %v7230_v37 = vcombine.low %v1828_v18, %v1838_v31  ;;  %v1440_v25 = vshll.u32 %v7668_v17, 16  ;;  %v1420_v38 = vshrl.u32 %v7666_v41, 16  ;;  %v1423_v2 = vshll.u32 %v7666_v41, 16  ;;  %8187 = vmatmul.mubr.msk.bf16.gmra.mrb[16].mxu1 %vm2120_vm9, %v8851_v33  ;;  %v10201_v49 = vld [vmem:[#allocation2 + $0x6c] sm:$0xf] }
 0x28d   : > { %v1445_v39 = vshrl.u32 %v7669_v21, 16  ;;  %v1448_v28 = vshll.u32 %v7669_v21, 16  ;;  %v7667_v42 = vpack.c.bf16 %v958_v16, %v958_v16  ;;  %v1439_v19 = vrot.slane %v1437_v36, 7  ;;  %v10214_v36 = vld [vmem:[#allocation2 + $0x78] sm:$0xf] }
 0x28e   : > { %8066 = vmatprep.mubr.msk.bf16.mxu0 %vm2120_vm9, %v7230_v37  ;;  %v1422_v43 = vrot.slane %v1420_v38, 7  ;;  %v1846_v59 = vor.u32 %v1845_v22, %v1842_v26  ;;  %v1849_v30 = vshll.u32 %v10178_v32, 16  ;;  %v1853_v50 = vshrl.u32 %v10178_v32, 16  ;;  %v10209_v26 = vld [vmem:[#allocation2 + $0x70] sm:$0xf] }
 0x28f   : > { %v1447_v45 = vrot.slane %v1445_v39, 7  ;;  %v1428_v46 = vshrl.u32 %v7667_v42, 16  ;;  %v1431_v35 = vshll.u32 %v7667_v42, 16  ;;  %v1442_v4 = vor.u32 %v1440_v25, %v1439_v19 }
 0x290   : > { %v1443_v10 = vrot.slane %v1439_v19, 4  ;;  %v1425_v51 = vor.u32 %v1423_v2, %v1422_v43  ;;  %v1426_v52 = vrot.slane %v1422_v43, 4  ;;  %v1847_v62 = vrot.slane %v1846_v59, 4  ;;  %v1661_v2 = vld [vmem:[#allocation2 + $0x74] sm:$0x1] }
 0x291   : > { %v1450_v56 = vor.u32 %v1448_v28, %v1447_v45  ;;  %v1452_v57 = vrot.slane %v1447_v45, 4  ;;  %v1430_v60 = vrot.slane %v1428_v46, 7  ;;  %v1610_v63 = vsel %vm9894_vm11, %v1442_v4, %v1609_v40  ;;  %v10220_v59 = vld [vmem:[#allocation2 + $0x7c] sm:$0xf] }
 0x292   : > { %v1603_v0 = vsel %vm9894_vm11, %v1425_v51, %v1602_v44  ;;  %v1851_v1 = vrot.slane %v1849_v30, 5  ;;  %v1855_v47 = vrot.slane %v1853_v50, 4  ;;  %1611 = vst [vmem:[#allocation2 + $0xc0] sm:$0xf] %v1610_v63  ;;  %v1859_v9 = vshll.u32 %v1659_v53, 16 }
 0x293   : > { %1604 = vst [vmem:[#allocation2 + $0xb4] sm:$0xf] %v1603_v0  ;;  %v1451_v54 = vsel %vm9901_vm12, %v1443_v10, %v1450_v56  ;;  %v1614_v58 = vsel %vm9781_vm2, %v1452_v57, %v1613_v61  ;;  %v1433_v7 = vor.u32 %v1431_v35, %v1430_v60  ;;  %v1435_v5 = vrot.slane %v1430_v60, 4  ;;  %v1662_v35 = vld [vmem:[#allocation2 + $0x80] sm:$0x1] }
 0x294   : > { %1612 = vst.msk [vmem:[#allocation2 + $0xc4] sm:$0xf] %vm961_vm5, %v1451_v54  ;;  %1615 = vst [vmem:[#allocation2 + $0xc8] sm:$0x1] %v1614_v58  ;;  %v1852_v34 = vsel %vm9835_vm8, %v1847_v62, %v1851_v1  ;;  %v1856_v8 = vor.u32 %v1855_v47, %v1851_v1  ;;  %v1864_v13 = vshrl.u32 %v10185_v55, 16  ;;  %v1867_v41 = vshll.u32 %v10185_v55, 16 }
 0x295   : > { %v1434_v14 = vsel %vm9901_vm12, %v1426_v52, %v1433_v7  ;;  %v1607_v17 = vsel %vm9781_vm2, %v1435_v5, %v1606_v23  ;;  %v1873_v21 = vshll.u32 %v10191_v6, 16  ;;  %v1861_v18 = vrot.slane %v1859_v9, 5  ;;  %v10226_v52 = vld [vmem:[#allocation2 + $0x84] sm:$0xf]  ;;  %v10233_v7 = vld [vmem:[#allocation2 + $0x88] sm:$0xf] }
 0x296   : > { %1605 = vst.msk [vmem:[#allocation2 + $0xb8] sm:$0xf] %vm961_vm5, %v1434_v14  ;;  %1608 = vst [vmem:[#allocation2 + $0xbc] sm:$0x1] %v1607_v17  ;;  %v1857_v27 = vrot.slane %v1856_v8, 4  ;;  %v1866_v31 = vrot.slane %v1864_v13, 4 }
 0x297   : > { %v1877_v16 = vshrl.u32 %v10191_v6, 16  ;;  %v1869_v22 = vrot.slane %v1867_v41, 5  ;;  %v1875_v48 = vrot.slane %v1873_v21, 5  ;;  %v1883_v33 = vshll.u32 %v1660_v12, 16  ;;  %v1663_v17 = vld [vmem:[#allocation2 + $0x8c] sm:$0x1] }
 0x298   : > { %v1888_v37 = vshrl.u32 %v10201_v49, 16  ;;  %v1862_v25 = vsel %vm9835_vm8, %v1857_v27, %v1861_v18  ;;  %v1891_v39 = vshll.u32 %v10201_v49, 16  ;;  %v1897_v28 = vshll.u32 %v10209_v26, 16 }
 0x299   : > { %v1879_v38 = vrot.slane %v1877_v16, 4  ;;  %v7231_v42 = vcombine.low %v1852_v34, %v1862_v25  ;;  %v1870_v19 = vor.u32 %v1869_v22, %v1866_v31  ;;  %v1885_v40 = vrot.slane %v1883_v33, 5  ;;  %v10244_v22 = vld [vmem:[#allocation2 + $0x90] sm:$0xf] }
 0x29a   : > { %v1890_v43 = vrot.slane %v1888_v37, 4  ;;  %v1893_v44 = vrot.slane %v1891_v39, 5  ;;  %v1899_v45 = vrot.slane %v1897_v28, 5  ;;  %v1901_v46 = vshrl.u32 %v10209_v26, 16 }
 0x29b   : > { %v1880_v30 = vor.u32 %v1879_v38, %v1875_v48  ;;  %8067 = vmatmul.mubr.msk.bf16.gmra.mrb[44].mxu0 %vm2120_vm9, %v7231_v42  ;;  %v1871_v50 = vrot.slane %v1870_v19, 4  ;;  %v1907_v4 = vshll.u32 %v1661_v2, 16  ;;  %v1912_v10 = vshrl.u32 %v10214_v36, 16  ;;  %v8853_v5 = vld [vmem:[#allocation2 + $0xc0] sm:$0xff]   ;;  %v10249_v38 = vld [vmem:[#allocation2 + $0x94] sm:$0xf] }
 0x29c   : > { %v1915_v51 = vshll.u32 %v10214_v36, 16  ;;  %v1894_v56 = vor.u32 %v1893_v44, %v1890_v43  ;;  %v1903_v57 = vrot.slane %v1901_v46, 4  ;;  %v1921_v60 = vshll.u32 %v10220_v59, 16 }
 0x29d   : > { %v1881_v61 = vrot.slane %v1880_v30, 4  ;;  %v1876_v53 = vsel %vm9835_vm8, %v1871_v50, %v1875_v48  ;;  %v1909_v62 = vrot.slane %v1907_v4, 5  ;;  %v1914_v63 = vrot.slane %v1912_v10, 4  ;;  %v8852_v23 = vld [vmem:[#allocation2 + $0xb4] sm:$0xff]  }
 0x29e   : > { %v1917_v0 = vrot.slane %v1915_v51, 5  ;;  %v1895_v47 = vrot.slane %v1894_v56, 4  ;;  %v1904_v54 = vor.u32 %v1903_v57, %v1899_v45  ;;  %v1923_v58 = vrot.slane %v1921_v60, 5  ;;  %8190 = vmatprep.mubr.msk.bf16.mxu1 %vm2120_vm9, %v8852_v23  ;;  %v10258_v56 = vld [vmem:[#allocation2 + $0x9c] sm:$0xf] }
 0x29f   : > { %v1886_v1 = vsel %vm9835_vm8, %v1881_v61, %v1885_v40  ;;  %v1925_v9 = vshrl.u32 %v10220_v59, 16  ;;  %v1931_v12 = vshll.u32 %v1662_v35, 16  ;;  %v1936_v41 = vshrl.u32 %v10226_v52, 16  ;;  %8191 = vmatmul.mubr.msk.bf16.gmra.mrb[20].mxu1 %vm2120_vm9, %v8853_v5  ;;  %v1665_v5 = vld [vmem:[#allocation2 + $0xa4] sm:$0x1] }
 0x2a0   : > { %v7232_v34 = vcombine.low %v1876_v53, %v1886_v1  ;;  %v1918_v8 = vor.u32 %v1917_v0, %v1914_v63  ;;  %v1900_v13 = vsel %vm9835_vm8, %v1895_v47, %v1899_v45  ;;  %v1905_v14 = vrot.slane %v1904_v54, 4  ;;  %v1664_v45 = vld [vmem:[#allocation2 + $0x98] sm:$0x1]  ;;  %v10262_v63 = vld [vmem:[#allocation2 + $0xa0] sm:$0xf] }
 0x2a1   : > { %v1939_v21 = vshll.u32 %v10226_v52, 16  ;;  %v1927_v18 = vrot.slane %v1925_v9, 4  ;;  %v1933_v31 = vrot.slane %v1931_v12, 5  ;;  %v1945_v16 = vshll.u32 %v10233_v7, 16  ;;  %v10268_v9 = vld [vmem:[#allocation2 + $0xa8] sm:$0xf] }
 0x2a2   : > { %8070 = vmatprep.mubr.msk.bf16.mxu0 %vm2120_vm9, %v7232_v34  ;;  %v1919_v27 = vrot.slane %v1918_v8, 4  ;;  %v1910_v48 = vsel %vm9835_vm8, %v1905_v14, %v1909_v62  ;;  %v1938_v33 = vrot.slane %v1936_v41, 4  ;;  %v1949_v25 = vshrl.u32 %v10233_v7, 16  ;;  %v10275_v41 = vld [vmem:[#allocation2 + $0xac] sm:$0xf] }
 0x2a3   : > { %v1941_v37 = vrot.slane %v1939_v21, 5  ;;  %v7233_v2 = vcombine.low %v1900_v13, %v1910_v48  ;;  %v1928_v28 = vor.u32 %v1927_v18, %v1923_v58  ;;  %v1947_v42 = vrot.slane %v1945_v16, 5  ;;  %v3470_v16 = vld [vmem:[#allocation2 + $0xc] sm:$0xf] }
 0x2a4   : > { %v1924_v39 = vsel %vm9835_vm8, %v1919_v27, %v1923_v58  ;;  %v1951_v40 = vrot.slane %v1949_v25, 4  ;;  %v1955_v43 = vshll.u32 %v1663_v17, 16  ;;  %v1960_v30 = vshrl.u32 %v10244_v22, 16 }
 0x2a5   : > { %v1942_v19 = vor.u32 %v1941_v37, %v1938_v33  ;;  %8071 = vmatmul.mubr.msk.bf16.gmra.mrb[48].mxu0 %vm2120_vm9, %v7233_v2  ;;  %v1929_v44 = vrot.slane %v1928_v28, 4  ;;  %v1963_v46 = vshll.u32 %v10244_v22, 16  ;;  %v1969_v35 = vshll.u32 %v10249_v38, 16  ;;  %v1666_v28 = vld [vmem:[#allocation2 + $0xb0] sm:$0x1] }
 0x2a6   : > { %v1973_v50 = vshrl.u32 %v10249_v38, 16  ;;  %v1952_v10 = vor.u32 %v1951_v40, %v1947_v42  ;;  %v1957_v51 = vrot.slane %v1955_v43, 5  ;;  %v1962_v61 = vrot.slane %v1960_v30, 4 }
 0x2a7   : > { %v1943_v4 = vrot.slane %v1942_v19, 4  ;;  %v1934_v57 = vsel %vm9835_vm8, %v1929_v44, %v1933_v31  ;;  %v1965_v60 = vrot.slane %v1963_v46, 5  ;;  %v1971_v53 = vrot.slane %v1969_v35, 5 }
 0x2a8   : > { %v1975_v62 = vrot.slane %v1973_v50, 4  ;;  %v7234_v0 = vcombine.low %v1924_v39, %v1934_v57  ;;  %v1953_v1 = vrot.slane %v1952_v10, 4  ;;  %v1979_v47 = vshll.u32 %v1664_v45, 16  ;;  %v10289_v57 = vld [vmem:[#allocation2 + $0x14] sm:$0x1] }
 0x2a9   : > { %v1948_v23 = vsel %vm9835_vm8, %v1943_v4, %v1947_v42  ;;  %v1966_v54 = vor.u32 %v1965_v60, %v1962_v61  ;;  %v1984_v34 = vshrl.u32 %v10258_v56, 16  ;;  %v1987_v8 = vshll.u32 %v10258_v56, 16  ;;  %v10286_v4 = vld [vmem:[#allocation2 + $0x10] sm:$0xf] }
 0x2aa   : > { %v1976_v58 = vor.u32 %v1975_v62, %v1971_v53  ;;  %8074 = vmatprep.mubr.msk.bf16.mxu0 %vm2120_vm9, %v7234_v0  ;;  %v1958_v12 = vsel %vm9835_vm8, %v1953_v1, %v1957_v51  ;;  %v1981_v13 = vrot.slane %v1979_v47, 5  ;;  %v1993_v14 = vshll.u32 %v10262_v63, 16  ;;  %v10291_v1 = vld [vmem:[#allocation2 + $0xb4] sm:$0xf] }
 0x2ab   : > { %v1997_v17 = vshrl.u32 %v10262_v63, 16  ;;  %v7235_v21 = vcombine.low %v1948_v23, %v1958_v12  ;;  %v1967_v27 = vrot.slane %v1966_v54, 4  ;;  %v1986_v31 = vrot.slane %v1984_v34, 4 }
 0x2ac   : > { %v1977_v18 = vrot.slane %v1976_v58, 4  ;;  %v1989_v48 = vrot.slane %v1987_v8, 5  ;;  %v1995_v33 = vrot.slane %v1993_v14, 5  ;;  %v2003_v25 = vshll.u32 %v1665_v5, 16 }
 0x2ad   : > { %v1999_v37 = vrot.slane %v1997_v17, 4  ;;  %8075 = vmatmul.mubr.msk.bf16.gmra.mrb[52].mxu0 %vm2120_vm9, %v7235_v21  ;;  %v1972_v2 = vsel %vm9835_vm8, %v1967_v27, %v1971_v53  ;;  %v2008_v42 = vshrl.u32 %v10268_v9, 16  ;;  %v2011_v19 = vshll.u32 %v10268_v9, 16  ;;  %v10300_v27 = vld [vmem:[#allocation2 + $0xb8] sm:$0xf] }
 0x2ae   : > { %v1982_v39 = vsel %vm9835_vm8, %v1977_v18, %v1981_v13  ;;  %v1990_v43 = vor.u32 %v1989_v48, %v1986_v31  ;;  %v2005_v44 = vrot.slane %v2003_v25, 5  ;;  %v2017_v35 = vshll.u32 %v10275_v41, 16 }
 0x2af   : > { %v7236_v40 = vcombine.low %v1972_v2, %v1982_v39  ;;  %v2000_v30 = vor.u32 %v1999_v37, %v1995_v33  ;;  %v2010_v45 = vrot.slane %v2008_v42, 4  ;;  %v2013_v46 = vrot.slane %v2011_v19, 5  ;;  %v3473_v42 = vld [vmem:[#allocation2 + $0x18] sm:$0xf] }
 0x2b0   : > { %v2021_v50 = vshrl.u32 %v10275_v41, 16  ;;  %v1991_v10 = vrot.slane %v1990_v43, 4  ;;  %v2027_v61 = vshll.u32 %v1666_v28, 16  ;;  %v3519_v60 = vshrl.u32 %v3470_v16, 16 }
 0x2b1   : > { %8078 = vmatprep.mubr.msk.bf16.mxu0 %vm2120_vm9, %v7236_v40  ;;  %v2001_v51 = vrot.slane %v2000_v30, 4  ;;  %v2014_v53 = vor.u32 %v2013_v46, %v2010_v45  ;;  %v2019_v62 = vrot.slane %v2017_v35, 5  ;;  %v3522_v23 = vshll.u32 %v3470_v16, 16 }
 0x2b2   : > { %v2023_v0 = vrot.slane %v2021_v50, 4  ;;  %v1996_v47 = vsel %vm9835_vm8, %v1991_v10, %v1995_v33  ;;  %v2029_v58 = vrot.slane %v2027_v61, 5  ;;  %v3521_v5 = vrot.slane %v3519_v60, 4  ;;  %v1667_v33 = vld [vmem:[#allocation2 + $0xbc] sm:$0x1] }
 0x2b3   : > { %v2006_v54 = vsel %vm9835_vm8, %v2001_v51, %v2005_v44  ;;  %v2015_v8 = vrot.slane %v2014_v53, 4  ;;  %v3524_v13 = vrot.slane %v3522_v23, 5  ;;  %v3528_v14 = vshll.u32 %v10286_v4, 16  ;;  %v10311_v50 = vld [vmem:[#allocation2 + $0x1c] sm:$0xf] }
 0x2b4   : > { %v7237_v34 = vcombine.low %v1996_v47, %v2006_v54  ;;  %v2024_v12 = vor.u32 %v2023_v0, %v2019_v62  ;;  %v3532_v17 = vshrl.u32 %v10286_v4, 16  ;;  %v3538_v21 = vshll.u32 %v10289_v57, 16  ;;  %v10315_v60 = vld [vmem:[#allocation2 + $0x20] sm:$0x1] }
 0x2b5   : > { %v2032_v18 = vshrl.u32 %v10291_v1, 16  ;;  %v2020_v31 = vsel %vm9835_vm8, %v2015_v8, %v2019_v62  ;;  %v3525_v48 = vor.u32 %v3524_v13, %v3521_v5  ;;  %v2035_v37 = vshll.u32 %v10291_v1, 16  ;;  %v3476_v8 = vld [vmem:[#allocation2 + $0x24] sm:$0xf] }
 0x2b6   : > { %8079 = vmatmul.mubr.msk.bf16.gmra.mrb[56].mxu0 %vm2120_vm9, %v7237_v34  ;;  %v2025_v16 = vrot.slane %v2024_v12, 4  ;;  %v3530_v25 = vrot.slane %v3528_v14, 5  ;;  %v3534_v2 = vrot.slane %v3532_v17, 4  ;;  %v3540_v39 = vrot.slane %v3538_v21, 5  ;;  %v10323_v21 = vld [vmem:[#allocation2 + $0x28] sm:$0xf] }
 0x2b7   : > { %v2034_v28 = vrot.slane %v2032_v18, 4  ;;  %v3526_v40 = vrot.slane %v3525_v48, 4  ;;  %v2037_v43 = vrot.slane %v2035_v37, 5  ;;  %v2041_v30 = vshll.u32 %v10300_v27, 16 }
 0x2b8   : > { %v2030_v19 = vsel %vm9835_vm8, %v2025_v16, %v2029_v58  ;;  %v3535_v45 = vor.u32 %v3534_v2, %v3530_v25  ;;  %v2045_v46 = vshrl.u32 %v10300_v27, 16  ;;  %v2051_v35 = vshll.u32 %v1667_v33, 16  ;;  %v10327_v33 = vld [vmem:[#allocation2 + $0x2c] sm:$0x1] }
 0x2b9   : > { %v7238_v44 = vcombine.low %v2020_v31, %v2030_v19  ;;  %v3531_v10 = vsel %vm9835_vm8, %v3526_v40, %v3530_v25  ;;  %v2038_v51 = vor.u32 %v2037_v43, %v2034_v28  ;;  %v2043_v61 = vrot.slane %v2041_v30, 5 }
 0x2ba   : > { %v3543_v53 = vshrl.u32 %v3473_v42, 16  ;;  %v3536_v62 = vrot.slane %v3535_v45, 4  ;;  %v2047_v0 = vrot.slane %v2045_v46, 4  ;;  %v2053_v23 = vrot.slane %v2051_v35, 5  ;;  %v3479_v46 = vld [vmem:[#allocation2 + $0x30] sm:$0xf] }
 0x2bb   : > { %8082 = vmatprep.mubr.msk.bf16.mxu0 %vm2120_vm9, %v7238_v44  ;;  %v3546_v47 = vshll.u32 %v3473_v42, 16  ;;  %v2039_v54 = vrot.slane %v2038_v51, 4  ;;  %v3552_v5 = vshll.u32 %v10311_v50, 16  ;;  %v3556_v34 = vshrl.u32 %v10311_v50, 16 }
 0x2bc   : > { %v3545_v58 = vrot.slane %v3543_v53, 4  ;;  %v3541_v12 = vsel %vm9835_vm8, %v3536_v62, %v3540_v39  ;;  %v2048_v13 = vor.u32 %v2047_v0, %v2043_v61  ;;  %v3562_v17 = vshll.u32 %v10315_v60, 16  ;;  %v10335_v53 = vld [vmem:[#allocation2 + $0x34] sm:$0xf] }
 0x2bd   : > { %v3548_v14 = vrot.slane %v3546_v47, 5  ;;  %v7376_v18 = vcombine.low %v3531_v10, %v3541_v12  ;;  %v2044_v31 = vsel %vm9835_vm8, %v2039_v54, %v2043_v61  ;;  %v3554_v16 = vrot.slane %v3552_v5, 5  ;;  %v8915_v54 = vld [vmem:[#allocation2] sm:$0xf]  ;;  %v10342_v5 = vld [vmem:[#allocation2 + $0x38] sm:$0x1] }
 0x2be   : > { %v3558_v48 = vrot.slane %v3556_v34, 4  ;;  %v2049_v37 = vrot.slane %v2048_v13, 4  ;;  %v3564_v2 = vrot.slane %v3562_v17, 5  ;;  %v3567_v28 = vshrl.u32 %v3476_v8, 16  ;;  %v8917_v12 = vld [vmem:[#allocation2 + $0xc] sm:$0xf] }
 0x2bf   : > { %v3549_v25 = vor.u32 %v3548_v14, %v3545_v58  ;;  %8198 = vmatprep.mubr.msk.bf16.mxu1 %vm2120_vm9, %v7376_v18  ;;  %v3570_v42 = vshll.u32 %v3476_v8, 16  ;;  %v3576_v19 = vshll.u32 %v10323_v21, 16  ;;  %v3580_v40 = vshrl.u32 %v10323_v21, 16  ;;  %v10339_v58 = vld [vmem:[#allocation2 + $0x4] sm:$0xf] }
 0x2c0   : > { %v3559_v39 = vor.u32 %v3558_v48, %v3554_v16  ;;  %v2054_v43 = vsel %vm9835_vm8, %v2049_v37, %v2053_v23  ;;  %v3569_v44 = vrot.slane %v3567_v28, 4  ;;  %v3586_v45 = vshll.u32 %v10327_v33, 16  ;;  %v10347_v13 = vld [vmem:[#allocation2 + $0x10] sm:$0xf]  ;;  %v3482_v37 = vld [vmem:[#allocation2 + $0x3c] sm:$0xf] }
 0x2c1   : > { %v3550_v30 = vrot.slane %v3549_v25, 4  ;;  %v7239_v35 = vcombine.low %v2044_v31, %v2054_v43  ;;  %v3572_v51 = vrot.slane %v3570_v42, 5  ;;  %v3578_v61 = vrot.slane %v3576_v19, 5  ;;  %v8857_v25 = vld [vmem:[#allocation11 + $0x58] sm:$0xff]   ;;  %v10354_v19 = vld [vmem:[#allocation2 + $0x40] sm:$0xf] }
 0x2c2   : > { %v3560_v10 = vrot.slane %v3559_v39, 4  ;;  %v3582_v0 = vrot.slane %v3580_v40, 4  ;;  %v3588_v47 = vrot.slane %v3586_v45, 5  ;;  %v7258_v23 = vcombine.low %v8915_v54, %v10339_v58  ;;  %v10357_v45 = vld [vmem:[#allocation2 + $0x1c] sm:$0xf] }
 0x2c3   : > { %v3555_v62 = vsel %vm9835_vm8, %v3550_v30, %v3554_v16  ;;  %8083 = vmatmul.mubr.msk.bf16.gmra.mrb[60].mxu0 %vm2120_vm9, %v7239_v35  ;;  %v3573_v8 = vor.u32 %v3572_v51, %v3569_v44  ;;  %v7259_v14 = vcombine.low %v8917_v12, %v10347_v13  ;;  %v3591_v17 = vshrl.u32 %v3479_v46, 16  ;;  %v8919_v44 = vld [vmem:[#allocation2 + $0x18] sm:$0xf]  ;;  %v8921_v35 = vld [vmem:[#allocation11 + $0x50] sm:$0xff]  }
 0x2c4   : > { %v3565_v34 = vsel %vm9835_vm8, %v3560_v10, %v3564_v2  ;;  %v3583_v31 = vor.u32 %v3582_v0, %v3578_v61  ;;  %8090 = vmatprep.mubr.msk.bf16.mxu0 %vm2120_vm9, %v7258_v23  ;;  %v3594_v16 = vshll.u32 %v3479_v46, 16  ;;  %v3600_v48 = vshll.u32 %v10335_v53, 16  ;;  %v10362_v0 = vld [vmem:[#allocation2 + $0x44] sm:$0x1] }
 0x2c5   : > { %v7377_v18 = vcombine.low %v3555_v62, %v3565_v34  ;;  %v3574_v28 = vrot.slane %v3573_v8, 4  ;;  %v3593_v39 = vrot.slane %v3591_v17, 4  ;;  %v3604_v2 = vshrl.u32 %v10335_v53, 16  ;;  %v3485_v17 = vld [vmem:[#allocation2 + $0x48] sm:$0xf] }
 0x2c6   : > { %v3610_v42 = vshll.u32 %v10342_v5, 16  ;;  %v3584_v40 = vrot.slane %v3583_v31, 4  ;;  %v3596_v43 = vrot.slane %v3594_v16, 5  ;;  %v3602_v30 = vrot.slane %v3600_v48, 5 }
 0x2c7   : > { %8199 = vmatmul.mubr.msk.bf16.vlgmr.msra.gmra.mrb[24].mxu1 %vm2120_vm9, %v7377_v18  ;;  %v7260_v46 = vcombine.low %v8919_v44, %v10357_v45  ;;  %v3579_v10 = vsel %vm9835_vm8, %v3574_v28, %v3578_v61  ;;  %v3606_v51 = vrot.slane %v3604_v2, 4  ;;  %v3615_v54 = vshrl.u32 %v3482_v37, 16  ;;  %v10368_v61 = vld [vmem:[#allocation2 + $0x4c] sm:$0xf]  ;;  %v10370_v28 = vld [vmem:[#allocation11 + $0x60] sm:$0xff]  }
 0x2c8   : > { %8231 = vmatpush3.bf16.msra.mxu1 %v8921_v35  ;;  %v3612_v62 = vrot.slane %v3610_v42, 5  ;;  %v3589_v23 = vsel %vm9835_vm8, %v3584_v40, %v3588_v47  ;;  %v3597_v34 = vor.u32 %v3596_v43, %v3593_v39  ;;  %v3618_v8 = vshll.u32 %v3482_v37, 16  ;;  %11770 = vst [vmem:[#allocation31_spill] sm:$0xff] %v10368_v61  ;;  %v8869_v39 = vld [vmem:[#allocation11 + $0x28] sm:$0xff]  }
 0x2c9   : > { %v3624_v12 = vshll.u32 %v10354_v19, 16  ;;  %8232 = vmatprep.subr.bf16.mxu1 %v8857_v25  ;;  %v7378_v18 = vcombine.low %v3579_v10, %v3589_v23  ;;  %v3607_v31 = vor.u32 %v3606_v51, %v3602_v30  ;;  %v3617_v16 = vrot.slane %v3615_v54, 4  ;;  %v8922_v43 = vld [vmem:[#allocation2 + $0x24] sm:$0xf]  ;;  %v10375_v35 = vld [vmem:[#allocation2 + $0x28] sm:$0xf] }
 0x2ca   : > { %v3628_v48 = vshrl.u32 %v10354_v19, 16  ;;  %v3598_v2 = vrot.slane %v3597_v34, 4  ;;  %v3620_v42 = vrot.slane %v3618_v8, 5  ;;  %v3634_v47 = vshll.u32 %v10362_v0, 16  ;;  %v10381_v8 = vld [vmem:[#allocation2 + $0x50] sm:$0x1] }
 0x2cb   : > { %v3626_v44 = vrot.slane %v3624_v12, 5  ;;  %8202 = vmatprep.mubr.msk.bf16.mxu1 %vm2120_vm9, %v7378_v18  ;;  %8091 = vmatmul.mubr.msk.bf16.vlgmr.msra.gmra.mrb[32].mxu0 %vm2120_vm9, %v7259_v14  ;;  %v3608_v37 = vrot.slane %v3607_v31, 4  ;;  %v7261_v10 = vcombine.low %v8922_v43, %v10375_v35  ;;  %v3639_v51 = vshrl.u32 %v3485_v17, 16  ;;  %11771 = vst [vmem:[#allocation32_spill] sm:$0xff] %v10381_v8  ;;  %v3488_v43 = vld [vmem:[#allocation2 + $0x54] sm:$0xf] }
 0x2cc   : > { %v3630_v40 = vrot.slane %v3628_v48, 4  ;;  %v3603_v54 = vsel %vm9835_vm8, %v3598_v2, %v3602_v30  ;;  %8094 = vmatprep.mubr.msk.bf16.mxu0 %vm2120_vm9, %v7260_v46  ;;  %v3621_v23 = vor.u32 %v3620_v42, %v3617_v16  ;;  %v3636_v34 = vrot.slane %v3634_v47, 5  ;;  %8233 = vmatpush3.bf16.msra.mxu1 %v8857_v25  ;;  %v10389_v42 = vld [vmem:[#allocation2 + $0x58] sm:$0xf]  ;;  %v8924_v47 = vld [vmem:[#allocation2 + $0x30] sm:$0xf] }
 0x2cd   : > { %v3642_v12 = vshll.u32 %v3485_v17, 16  ;;  %v3613_v14 = vsel %vm9835_vm8, %v3608_v37, %v3612_v62  ;;  %v3641_v31 = vrot.slane %v3639_v51, 4  ;;  %v3648_v48 = vshll.u32 %v10368_v61, 16  ;;  %8266 = vmatprep.subr.bf16.mxu1 %v10370_v28  ;;  %8123 = vmatpush3.bf16.msra.mxu0 %v10167_v3  ;;  %v10392_v37 = vld [vmem:[#allocation2 + $0x34] sm:$0xf] }
 0x2ce   : > { %v3631_v18 = vor.u32 %v3630_v40, %v3626_v44  ;;  %v7379_v30 = vcombine.low %v3603_v54, %v3613_v14  ;;  %v3622_v46 = vrot.slane %v3621_v23, 4  ;;  %v3652_v2 = vshrl.u32 %v10368_v61, 16  ;;  %8124 = vmatprep.subr.bf16.mxu0 %v8869_v39  ;;  %11772 = vst [vmem:[#allocation33_spill] sm:$0xff] %v10392_v37  ;;  %v10398_v23 = vld [vmem:[#allocation2 + $0x5c] sm:$0x1]  ;;  %v10403_v61 = vld [vmem:[#allocation11 + $0x30] sm:$0xff]  }
 0x2cf   : > { %v3644_v16 = vrot.slane %v3642_v12, 5  ;;  %v3650_v17 = vrot.slane %v3648_v48, 5  ;;  %v3658_v62 = vshll.u32 %v10381_v8, 16  ;;  %v7262_v40 = vcombine.low %v8924_v47, %v10392_v37  ;;  %11773 = vst [vmem:[#allocation34_spill] sm:$0xff] %v10398_v23 }
 0x2d0   : > { %v3632_v25 = vrot.slane %v3631_v18, 4  ;;  %8203 = vmatmul.mubr.msk.bf16.gmra.mrb[28].mxu1 %vm2120_vm9, %v7379_v30  ;;  %v3627_v3 = vsel %vm9835_vm8, %v3622_v46, %v3626_v44  ;;  %v3654_v54 = vrot.slane %v3652_v2, 4  ;;  %v3663_v12 = vshrl.u32 %v3488_v43, 16  ;;  %v10409_v46 = vld [vmem:[#allocation2 + $0x64] sm:$0xf] }
 0x2d1   : > { %v3645_v51 = vor.u32 %v3644_v16, %v3641_v31  ;;  %v3660_v18 = vrot.slane %v3658_v62, 5  ;;  %v3666_v48 = vshll.u32 %v3488_v43, 16  ;;  %v3672_v29 = vshll.u32 %v10389_v42, 16  ;;  %8125 = vmatpush3.bf16.msra.mxu0 %v8869_v39  ;;  %v8927_v2 = vld [vmem:[#allocation2 + $0x3c] sm:$0xf] }
 0x2d2   : > { %v3637_v14 = vsel %vm9835_vm8, %v3632_v25, %v3636_v34  ;;  %v3655_v30 = vor.u32 %v3654_v54, %v3650_v17  ;;  %v3665_v37 = vrot.slane %v3663_v12, 4  ;;  %8158 = vmatprep.subr.bf16.mxu0 %v10403_v61  ;;  %v3676_v34 = vshrl.u32 %v10389_v42, 16  ;;  %v10415_v25 = vld [vmem:[#allocation2 + $0x40] sm:$0xf]  ;;  %v10418_v54 = vld [vmem:[#allocation2 + $0x68] sm:$0x1] }
 0x2d3   : > { %v7380_v47 = vcombine.low %v3627_v3, %v3637_v14  ;;  %v3646_v8 = vrot.slane %v3645_v51, 4  ;;  %8095 = vmatmul.mubr.msk.bf16.gmra.mrb[36].mxu0 %vm2120_vm9, %v7261_v10  ;;  %v3668_v44 = vrot.slane %v3666_v48, 5  ;;  %v3674_v31 = vrot.slane %v3672_v29, 5  ;;  %11774 = vst [vmem:[#allocation35_spill] sm:$0xff] %v10415_v25 }
 0x2d4   : > { %v3682_v43 = vshll.u32 %v10398_v23, 16  ;;  %v3656_v16 = vrot.slane %v3655_v30, 4  ;;  %8098 = vmatprep.mubr.msk.bf16.mxu0 %vm2120_vm9, %v7262_v40  ;;  %v7263_v10 = vcombine.low %v8927_v2, %v10415_v25  ;;  %v3687_v29 = vshrl.u32 %v3491_v24, 16  ;;  %v3494_v40 = vld [vmem:[#allocation2 + $0x6c] sm:$0xf] }
 0x2d5   : > { %8206 = vmatprep.mubr.msk.bf16.mxu1 %vm2120_vm9, %v7380_v47  ;;  %v3651_v39 = vsel %vm9835_vm8, %v3646_v8, %v3650_v17  ;;  %v3669_v62 = vor.u32 %v3668_v44, %v3665_v37  ;;  %v3678_v3 = vrot.slane %v3676_v34, 4  ;;  %v3690_v12 = vshll.u32 %v3491_v24, 16  ;;  %v10424_v25 = vld [vmem:[#allocation2 + $0x70] sm:$0xf]  ;;  %v8929_v24 = vld [vmem:[#allocation2 + $0x48] sm:$0xf] }
 0x2d6   : > { %v3684_v51 = vrot.slane %v3682_v43, 5  ;;  %v3661_v14 = vsel %vm9835_vm8, %v3656_v16, %v3660_v18  ;;  %v3689_v48 = vrot.slane %v3687_v29, 4  ;;  %v3696_v8 = vshll.u32 %v10409_v46, 16 }
 0x2d7   : > { %v3700_v17 = vshrl.u32 %v10409_v46, 16  ;;  %v7381_v47 = vcombine.low %v3651_v39, %v3661_v14  ;;  %v3670_v30 = vrot.slane %v3669_v62, 4  ;;  %v3679_v23 = vor.u32 %v3678_v3, %v3674_v31 }
 0x2d8   : > { %v3692_v2 = vrot.slane %v3690_v12, 5  ;;  %v3698_v37 = vrot.slane %v3696_v8, 5  ;;  %v3706_v34 = vshll.u32 %v10418_v54, 16  ;;  %v7264_v43 = vcombine.low %v8929_v24, %v10143_v11  ;;  %v10431_v12 = vld [vmem:[#allocation2 + $0x74] sm:$0x1] }
 0x2d9   : > { %v3702_v44 = vrot.slane %v3700_v17, 4  ;;  %8207 = vmatmul.mubr.msk.bf16.gmra.mrb[0].mxu1 %vm2120_vm9, %v7381_v47  ;;  %v3675_v18 = vsel %vm9835_vm8, %v3670_v30, %v3674_v31  ;;  %v3680_v16 = vrot.slane %v3679_v23, 4  ;;  %v3711_v39 = vshrl.u32 %v3494_v40, 16  ;;  %11775 = vst [vmem:[#allocation36_spill] sm:$0xff] %v10431_v12  ;;  %v3497_v31 = vld [vmem:[#allocation2 + $0x78] sm:$0xf] }
 0x2da   : > { %v3693_v29 = vor.u32 %v3692_v2, %v3689_v48  ;;  %v3708_v3 = vrot.slane %v3706_v34, 5  ;;  %v3714_v14 = vshll.u32 %v3494_v40, 16  ;;  %v3720_v8 = vshll.u32 %v10424_v25, 16 }
 0x2db   : > { %v3703_v62 = vor.u32 %v3702_v44, %v3698_v37  ;;  %v3685_v17 = vsel %vm9835_vm8, %v3680_v16, %v3684_v51  ;;  %8099 = vmatmul.mubr.msk.bf16.gmra.mrb[40].mxu0 %vm2120_vm9, %v7263_v10  ;;  %v3713_v47 = vrot.slane %v3711_v39, 4  ;;  %v3724_v24 = vshrl.u32 %v10424_v25, 16  ;;  %v10439_v44 = vld [vmem:[#allocation2 + $0x7c] sm:$0xf] }
 0x2dc   : > { %v3694_v11 = vrot.slane %v3693_v29, 4  ;;  %v7382_v23 = vcombine.low %v3675_v18, %v3685_v17  ;;  %8102 = vmatprep.mubr.msk.bf16.mxu0 %vm2120_vm9, %v7264_v43  ;;  %v3716_v30 = vrot.slane %v3714_v14, 5  ;;  %v3722_v2 = vrot.slane %v3720_v8, 5  ;;  %v10449_v43 = vld [vmem:[#allocation2 + $0x80] sm:$0x1] }
 0x2dd   : > { %v3704_v48 = vrot.slane %v3703_v62, 4  ;;  %v3726_v34 = vrot.slane %v3724_v24, 4  ;;  %v3730_v51 = vshll.u32 %v10431_v12, 16  ;;  %v7265_v10 = vcombine.low %v10163_v15, %v10178_v32  ;;  %v3500_v17 = vld [vmem:[#allocation2 + $0x84] sm:$0xf] }
 0x2de   : > { %v3699_v40 = vsel %vm9835_vm8, %v3694_v11, %v3698_v37  ;;  %8210 = vmatprep.mubr.msk.bf16.mxu1 %vm2120_vm9, %v7382_v23  ;;  %v3717_v16 = vor.u32 %v3716_v30, %v3713_v47  ;;  %v3735_v29 = vshrl.u32 %v3497_v31, 16  ;;  %v3738_v39 = vshll.u32 %v3497_v31, 16  ;;  %v10453_v32 = vld [vmem:[#allocation2 + $0x88] sm:$0xf] }
 0x2df   : > { %v3709_v18 = vsel %vm9835_vm8, %v3704_v48, %v3708_v3  ;;  %v3727_v14 = vor.u32 %v3726_v34, %v3722_v2  ;;  %v3732_v8 = vrot.slane %v3730_v51, 5  ;;  %v3744_v37 = vshll.u32 %v10439_v44, 16  ;;  %v10461_v34 = vld [vmem:[#allocation2 + $0x8c] sm:$0x1] }
 0x2e0   : > { %v7383_v62 = vcombine.low %v3699_v40, %v3709_v18  ;;  %v3718_v11 = vrot.slane %v3717_v16, 4  ;;  %v3737_v24 = vrot.slane %v3735_v29, 4  ;;  %v3740_v12 = vrot.slane %v3738_v39, 5 }
 0x2e1   : > { %v3748_v15 = vshrl.u32 %v10439_v44, 16  ;;  %v3728_v3 = vrot.slane %v3727_v14, 4  ;;  %v3746_v47 = vrot.slane %v3744_v37, 5  ;;  %v3754_v23 = vshll.u32 %v10449_v43, 16 }
 0x2e2   : > { %8211 = vmatmul.mubr.msk.bf16.gmra.mrb[4].mxu1 %vm2120_vm9, %v7383_v62  ;;  %v7266_v31 = vcombine.low %v10185_v55, %v10191_v6  ;;  %v3723_v48 = vsel %vm9835_vm8, %v3718_v11, %v3722_v2  ;;  %v3741_v30 = vor.u32 %v3740_v12, %v3737_v24  ;;  %v3759_v51 = vshrl.u32 %v3500_v17, 16  ;;  %v3503_v62 = vld [vmem:[#allocation2 + $0x90] sm:$0xf] }
 0x2e3   : > { %v3750_v40 = vrot.slane %v3748_v15, 4  ;;  %v3733_v18 = vsel %vm9835_vm8, %v3728_v3, %v3732_v8  ;;  %8103 = vmatmul.mubr.msk.bf16.gmra.mrb[44].mxu0 %vm2120_vm9, %v7265_v10  ;;  %v3756_v16 = vrot.slane %v3754_v23, 5  ;;  %v3762_v29 = vshll.u32 %v3500_v17, 16  ;;  %v10470_v8 = vld [vmem:[#allocation2 + $0x94] sm:$0xf] }
 0x2e4   : > { %v3768_v39 = vshll.u32 %v10453_v32, 16  ;;  %v7384_v14 = vcombine.low %v3723_v48, %v3733_v18  ;;  %v3742_v55 = vrot.slane %v3741_v30, 4  ;;  %8106 = vmatprep.mubr.msk.bf16.mxu0 %vm2120_vm9, %v7266_v31  ;;  %v3761_v12 = vrot.slane %v3759_v51, 4  ;;  %v10477_v30 = vld [vmem:[#allocation2 + $0x98] sm:$0x1] }
 0x2e5   : > { %v3751_v6 = vor.u32 %v3750_v40, %v3746_v47  ;;  %v3764_v2 = vrot.slane %v3762_v29, 5  ;;  %v3772_v11 = vshrl.u32 %v10453_v32, 16  ;;  %v3778_v24 = vshll.u32 %v10461_v34, 16 }
 0x2e6   : > { %v3770_v37 = vrot.slane %v3768_v39, 5  ;;  %8214 = vmatprep.mubr.msk.bf16.mxu1 %vm2120_vm9, %v7384_v14  ;;  %v3747_v10 = vsel %vm9835_vm8, %v3742_v55, %v3746_v47  ;;  %v7267_v15 = vcombine.low %v10201_v49, %v10209_v26  ;;  %v3783_v3 = vshrl.u32 %v3503_v62, 16  ;;  %v3506_v47 = vld [vmem:[#allocation2 + $0x9c] sm:$0xf]  ;;  %v10483_v26 = vld [vmem:[#allocation2 + $0xa0] sm:$0xf] }
 0x2e7   : > { %v3752_v17 = vrot.slane %v3751_v6, 4  ;;  %v3765_v23 = vor.u32 %v3764_v2, %v3761_v12  ;;  %v3774_v31 = vrot.slane %v3772_v11, 4  ;;  %v3780_v48 = vrot.slane %v3778_v24, 5 }
 0x2e8   : > { %v3786_v40 = vshll.u32 %v3503_v62, 16  ;;  %v3785_v18 = vrot.slane %v3783_v3, 4  ;;  %v3792_v29 = vshll.u32 %v10470_v8, 16  ;;  %v3796_v39 = vshrl.u32 %v10470_v8, 16 }
 0x2e9   : > { %v3757_v51 = vsel %vm9835_vm8, %v3752_v17, %v3756_v16  ;;  %v3766_v55 = vrot.slane %v3765_v23, 4  ;;  %v3775_v6 = vor.u32 %v3774_v31, %v3770_v37  ;;  %v3802_v11 = vshll.u32 %v10477_v30, 16  ;;  %v10493_v31 = vld [vmem:[#allocation2 + $0xa4] sm:$0x1] }
 0x2ea   : > { %v7385_v14 = vcombine.low %v3747_v10, %v3757_v51  ;;  %v3788_v49 = vrot.slane %v3786_v40, 5  ;;  %v3794_v12 = vrot.slane %v3792_v29, 5  ;;  %v3798_v2 = vrot.slane %v3796_v39, 4  ;;  %v3509_v39 = vld [vmem:[#allocation2 + $0xa8] sm:$0xf] }
 0x2eb   : > { %v7268_v62 = vcombine.low %v10214_v36, %v10220_v59  ;;  %v3771_v16 = vsel %vm9835_vm8, %v3766_v55, %v3770_v37  ;;  %v3776_v24 = vrot.slane %v3775_v6, 4  ;;  %8107 = vmatmul.mubr.msk.bf16.gmra.mrb[48].mxu0 %vm2120_vm9, %v7267_v15  ;;  %v3807_v17 = vshrl.u32 %v3506_v47, 16  ;;  %v10499_v6 = vld [vmem:[#allocation2 + $0xac] sm:$0xf] }
 0x2ec   : > { %8215 = vmatmul.mubr.msk.bf16.gmra.mrb[8].mxu1 %vm2120_vm9, %v7385_v14  ;;  %v3789_v10 = vor.u32 %v3788_v49, %v3785_v18  ;;  %v3799_v3 = vor.u32 %v3798_v2, %v3794_v12  ;;  %v3804_v23 = vrot.slane %v3802_v11, 5  ;;  %v3810_v40 = vshll.u32 %v3506_v47, 16 }
 0x2ed   : > { %8110 = vmatprep.mubr.msk.bf16.mxu0 %vm2120_vm9, %v7268_v62  ;;  %v3816_v51 = vshll.u32 %v10483_v26, 16  ;;  %v3781_v36 = vsel %vm9835_vm8, %v3776_v24, %v3780_v48  ;;  %v3809_v29 = vrot.slane %v3807_v17, 4  ;;  %v3820_v37 = vshrl.u32 %v10483_v26, 16 }
 0x2ee   : > { %v3790_v59 = vrot.slane %v3789_v10, 4  ;;  %v7386_v15 = vcombine.low %v3771_v16, %v3781_v36  ;;  %v3800_v18 = vrot.slane %v3799_v3, 4  ;;  %v3812_v14 = vrot.slane %v3810_v40, 5  ;;  %v10509_v16 = vld [vmem:[#allocation2 + $0xb0] sm:$0x1] }
 0x2ef   : > { %v3818_v55 = vrot.slane %v3816_v51, 5  ;;  %v3822_v47 = vrot.slane %v3820_v37, 4  ;;  %v3826_v2 = vshll.u32 %v10493_v31, 16  ;;  %v7269_v48 = vcombine.low %v10226_v52, %v10233_v7  ;;  %v3512_v51 = vld [vmem:[#allocation2 + $0xb4] sm:$0xf] }
 0x2f0   : > { %v3795_v49 = vsel %vm9835_vm8, %v3790_v59, %v3794_v12  ;;  %8218 = vmatprep.mubr.msk.bf16.mxu1 %vm2120_vm9, %v7386_v15  ;;  %v3805_v11 = vsel %vm9835_vm8, %v3800_v18, %v3804_v23  ;;  %v3813_v62 = vor.u32 %v3812_v14, %v3809_v29  ;;  %v3831_v24 = vshrl.u32 %v3509_v39, 16  ;;  %v10513_v7 = vld [vmem:[#allocation2 + $0xb8] sm:$0xf] }
 0x2f1   : > { %v3834_v10 = vshll.u32 %v3509_v39, 16  ;;  %v7387_v17 = vcombine.low %v3795_v49, %v3805_v11  ;;  %v3823_v3 = vor.u32 %v3822_v47, %v3818_v55  ;;  %v3828_v40 = vrot.slane %v3826_v2, 5  ;;  %v10525_v11 = vld [vmem:[#allocation2 + $0xbc] sm:$0x1] }
 0x2f2   : > { %v3840_v12 = vshll.u32 %v10499_v6, 16  ;;  %v3814_v36 = vrot.slane %v3813_v62, 4  ;;  %v3833_v59 = vrot.slane %v3831_v24, 4  ;;  %v3844_v52 = vshrl.u32 %v10499_v6, 16  ;;  %v3515_v24 = vld [vmem:[#allocation2 + $0xc0] sm:$0xf] }
 0x2f3   : > { %v3836_v37 = vrot.slane %v3834_v10, 5  ;;  %v3824_v23 = vrot.slane %v3823_v3, 4  ;;  %8111 = vmatmul.mubr.msk.bf16.gmra.mrb[52].mxu0 %vm2120_vm9, %v7269_v48  ;;  %v3850_v39 = vshll.u32 %v10509_v16, 16  ;;  %v7270_v15 = vcombine.low %v10244_v22, %v10249_v38 }
 0x2f4   : > { %8219 = vmatmul.mubr.msk.bf16.gmra.mrb[12].mxu1 %vm2120_vm9, %v7387_v17  ;;  %v3842_v29 = vrot.slane %v3840_v12, 5  ;;  %v3846_v14 = vrot.slane %v3844_v52, 4  ;;  %v3855_v49 = vshrl.u32 %v3512_v51, 16  ;;  %v3819_v47 = vsel %vm9835_vm8, %v3814_v36, %v3818_v55  ;;  %v10529_v36 = vld [vmem:[#allocation2 + $0xc4] sm:$0xf] }
 0x2f5   : > { %v3837_v18 = vor.u32 %v3836_v37, %v3833_v59  ;;  %v3829_v2 = vsel %vm9835_vm8, %v3824_v23, %v3828_v40  ;;  %8114 = vmatprep.mubr.msk.bf16.mxu0 %vm2120_vm9, %v7270_v15  ;;  %v3858_v48 = vshll.u32 %v3512_v51, 16  ;;  %v3864_v62 = vshll.u32 %v10513_v7, 16 }
 0x2f6   : > { %v7388_v10 = vcombine.low %v3819_v47, %v3829_v2  ;;  %v3847_v22 = vor.u32 %v3846_v14, %v3842_v29  ;;  %v3857_v38 = vrot.slane %v3855_v49, 4  ;;  %v3852_v3 = vrot.slane %v3850_v39, 5 }
 0x2f7   : > { %v3838_v17 = vrot.slane %v3837_v18, 4  ;;  %v3860_v12 = vrot.slane %v3858_v48, 5  ;;  %v3866_v59 = vrot.slane %v3864_v62, 5  ;;  %v3868_v55 = vshrl.u32 %v10513_v7, 16  ;;  %v10537_v18 = vld [vmem:[#allocation2 + $0xc8] sm:$0x1] }
 0x2f8   : > { %8222 = vmatprep.mubr.msk.bf16.mxu1 %vm2120_vm9, %v7388_v10  ;;  %v3848_v51 = vrot.slane %v3847_v22, 4  ;;  %v3874_v37 = vshll.u32 %v10525_v11, 16  ;;  %v3879_v52 = vshrl.u32 %v3515_v24, 16  ;;  %v7271_v39 = vcombine.low %v10258_v56, %v10262_v63 }
 0x2f9   : > { %v3843_v40 = vsel %vm9835_vm8, %v3838_v17, %v3842_v29  ;;  %v3861_v23 = vor.u32 %v3860_v12, %v3857_v38  ;;  %v3870_v15 = vrot.slane %v3868_v55, 4  ;;  %v3882_v14 = vshll.u32 %v3515_v24, 16  ;;  %v4208_v55 = vld [vmem:[#allocation2 + $0xc] sm:$0xe] }
 0x2fa   : > { %v3853_v49 = vsel %vm9835_vm8, %v3848_v51, %v3852_v3  ;;  %v3881_v47 = vrot.slane %v3879_v52, 4  ;;  %v3888_v2 = vshll.u32 %v10529_v36, 16  ;;  %v3892_v29 = vshrl.u32 %v10529_v36, 16 }
 0x2fb   : > { %v7389_v48 = vcombine.low %v3843_v40, %v3853_v49  ;;  %v3862_v62 = vrot.slane %v3861_v23, 4  ;;  %v3871_v10 = vor.u32 %v3870_v15, %v3866_v59  ;;  %8115 = vmatmul.mubr.msk.bf16.gmra.mrb[56].mxu0 %vm2120_vm9, %v7271_v39  ;;  %v3884_v17 = vrot.slane %v3882_v14, 5  ;;  %v4209_v49 = vld [vmem:[#allocation2 + $0x18] sm:$0xe] }
 0x2fc   : > { %v3890_v22 = vrot.slane %v3888_v2, 5  ;;  %v3894_v38 = vrot.slane %v3892_v29, 4  ;;  %v3898_v56 = vshll.u32 %v10537_v18, 16  ;;  %v7272_v63 = vcombine.low %v10268_v9, %v10275_v41 }
 0x2fd   : > { %8223 = vmatmul.mubr.msk.bf16.gmra.mrb[16].mxu1 %vm2120_vm9, %v7389_v48  ;;  %v3872_v24 = vrot.slane %v3871_v10, 4  ;;  %v3876_v3 = vrot.slane %v3874_v37, 5  ;;  %v3885_v12 = vor.u32 %v3884_v17, %v3881_v47  ;;  %v3867_v51 = vsel %vm9835_vm8, %v3862_v62, %v3866_v59  ;;  %v4210_v48 = vld [vmem:[#allocation2 + $0x24] sm:$0xe] }
 0x2fe   : > { %v3895_v40 = vor.u32 %v3894_v38, %v3890_v22  ;;  %8118 = vmatprep.mubr.msk.bf16.mxu0 %vm2120_vm9, %v7272_v63  ;;  %v4274_v41 = vrot.slane %v10286_v4, 5  ;;  %v3900_v39 = vrot.slane %v3898_v56, 5  ;;  %v7410_v14 = vrot.slane %v4208_v55, 9 }
 0x2ff   : > { %v3877_v52 = vsel %vm9835_vm8, %v3872_v24, %v3876_v3  ;;  %v3886_v23 = vrot.slane %v3885_v12, 4  ;;  %v4277_v2 = vrot.slane %v10289_v57, 5  ;;  %v7273_v59 = vcombine.low %v10291_v1, %v10300_v27  ;;  %v2631_v57 = vld [vmem:[#allocation2] sm:$0xe]  ;;  %v2632_v3 = vld [vmem:[#allocation2 + $0xc] sm:$0xe] }
 0x300   : > { %v7390_v37 = vcombine.low %v3867_v51, %v3877_v52  ;;  %v3896_v15 = vrot.slane %v3895_v40, 4  ;;  %v4276_v47 = vrot.slane %v4274_v41, 4  ;;  %v4281_v29 = vrot.slane %v10311_v50, 5  ;;  %v8930_v40 = vld [vmem:[#allocation2 + $0x8] sm:$0x1] }
 0x301   : > { %v3891_v62 = vsel %vm9835_vm8, %v3886_v23, %v3890_v22  ;;  %v4275_v10 = vsel %vm10553_vm15, %v7410_v14, %v4274_v41  ;;  %v4288_v17 = vrot.slane %v10323_v21, 5  ;;  %v4284_v50 = vrot.slane %v10315_v60, 5 }
 0x302   : > { %8226 = vmatprep.mubr.msk.bf16.mxu1 %vm2120_vm9, %v7390_v37  ;;  %v3901_v4 = vsel %vm9835_vm8, %v3896_v15, %v3900_v39  ;;  %v4278_v1 = vsel %vm10553_vm15, %v4276_v47, %v4277_v2  ;;  %v4283_v27 = vrot.slane %v4281_v29, 4  ;;  %v7411_v22 = vrot.slane %v4209_v49, 9  ;;  %v4211_v37 = vld [vmem:[#allocation2 + $0x30] sm:$0xe]  ;;  %v8931_v2 = vld [vmem:[#allocation2 + $0x14] sm:$0x1] }
 0x303   : > { %v7391_v38 = vcombine.low %v3891_v62, %v3901_v4  ;;  %8119 = vmatmul.mubr.msk.bf16.gmra.mrb[60].mxu0 %vm2120_vm9, %v7273_v59  ;;  %v7426_v56 = vcombine.low %v4275_v10, %v4278_v1  ;;  %v7412_v63 = vrot.slane %v4210_v48, 9  ;;  %v4290_v24 = vrot.slane %v4288_v17, 4  ;;  %v2633_v48 = vld [vmem:[#allocation2 + $0x18] sm:$0xe]  ;;  %v4212_v1 = vld [vmem:[#allocation2 + $0x3c] sm:$0xe] }
 0x304   : > { %v4285_v21 = vsel %vm10553_vm15, %v4283_v27, %v4284_v50  ;;  %v7292_v12 = vrot.slane %v2631_v57, 9  ;;  %v2684_v55 = vrot.slane %v10339_v58, 5  ;;  %v2687_v51 = vrot.slane %v8930_v40, 5 }
 0x305   : > { %8227 = vmatmul.mubr.msk.bf16.gmra.mrb[20].mxu1 %vm2120_vm9, %v7391_v38  ;;  %v4282_v60 = vsel %vm10553_vm15, %v7411_v22, %v4281_v29  ;;  %v4289_v52 = vsel %vm10553_vm15, %v7412_v63, %v4288_v17  ;;  %v4291_v23 = vrot.slane %v10327_v33, 5  ;;  %v2691_v41 = vrot.slane %v10347_v13, 5  ;;  %v2634_v63 = vld [vmem:[#allocation2 + $0x24] sm:$0xe] }
 0x306   : > { %8234 = vmatprep.mubr.msk.bf16.mxu1 %vm2120_vm9, %v7426_v56  ;;  %v7427_v15 = vcombine.low %v4282_v60, %v4285_v21  ;;  %v2685_v39 = vsel %vm10553_vm15, %v7292_v12, %v2684_v55  ;;  %v2686_v58 = vrot.slane %v2684_v55, 4  ;;  %v7293_v14 = vrot.slane %v2632_v3, 9  ;;  %v8932_v56 = vld [vmem:[#allocation2 + $0x20] sm:$0x1] }
 0x307   : > { %v4292_v49 = vsel %vm10553_vm15, %v4290_v24, %v4291_v23  ;;  %v2693_v47 = vrot.slane %v2691_v41, 4  ;;  %v2694_v59 = vrot.slane %v8931_v2, 5  ;;  %v4295_v29 = vrot.slane %v10335_v53, 5  ;;  %v8870_v24 = vld [vmem:[#allocation11 + $0x68] sm:$0xff]   ;;  %v10615_v2 = vld [vmem:[#allocation11 + $0x70] sm:$0xff]  }
 0x308   : > { %v2688_v33 = vsel %vm10553_vm15, %v2686_v58, %v2687_v51  ;;  %v2692_v13 = vsel %vm10553_vm15, %v7293_v14, %v2691_v41  ;;  %v7413_v62 = vrot.slane %v4211_v37, 9  ;;  %v2698_v4 = vrot.slane %v10357_v45, 5  ;;  %v4213_v41 = vld [vmem:[#allocation2 + $0x48] sm:$0xe]  ;;  %v11778_v14 = vld [vmem:[#allocation31_spill] sm:$0xff] }
 0x309   : > { %v7308_v10 = vcombine.low %v2685_v39, %v2688_v33  ;;  %v2695_v17 = vsel %vm10553_vm15, %v2693_v47, %v2694_v59  ;;  %v4297_v57 = vrot.slane %v4295_v29, 4  ;;  %v4298_v38 = vrot.slane %v10342_v5, 5  ;;  %v8933_v39 = vld [vmem:[#allocation2 + $0x2c] sm:$0x1]  ;;  %v2635_v47 = vld [vmem:[#allocation2 + $0x30] sm:$0xe] }
 0x30a   : > { %v7309_v27 = vcombine.low %v2692_v13, %v2695_v17  ;;  %v7294_v53 = vrot.slane %v2633_v48, 9  ;;  %v2700_v50 = vrot.slane %v2698_v4, 4  ;;  %v2701_v22 = vrot.slane %v8932_v56, 5  ;;  %v11779_v59 = vld [vmem:[#allocation33_spill] sm:$0xff]  ;;  %v8934_v48 = vld [vmem:[#allocation11 + $0x38] sm:$0xff]  }
 0x30b   : > { %v7428_v3 = vcombine.low %v4289_v52, %v4292_v49  ;;  %8126 = vmatprep.mubr.msk.bf16.mxu0 %vm2120_vm9, %v7308_v10  ;;  %v4296_v45 = vsel %vm10553_vm15, %v7413_v62, %v4295_v29  ;;  %v4299_v21 = vsel %vm10553_vm15, %v4297_v57, %v4298_v38  ;;  %v4302_v12 = vrot.slane %v10354_v19, 5  ;;  %v11780_v62 = vld [vmem:[#allocation32_spill] sm:$0xff]  ;;  %v4214_v10 = vld [vmem:[#allocation2 + $0x54] sm:$0xe] }
 0x30c   : > { %8127 = vmatmul.mubr.msk.bf16.vlgmr.msra.gmra.mrb[32].mxu0 %vm2120_vm9, %v7309_v27  ;;  %v2699_v5 = vsel %vm10553_vm15, %v7294_v53, %v2698_v4  ;;  %v2702_v55 = vsel %vm10553_vm15, %v2700_v50, %v2701_v22  ;;  %v7414_v40 = vrot.slane %v4212_v1, 9  ;;  %v2705_v51 = vrot.slane %v10375_v35, 5  ;;  %v8935_v1 = vld [vmem:[#allocation2 + $0x38] sm:$0x1]  ;;  %v2636_v53 = vld [vmem:[#allocation2 + $0x3c] sm:$0xe] }
 0x30d   : > { %8235 = vmatmul.mubr.msk.bf16.vlgmr.msra.gmra.mrb[24].mxu1 %vm2120_vm9, %v7427_v15  ;;  %v7310_v60 = vcombine.low %v2699_v5, %v2702_v55  ;;  %v4304_v52 = vrot.slane %v4302_v12, 4  ;;  %v4305_v19 = vrot.slane %v10362_v0, 5  ;;  %v7295_v23 = vrot.slane %v2634_v63, 9  ;;  %8159 = vmatpush3.bf16.msra.mxu0 %v10403_v61 }
 0x30e   : > { %8267 = vmatpush3.bf16.msra.mxu1 %v10370_v28  ;;  %8238 = vmatprep.mubr.msk.bf16.mxu1 %vm2120_vm9, %v7428_v3  ;;  %v7429_v37 = vcombine.low %v4296_v45, %v4299_v21  ;;  %v2707_v15 = vrot.slane %v2705_v51, 4  ;;  %v2708_v58 = vrot.slane %v8933_v39, 5  ;;  %v4309_v49 = vrot.slane %v11778_v14, 5  ;;  %v2637_v39 = vld [vmem:[#allocation2 + $0x48] sm:$0xe] }
 0x30f   : > { %8268 = vmatprep.subr.bf16.mxu1 %v8870_v24  ;;  %8130 = vmatprep.mubr.msk.bf16.mxu0 %vm2120_vm9, %v7310_v60  ;;  %v4303_v28 = vsel %vm10553_vm15, %v7414_v40, %v4302_v12  ;;  %v4306_v0 = vsel %vm10553_vm15, %v4304_v52, %v4305_v19  ;;  %v2706_v35 = vsel %vm10553_vm15, %v7295_v23, %v2705_v51  ;;  %v2712_v29 = vrot.slane %v11779_v59, 5  ;;  %v11782_v40 = vld [vmem:[#allocation34_spill] sm:$0xff]  ;;  %v4215_v60 = vld [vmem:[#allocation2 + $0x60] sm:$0xe]  ;;  %v8936_v23 = vld [vmem:[#allocation2 + $0x44] sm:$0x1] }
 0x310   : > { %8160 = vmatprep.subr.bf16.mxu0 %v8934_v48  ;;  %v2709_v33 = vsel %vm10553_vm15, %v2707_v15, %v2708_v58  ;;  %v7415_v13 = vrot.slane %v4213_v41, 9  ;;  %v4311_v61 = vrot.slane %v4309_v49, 4  ;;  %v4312_v4 = vrot.slane %v11780_v62, 5 }
 0x311   : > { %v7430_v17 = vcombine.low %v4303_v28, %v4306_v0  ;;  %v7296_v57 = vrot.slane %v2635_v47, 9  ;;  %v2714_v38 = vrot.slane %v2712_v29, 4  ;;  %v2715_v27 = vrot.slane %v8935_v1, 5  ;;  %8161 = vmatpush3.bf16.msra.mxu0 %v8934_v48 }
 0x312   : > { %8269 = vmatpush3.bf16.msra.mxu1 %v8870_v24  ;;  %v7311_v50 = vcombine.low %v2706_v35, %v2709_v33  ;;  %v4310_v56 = vsel %vm10553_vm15, %v7415_v13, %v4309_v49  ;;  %v4313_v22 = vsel %vm10553_vm15, %v4311_v61, %v4312_v4  ;;  %v4316_v63 = vrot.slane %v10389_v42, 5  ;;  %v11781_v24 = vld [vmem:[#allocation35_spill] sm:$0xff]  ;;  %v8937_v49 = vld [vmem:[#allocation2 + $0x4c] sm:$0xf]  ;;  %v8938_v33 = vld [vmem:[#allocation2 + $0x50] sm:$0x1] }
 0x313   : > { %8302 = vmatprep.subr.bf16.mxu1 %v10615_v2  ;;  %v2713_v3 = vsel %vm10553_vm15, %v7296_v57, %v2712_v29  ;;  %v2716_v45 = vsel %vm10553_vm15, %v2714_v38, %v2715_v27  ;;  %v7416_v21 = vrot.slane %v4214_v10, 9  ;;  %v2719_v12 = vrot.slane %v11781_v24, 5  ;;  %v4216_v61 = vld [vmem:[#allocation2 + $0x6c] sm:$0xe]  ;;  %v2638_v57 = vld [vmem:[#allocation2 + $0x54] sm:$0xe] }
 0x314   : > { %8131 = vmatmul.mubr.msk.bf16.gmra.mrb[36].mxu0 %vm2120_vm9, %v7311_v50  ;;  %v7312_v5 = vcombine.low %v2713_v3, %v2716_v45  ;;  %v4318_v55 = vrot.slane %v4316_v63, 4  ;;  %v4319_v42 = vrot.slane %v11782_v40, 5  ;;  %v7297_v51 = vrot.slane %v2636_v53, 9  ;;  %v8939_v27 = vld [vmem:[#allocation2 + $0x58] sm:$0xf]  ;;  %v11783_v3 = vld [vmem:[#allocation36_spill] sm:$0xff] }
 0x315   : > { %8239 = vmatmul.mubr.msk.bf16.gmra.mrb[28].mxu1 %vm2120_vm9, %v7429_v37  ;;  %v7431_v52 = vcombine.low %v4310_v56, %v4313_v22  ;;  %v2721_v19 = vrot.slane %v2719_v12, 4  ;;  %v2722_v41 = vrot.slane %v8936_v23, 5  ;;  %v4323_v15 = vrot.slane %v10409_v46, 5  ;;  %v4217_v50 = vld [vmem:[#allocation2 + $0x78] sm:$0xe] }
 0x316   : > { %8242 = vmatprep.mubr.msk.bf16.mxu1 %vm2120_vm9, %v7430_v17  ;;  %8134 = vmatprep.mubr.msk.bf16.mxu0 %vm2120_vm9, %v7312_v5  ;;  %v4317_v37 = vsel %vm10553_vm15, %v7416_v21, %v4316_v63  ;;  %v4320_v58 = vsel %vm10553_vm15, %v4318_v55, %v4319_v42  ;;  %v2720_v14 = vsel %vm10553_vm15, %v7297_v51, %v2719_v12  ;;  %v2726_v47 = vrot.slane %v8937_v49, 5  ;;  %v8940_v24 = vld [vmem:[#allocation2 + $0x5c] sm:$0x1]  ;;  %v2639_v51 = vld [vmem:[#allocation2 + $0x60] sm:$0xe] }
 0x317   : > { %v2723_v28 = vsel %vm10553_vm15, %v2721_v19, %v2722_v41  ;;  %v7417_v0 = vrot.slane %v4215_v60, 9  ;;  %v4325_v35 = vrot.slane %v4323_v15, 4  ;;  %v4326_v46 = vrot.slane %v10418_v54, 5  ;;  %v8941_v60 = vld [vmem:[#allocation2 + $0x64] sm:$0xf] }
 0x318   : > { %v7432_v59 = vcombine.low %v4317_v37, %v4320_v58  ;;  %v7298_v29 = vrot.slane %v2637_v39, 9  ;;  %v2728_v48 = vrot.slane %v2726_v47, 4  ;;  %v2729_v13 = vrot.slane %v8938_v33, 5  ;;  %v8942_v37 = vld [vmem:[#allocation2 + $0x68] sm:$0x1] }
 0x319   : > { %v7313_v62 = vcombine.low %v2720_v14, %v2723_v28  ;;  %v4324_v4 = vsel %vm10553_vm15, %v7417_v0, %v4323_v15  ;;  %v4327_v10 = vsel %vm10553_vm15, %v4325_v35, %v4326_v46  ;;  %v4330_v17 = vrot.slane %v10424_v25, 5  ;;  %v4218_v14 = vld [vmem:[#allocation2 + $0x84] sm:$0xe] }
 0x31a   : > { %v7433_v38 = vcombine.low %v4324_v4, %v4327_v10  ;;  %v2727_v54 = vsel %vm10553_vm15, %v7298_v29, %v2726_v47  ;;  %v2730_v1 = vsel %vm10553_vm15, %v2728_v48, %v2729_v13  ;;  %v2733_v53 = vrot.slane %v8939_v27, 5  ;;  %v2640_v10 = vld [vmem:[#allocation2 + $0x6c] sm:$0xe]  ;;  %v8944_v27 = vld [vmem:[#allocation2 + $0x74] sm:$0x1] }
 0x31b   : > { %v7314_v56 = vcombine.low %v2727_v54, %v2730_v1  ;;  %v7418_v22 = vrot.slane %v4216_v61, 9  ;;  %v4332_v63 = vrot.slane %v4330_v17, 4  ;;  %v4333_v45 = vrot.slane %v11783_v3, 5 }
 0x31c   : > { %8135 = vmatmul.mubr.msk.bf16.gmra.mrb[40].mxu0 %vm2120_vm9, %v7313_v62  ;;  %v7299_v25 = vrot.slane %v2638_v57, 9  ;;  %v2735_v21 = vrot.slane %v2733_v53, 4  ;;  %v2736_v12 = vrot.slane %v8940_v24, 5  ;;  %v4337_v5 = vrot.slane %v10439_v44, 5  ;;  %v4219_v62 = vld [vmem:[#allocation2 + $0x90] sm:$0xe] }
 0x31d   : > { %8243 = vmatmul.mubr.msk.bf16.gmra.mrb[0].mxu1 %vm2120_vm9, %v7431_v52  ;;  %8138 = vmatprep.mubr.msk.bf16.mxu0 %vm2120_vm9, %v7314_v56  ;;  %v4331_v55 = vsel %vm10553_vm15, %v7418_v22, %v4330_v17  ;;  %v4334_v40 = vsel %vm10553_vm15, %v4332_v63, %v4333_v45  ;;  %v7419_v42 = vrot.slane %v4217_v50, 9  ;;  %v2740_v52 = vrot.slane %v8941_v60, 5  ;;  %v2641_v57 = vld [vmem:[#allocation2 + $0x78] sm:$0xe]  ;;  %v4220_v24 = vld [vmem:[#allocation2 + $0x9c] sm:$0xe] }
 0x31e   : > { %8246 = vmatprep.mubr.msk.bf16.mxu1 %vm2120_vm9, %v7432_v59  ;;  %v7434_v19 = vcombine.low %v4331_v55, %v4334_v40  ;;  %v2737_v23 = vsel %vm10553_vm15, %v2735_v21, %v2736_v12  ;;  %v4339_v41 = vrot.slane %v4337_v5, 4  ;;  %v4340_v44 = vrot.slane %v10449_v43, 5  ;;  %v8943_v59 = vld [vmem:[#allocation2 + $0x70] sm:$0xf]  ;;  %v8947_v60 = vld [vmem:[#allocation2 + $0x88] sm:$0xf] }
 0x31f   : > { %v2734_v15 = vsel %vm10553_vm15, %v7299_v25, %v2733_v53  ;;  %v2742_v39 = vrot.slane %v2740_v52, 4  ;;  %v2743_v58 = vrot.slane %v8942_v37, 5  ;;  %v10681_v49 = vsel %vm10553_vm15, %v7419_v42, %v4337_v5  ;;  %v8946_v25 = vld [vmem:[#allocation2 + $0x80] sm:$0x1] }
 0x320   : > { %v10685_v47 = vsel %vm10553_vm15, %v4339_v41, %v4340_v44  ;;  %v7300_v28 = vrot.slane %v2639_v51, 9  ;;  %v4344_v0 = vrot.slane %v10453_v32, 5  ;;  %v7315_v35 = vcombine.low %v2734_v15, %v2737_v23  ;;  %v4221_v15 = vld [vmem:[#allocation2 + $0xa8] sm:$0xe] }
 0x321   : > { %v7435_v43 = vcombine.low %v10681_v49, %v10685_v47  ;;  %v2744_v46 = vsel %vm10553_vm15, %v2742_v39, %v2743_v58  ;;  %v2747_v29 = vrot.slane %v8943_v59, 5  ;;  %v7420_v33 = vrot.slane %v4218_v14, 9  ;;  %v2642_v49 = vld [vmem:[#allocation2 + $0x84] sm:$0xe] }
 0x322   : > { %v2741_v48 = vsel %vm10553_vm15, %v7300_v28, %v2740_v52  ;;  %v4346_v13 = vrot.slane %v4344_v0, 4  ;;  %v4347_v61 = vrot.slane %v10461_v34, 5  ;;  %v4351_v17 = vrot.slane %v10470_v8, 5  ;;  %v8945_v34 = vld [vmem:[#allocation2 + $0x7c] sm:$0xf] }
 0x323   : > { %v7316_v4 = vcombine.low %v2741_v48, %v2744_v46  ;;  %v2749_v32 = vrot.slane %v2747_v29, 4  ;;  %v4345_v54 = vsel %vm10553_vm15, %v7420_v33, %v4344_v0  ;;  %v2750_v53 = vrot.slane %v8944_v27, 5  ;;  %v2643_v28 = vld [vmem:[#allocation2 + $0x90] sm:$0xe]  ;;  %v8948_v0 = vld [vmem:[#allocation2 + $0x94] sm:$0xf] }
 0x324   : > { %8139 = vmatmul.mubr.msk.bf16.gmra.mrb[44].mxu0 %vm2120_vm9, %v7315_v35  ;;  %v4348_v1 = vsel %vm10553_vm15, %v4346_v13, %v4347_v61  ;;  %v2754_v50 = vrot.slane %v8945_v34, 5  ;;  %v7421_v56 = vrot.slane %v4219_v62, 9  ;;  %v4353_v22 = vrot.slane %v4351_v17, 4  ;;  %v8950_v13 = vld [vmem:[#allocation2 + $0x98] sm:$0x1] }
 0x325   : > { %8247 = vmatmul.mubr.msk.bf16.gmra.mrb[4].mxu1 %vm2120_vm9, %v7433_v38  ;;  %8142 = vmatprep.mubr.msk.bf16.mxu0 %vm2120_vm9, %v7316_v4  ;;  %v7436_v8 = vcombine.low %v4345_v54, %v4348_v1  ;;  %v4354_v38 = vrot.slane %v10477_v30, 5  ;;  %v7301_v63 = vrot.slane %v2640_v10, 9  ;;  %v7302_v3 = vrot.slane %v2641_v57, 9  ;;  %v8951_v57 = vld [vmem:[#allocation2 + $0xa0] sm:$0xf] }
 0x326   : > { %8250 = vmatprep.mubr.msk.bf16.mxu1 %vm2120_vm9, %v7434_v19  ;;  %v2756_v45 = vrot.slane %v2754_v50, 4  ;;  %v2757_v21 = vrot.slane %v8946_v25, 5  ;;  %v2751_v12 = vsel %vm10553_vm15, %v2749_v32, %v2750_v53  ;;  %v4352_v5 = vsel %vm10553_vm15, %v7421_v56, %v4351_v17  ;;  %v4223_v27 = vld [vmem:[#allocation2 + $0xc0] sm:$0xe] }
 0x327   : > { %v4355_v55 = vsel %vm10553_vm15, %v4353_v22, %v4354_v38  ;;  %v4358_v40 = vrot.slane %v10483_v26, 5  ;;  %v2748_v30 = vsel %vm10553_vm15, %v7301_v63, %v2747_v29  ;;  %v2761_v52 = vrot.slane %v8947_v60, 5  ;;  %v8949_v29 = vld [vmem:[#allocation2 + $0x8c] sm:$0x1]  ;;  %v8954_v60 = vld [vmem:[#allocation2 + $0xb0] sm:$0x1] }
 0x328   : > { %v7437_v42 = vcombine.low %v4352_v5, %v4355_v55  ;;  %v2758_v51 = vsel %vm10553_vm15, %v2756_v45, %v2757_v21  ;;  %v2755_v19 = vsel %vm10553_vm15, %v7302_v3, %v2754_v50  ;;  %v7422_v23 = vrot.slane %v4220_v24, 9  ;;  %v8952_v22 = vld [vmem:[#allocation2 + $0xac] sm:$0xf]  ;;  %v2644_v24 = vld [vmem:[#allocation2 + $0x9c] sm:$0xe] }
 0x329   : > { %v4360_v41 = vrot.slane %v4358_v40, 4  ;;  %v4361_v44 = vrot.slane %v10493_v31, 5  ;;  %v7317_v39 = vcombine.low %v2748_v30, %v2751_v12  ;;  %v7318_v37 = vcombine.low %v2755_v19, %v2758_v51  ;;  %v1024_v21 = vld [vmem:[#allocation2 + $0xcc] sm:$0x1]  ;;  %v8953_v5 = vld [vmem:[#allocation2 + $0xa4] sm:$0x1] }
 0x32a   : > { %v4365_v26 = vrot.slane %v10499_v6, 5  ;;  %v4359_v58 = vsel %vm10553_vm15, %v7422_v23, %v4358_v40  ;;  %v2763_v47 = vrot.slane %v2761_v52, 4  ;;  %v2768_v35 = vrot.slane %v8948_v0, 5  ;;  %v2645_v30 = vld [vmem:[#allocation2 + $0xa8] sm:$0xe] }
 0x32b   : > { %v4362_v14 = vsel %vm10553_vm15, %v4360_v41, %v4361_v44  ;;  %v7423_v46 = vrot.slane %v4221_v15, 9  ;;  %v4368_v6 = vrot.slane %v10509_v16, 5  ;;  %v2764_v48 = vrot.slane %v8949_v29, 5  ;;  %v8955_v15 = vld [vmem:[#allocation2 + $0xb8] sm:$0xf] }
 0x32c   : > { %8143 = vmatmul.mubr.msk.bf16.gmra.mrb[48].mxu0 %vm2120_vm9, %v7317_v39  ;;  %v7438_v31 = vcombine.low %v4359_v58, %v4362_v14  ;;  %v4367_v59 = vrot.slane %v4365_v26, 4  ;;  %v2770_v33 = vrot.slane %v2768_v35, 4  ;;  %v2771_v61 = vrot.slane %v8950_v13, 5 }
 0x32d   : > { %8251 = vmatmul.mubr.msk.bf16.gmra.mrb[8].mxu1 %vm2120_vm9, %v7435_v43  ;;  %8146 = vmatprep.mubr.msk.bf16.mxu0 %vm2120_vm9, %v7318_v37  ;;  %v7303_v62 = vrot.slane %v2642_v49, 9  ;;  %v4366_v43 = vsel %vm10553_vm15, %v7423_v46, %v4365_v26  ;;  %v7304_v10 = vrot.slane %v2643_v28, 9  ;;  %v2765_v16 = vsel %vm10553_vm15, %v2763_v47, %v2764_v48  ;;  %v2646_v46 = vld [vmem:[#allocation2 + $0xb4] sm:$0xe] }
 0x32e   : > { %8254 = vmatprep.mubr.msk.bf16.mxu1 %vm2120_vm9, %v7436_v8  ;;  %v4369_v4 = vsel %vm10553_vm15, %v4367_v59, %v4368_v6  ;;  %v2772_v17 = vsel %vm10553_vm15, %v2770_v33, %v2771_v61  ;;  %v2775_v54 = vrot.slane %v8951_v57, 5  ;;  %v4372_v1 = vrot.slane %v10513_v7, 5  ;;  %v8956_v59 = vld [vmem:[#allocation2 + $0xbc] sm:$0x1] }
 0x32f   : > { %v7439_v32 = vcombine.low %v4366_v43, %v4369_v4  ;;  %v2762_v53 = vsel %vm10553_vm15, %v7303_v62, %v2761_v52  ;;  %v2769_v34 = vsel %vm10553_vm15, %v7304_v10, %v2768_v35  ;;  %v4379_v50 = vrot.slane %v10529_v36, 5  ;;  %v4222_v36 = vld [vmem:[#allocation2 + $0xb4] sm:$0xe]  ;;  %v8871_v61 = vld [vmem:[#allocation2 + $0x18] sm:$0xff]   ;;  %v8874_v62 = vld [vmem:[#allocation2 + $0xc] sm:$0xff]  }
 0x330   : > { %v7319_v8 = vcombine.low %v2762_v53, %v2765_v16  ;;  %v7320_v56 = vcombine.low %v2769_v34, %v2772_v17  ;;  %v2782_v38 = vrot.slane %v8952_v22, 5  ;;  %v2777_v63 = vrot.slane %v2775_v54, 4  ;;  %v8873_v43 = vld [vmem:[#allocation2 + $0x24] sm:$0xff]   ;;  %v8876_v4 = vld [vmem:[#allocation2 + $0x18] sm:$0xff]   ;;  %v8875_v16 = vld [vmem:[#allocation2 + $0x30] sm:$0xff]  }
 0x331   : > { %v7425_v3 = vrot.slane %v4223_v27, 9  ;;  %v4381_v45 = vrot.slane %v4379_v50, 4  ;;  %v4382_v25 = vrot.slane %v10537_v18, 5  ;;  %v4374_v7 = vrot.slane %v4372_v1, 4  ;;  %v8885_v10 = vld [vmem:[#allocation11 + $0x78] sm:$0xff]   ;;  %v10784_v17 = vld [vmem:[#allocation11 + $0x80] sm:$0xff]  }
 0x332   : > { %v2784_v12 = vrot.slane %v2782_v38, 4  ;;  %v2778_v55 = vrot.slane %v8953_v5, 5  ;;  %v2785_v52 = vrot.slane %v8954_v60, 5  ;;  %v1025_v23 = vsel %vm9781_vm2, 0, %v1024_v21  ;;  %v10786_v57 = vld [vmem:[#allocation2 + $0x1c] sm:$0xf] }
 0x333   : > { %v4380_v40 = vsel %vm10553_vm15, %v7425_v3, %v4379_v50  ;;  %v4383_v18 = vsel %vm10553_vm15, %v4381_v45, %v4382_v25  ;;  %v7305_v41 = vrot.slane %v2644_v24, 9  ;;  %v2789_v39 = vrot.slane %v8955_v15, 5  ;;  %1026 = vst [vmem:[#allocation2 + $0xcc] sm:$0x1] %v1025_v23  ;;  %v5061_v27 = vld [vmem:[#allocation2 + $0x18] sm:$0xf] }
 0x334   : > { %8147 = vmatmul.mubr.msk.bf16.gmra.mrb[52].mxu0 %vm2120_vm9, %v7319_v8  ;;  %v7441_v51 = vcombine.low %v4380_v40, %v4383_v18  ;;  %v2779_v44 = vsel %vm10553_vm15, %v2777_v63, %v2778_v55  ;;  %v7424_v37 = vrot.slane %v4222_v36, 9  ;;  %v7306_v58 = vrot.slane %v2645_v30, 9  ;;  %v8879_v53 = vld [vmem:[#allocation2 + $0x48] sm:$0xff]   ;;  %v5064_v50 = vld [vmem:[#allocation2 + $0x24] sm:$0xf]  ;;  %v8881_v5 = vld [vmem:[#allocation2 + $0x54] sm:$0xff]  }
 0x335   : > { %8255 = vmatmul.mubr.msk.bf16.gmra.mrb[12].mxu1 %vm2120_vm9, %v7437_v42  ;;  %8150 = vmatprep.mubr.msk.bf16.mxu0 %vm2120_vm9, %v7320_v56  ;;  %v4375_v42 = vrot.slane %v10525_v11, 5  ;;  %v2786_v11 = vsel %vm10553_vm15, %v2784_v12, %v2785_v52  ;;  %v2776_v14 = vsel %vm10553_vm15, %v7305_v41, %v2775_v54  ;;  %v2792_v6 = vrot.slane %v8956_v59, 5  ;;  %v8877_v54 = vld [vmem:[#allocation2 + $0x3c] sm:$0xff]   ;;  %v10794_v22 = vld [vmem:[#allocation2 + $0x28] sm:$0xf] }
 0x336   : > { %8258 = vmatprep.mubr.msk.bf16.mxu1 %vm2120_vm9, %v7438_v31  ;;  %v4373_v49 = vsel %vm10553_vm15, %v7424_v37, %v4372_v1  ;;  %v7321_v47 = vcombine.low %v2776_v14, %v2779_v44  ;;  %v2783_v28 = vsel %vm10553_vm15, %v7306_v58, %v2782_v38  ;;  %v2791_v31 = vrot.slane %v2789_v39, 4  ;;  %v8880_v1 = vld [vmem:[#allocation2 + $0x30] sm:$0xff]   ;;  %v10798_v25 = vld [vmem:[#allocation2 + $0x20] sm:$0x1]  ;;  %v5070_v58 = vld [vmem:[#allocation2 + $0x3c] sm:$0xf] }
 0x337   : > { %v4376_v26 = vsel %vm10553_vm15, %v4374_v7, %v4375_v42  ;;  %v7322_v35 = vcombine.low %v2783_v28, %v2786_v11  ;;  %v7307_v29 = vrot.slane %v2646_v46, 9  ;;  %v5119_v34 = vshll.u32 %v10786_v57, 16  ;;  %v5067_v36 = vld [vmem:[#allocation2 + $0x30] sm:$0xf]  ;;  %v10802_v55 = vld [vmem:[#allocation2 + $0x34] sm:$0xf] }
 0x338   : > { %v7440_v0 = vcombine.low %v4373_v49, %v4376_v26  ;;  %v2793_v48 = vsel %vm10553_vm15, %v2791_v31, %v2792_v6  ;;  %v5110_v8 = vshrl.u32 %v5061_v27, 16  ;;  %v5113_v56 = vshll.u32 %v5061_v27, 16  ;;  %v8882_v40 = vld [vmem:[#allocation2 + $0x60] sm:$0xff]   ;;  %v10815_v49 = vld [vmem:[#allocation2 + $0x38] sm:$0x1]  ;;  %v8883_v6 = vld [vmem:[#allocation2 + $0x6c] sm:$0xff]  }
 0x339   : > { %v2790_v33 = vsel %vm10553_vm15, %v7307_v29, %v2789_v39  ;;  %v10796_v38 = vrot.slane %v5119_v34, 5  ;;  %v5134_v3 = vshrl.u32 %v5064_v50, 16  ;;  %v5137_v45 = vshll.u32 %v5064_v50, 16  ;;  %v10812_v39 = vld [vmem:[#allocation2 + $0x2c] sm:$0x1] }
 0x33a   : > { %v7323_v13 = vcombine.low %v2790_v33, %v2793_v48  ;;  %v5143_v21 = vshll.u32 %v10794_v22, 16  ;;  %v5147_v7 = vshrl.u32 %v10794_v22, 16  ;;  %v5112_v24 = vrot.slane %v5110_v8, 4  ;;  %v10820_v59 = vld [vmem:[#allocation2 + $0x40] sm:$0xf]  ;;  %v8884_v33 = vld [vmem:[#allocation2 + $0x78] sm:$0xff]  }
 0x33b   : > { %v5115_v12 = vrot.slane %v5113_v56, 5  ;;  %v5129_v30 = vshll.u32 %v10798_v25, 16  ;;  %v5136_v42 = vrot.slane %v5134_v3, 4  ;;  %v5158_v19 = vshrl.u32 %v5067_v36, 16  ;;  %v10835_v56 = vld [vmem:[#allocation2 + $0x58] sm:$0xf] }
 0x33c   : > { %8151 = vmatmul.mubr.msk.bf16.gmra.mrb[56].mxu0 %vm2120_vm9, %v7321_v47  ;;  %v10807_v60 = vrot.slane %v5143_v21, 5  ;;  %v5149_v52 = vrot.slane %v5147_v7, 4  ;;  %v5161_v23 = vshll.u32 %v5067_v36, 16  ;;  %v5167_v44 = vshll.u32 %v10802_v55, 16 }
 0x33d   : > { %8259 = vmatmul.mubr.msk.bf16.gmra.mrb[16].mxu1 %vm2120_vm9, %v7439_v32  ;;  %8154 = vmatprep.mubr.msk.bf16.mxu0 %vm2120_vm9, %v7322_v35  ;;  %v8878_v32 = vld [vmem:[#allocation2 + $0x24] sm:$0xff]   ;;  %v5116_v41 = vor.u32 %v5115_v12, %v5112_v24  ;;  %v5171_v15 = vshrl.u32 %v10802_v55, 16  ;;  %v5131_v11 = vrot.slane %v5129_v30, 5  ;;  %v5160_v47 = vrot.slane %v5158_v19, 4 }
 0x33e   : > { %8262 = vmatprep.mubr.msk.bf16.mxu1 %vm2120_vm9, %v7440_v0  ;;  %v5150_v14 = vor.u32 %v5149_v52, %v10807_v60  ;;  %v5163_v28 = vrot.slane %v5161_v23, 5  ;;  %v5153_v35 = vshll.u32 %v10812_v39, 16  ;;  %v10818_v31 = vrot.slane %v5167_v44, 5  ;;  %v10853_v44 = vld [vmem:[#allocation2 + $0x64] sm:$0xf] }
 0x33f   : > { %v5117_v0 = vrot.slane %v5116_v41, 4  ;;  %v5173_v46 = vrot.slane %v5171_v15, 4  ;;  %v5182_v29 = vshrl.u32 %v5070_v58, 16  ;;  %v5185_v48 = vshll.u32 %v5070_v58, 16  ;;  %v8887_v15 = vld [vmem:[#allocation2 + $0x90] sm:$0xff]  }
 0x340   : > { %v5239_v30 = vshll.u32 %v10835_v56, 16  ;;  %v5875_v20 = vrot.slane %v10812_v39, 5 }
 0x341   : > { %v5174_v27 = vor.u32 %v5173_v46, %v10818_v31  ;;  %v5184_v34 = vrot.slane %v5182_v29, 4  ;;  %v5267_v29 = vshrl.u32 %v10853_v44, 16 }
 0x344   : > { %8155 = vmatmul.mubr.msk.bf16.gmra.mrb[60].mxu0 %vm2120_vm9, %v7323_v13 }
 0x345   : > { %8263 = vmatmul.mubr.msk.bf16.gmra.mrb[20].mxu1 %vm2120_vm9, %v7441_v51  ;;  %8162 = vmatprep.mubr.msk.bf16.mxu0 %vm2120_vm9, %v8874_v62  ;;  %v5139_v51 = vrot.slane %v5137_v45, 5  ;;  %v5073_v62 = vld [vmem:[#allocation2 + $0x48] sm:$0xf]  ;;  %v10842_v45 = vld [vmem:[#allocation2 + $0x44] sm:$0x1] }
 0x346   : > { %8270 = vmatprep.mubr.msk.bf16.mxu1 %vm2120_vm9, %v8871_v61  ;;  %v5206_v50 = vshrl.u32 %v5073_v62, 16  ;;  %v5209_v8 = vshll.u32 %v5073_v62, 16  ;;  %v5201_v19 = vshll.u32 %v10842_v45, 16  ;;  %v10875_v62 = vld [vmem:[#allocation2 + $0x50] sm:$0x1] }
 0x347   : > { %v5140_v26 = vor.u32 %v5139_v51, %v5136_v42  ;;  %v5243_v42 = vshrl.u32 %v10835_v56, 16  ;;  %v5079_v51 = vld [vmem:[#allocation2 + $0x60] sm:$0xf] }
 0x348   : > { %v5208_v23 = vrot.slane %v5206_v50, 4  ;;  %v5211_v41 = vrot.slane %v5209_v8, 5  ;;  %v8888_v50 = vld [vmem:[#allocation2 + $0x9c] sm:$0xff]  }
 0x349   : > { %v5141_v61 = vrot.slane %v5140_v26, 4  ;;  %v5245_v46 = vrot.slane %v5243_v42, 4 }
 0x34b   : > { %v5146_v3 = vsel %vm9835_vm8, %v5141_v61, %v10807_v60  ;;  %v8886_v60 = vld [vmem:[#allocation2 + $0x84] sm:$0xff]  }
 0x34c   : > { %8163 = vmatmul.mubr.msk.bf16.vlgmr.msra.gmra.mrb[32].mxu0 %vm2120_vm9, %v8876_v4  ;;  %v5164_v4 = vor.u32 %v5163_v28, %v5160_v47  ;;  %v5254_v28 = vshrl.u32 %v5079_v51, 16 }
 0x34d   : > { %8271 = vmatmul.mubr.msk.bf16.vlgmr.msra.gmra.mrb[24].mxu1 %vm2120_vm9, %v8873_v43  ;;  %8166 = vmatprep.mubr.msk.bf16.mxu0 %vm2120_vm9, %v8878_v32  ;;  %v5151_v43 = vrot.slane %v5150_v14, 4  ;;  %v10827_v32 = vld [vmem:[#allocation2 + $0x4c] sm:$0xf] }
 0x34e   : > { %8303 = vmatpush3.bf16.msra.mxu1 %v10615_v2  ;;  %8274 = vmatprep.mubr.msk.bf16.mxu1 %vm2120_vm9, %v8875_v16  ;;  %v5123_v2 = vshrl.u32 %v10786_v57, 16  ;;  %v5191_v16 = vshll.u32 %v10820_v59, 16  ;;  %v5219_v21 = vshrl.u32 %v10827_v32, 16  ;;  %v5165_v24 = vrot.slane %v5164_v4, 4 }
 0x34f   : > { %8304 = vmatprep.subr.bf16.mxu1 %v8885_v10 }
 0x350   : > { %v5125_v63 = vrot.slane %v5123_v2, 4  ;;  %v5187_v2 = vrot.slane %v5185_v48, 5  ;;  %v10848_v36 = vrot.slane %v5191_v16, 5  ;;  %v5221_v26 = vrot.slane %v5219_v21, 4  ;;  %v5082_v48 = vld [vmem:[#allocation2 + $0x6c] sm:$0xf] }
 0x351   : > { %v5170_v47 = vsel %vm9835_vm8, %v5165_v24, %v10818_v31  ;;  %v10873_v31 = vrot.slane %v5201_v19, 5  ;;  %v5269_v21 = vrot.slane %v5267_v29, 4 }
 0x352   : > { %8305 = vmatpush3.bf16.msra.mxu1 %v8885_v10  ;;  %v5126_v18 = vor.u32 %v5125_v63, %v10796_v38  ;;  %v5177_v10 = vshll.u32 %v10815_v49, 16  ;;  %v5188_v52 = vor.u32 %v5187_v2, %v5184_v34  ;;  %v5278_v34 = vshrl.u32 %v5082_v48, 16 }
 0x353   : > { %8338 = vmatprep.subr.bf16.mxu1 %v10784_v17  ;;  %v5281_v2 = vshll.u32 %v5082_v48, 16 }
 0x354   : > { %8167 = vmatmul.mubr.msk.bf16.gmra.mrb[36].mxu0 %vm2120_vm9, %v8880_v1  ;;  %v5127_v37 = vrot.slane %v5126_v18, 4  ;;  %v5155_v1 = vrot.slane %v5153_v35, 5  ;;  %v5179_v12 = vrot.slane %v5177_v10, 5  ;;  %v10864_v35 = vrot.slane %v5239_v30, 5  ;;  %v8889_v30 = vld [vmem:[#allocation2 + $0xa8] sm:$0xff]  }
 0x355   : > { %8275 = vmatmul.mubr.msk.bf16.gmra.mrb[28].mxu1 %vm2120_vm9, %v8877_v54  ;;  %v5122_v54 = vsel %vm9835_vm8, %v5117_v0, %v10796_v38  ;;  %v5215_v38 = vshll.u32 %v10827_v32, 16  ;;  %v5257_v0 = vshll.u32 %v5079_v51, 16 }
 0x356   : > { %8278 = vmatprep.mubr.msk.bf16.mxu1 %vm2120_vm9, %v8879_v53  ;;  %v5132_v13 = vsel %vm9835_vm8, %v5127_v37, %v5131_v11  ;;  %v5195_v53 = vshrl.u32 %v10820_v59, 16  ;;  %v5156_v7 = vsel %vm9835_vm8, %v5151_v43, %v5155_v1  ;;  %v5212_v43 = vor.u32 %v5211_v41, %v5208_v23  ;;  %v10880_v1 = vld [vmem:[#allocation2 + $0x5c] sm:$0x1]  ;;  %v10896_v23 = vld [vmem:[#allocation2 + $0x68] sm:$0x1] }
 0x357   : > { %v10837_v63 = vcombine.low %v5122_v54, %v5132_v13  ;;  %v10855_v37 = vrot.slane %v5215_v38, 5  ;;  %v10858_v14 = vcombine.low %v5146_v3, %v5156_v7  ;;  %v10870_v13 = vrot.slane %v5188_v52, 4  ;;  %v10878_v54 = vld [vmem:[#allocation2 + $0x70] sm:$0xf]  ;;  %v5085_v7 = vld [vmem:[#allocation2 + $0x78] sm:$0xf] }
 0x358   : > { %v5197_v18 = vrot.slane %v5195_v53, 4  ;;  %v5259_v53 = vrot.slane %v5257_v0, 5  ;;  %v5246_v3 = vor.u32 %v5245_v46, %v10864_v35  ;;  %v5213_v51 = vrot.slane %v5212_v43, 4 }
 0x359   : > { %v5222_v4 = vor.u32 %v5221_v26, %v10855_v37  ;;  %v5194_v42 = vsel %vm9835_vm8, %v10870_v13, %v10848_v36  ;;  %v5249_v52 = vshll.u32 %v10880_v1, 16  ;;  %v5283_v26 = vrot.slane %v5281_v2, 5 }
 0x35a   : > { %v5198_v61 = vor.u32 %v5197_v18, %v10848_v36  ;;  %v1080_v18 = vld [vmem:[#allocation2 + $0xd4] sm:$0x1]  ;;  %v5302_v36 = vshrl.u32 %v5085_v7, 16  ;;  %v5305_v48 = vshll.u32 %v5085_v7, 16  ;;  %v5273_v43 = vshll.u32 %v10896_v23, 16 }
 0x35b   : > { %v5223_v19 = vrot.slane %v5222_v4, 4  ;;  %v1081_v0 = vsel %vm9791_vm4, 0, %v1080_v18  ;;  %v10910_v4 = vld [vmem:[#allocation2 + $0x7c] sm:$0xf] }
 0x35c   : > { %v5199_v24 = vrot.slane %v5198_v61, 4  ;;  %1082 = vst [vmem:[#allocation2 + $0xd4] sm:$0x1] %v1081_v0  ;;  %v5251_v61 = vrot.slane %v5249_v52, 5  ;;  %v5879_v0 = vrot.slane %v10802_v55, 5 }
 0x35d   : > { %8279 = vmatmul.mubr.msk.bf16.gmra.mrb[0].mxu1 %vm2120_vm9, %v8881_v5  ;;  %v5076_v5 = vld [vmem:[#allocation2 + $0x54] sm:$0xf] }
 0x35e   : > { %8282 = vmatprep.mubr.msk.bf16.mxu1 %vm2120_vm9, %v8882_v40  ;;  %v5175_v40 = vrot.slane %v5174_v27, 4  ;;  %v5230_v58 = vshrl.u32 %v5076_v5, 16  ;;  %v5233_v11 = vshll.u32 %v5076_v5, 16  ;;  %v5256_v27 = vrot.slane %v5254_v28, 4  ;;  %v10966_v28 = vld [vmem:[#allocation2 + $0x94] sm:$0xf] }
 0x35f   : > { %v5287_v5 = vshll.u32 %v10878_v54, 16 }
 0x360   : > { %v5232_v10 = vrot.slane %v5230_v58, 4  ;;  %v5235_v16 = vrot.slane %v5233_v11, 5  ;;  %v5260_v41 = vor.u32 %v5259_v53, %v5256_v27  ;;  %v5247_v58 = vrot.slane %v5246_v3, 4 }
 0x361   : > { %v10926_v3 = vrot.slane %v5302_v36, 4  ;;  %v11097_v36 = vld [vmem:[#allocation2 + $0xb8] sm:$0xf] }
 0x365   : > { %8283 = vmatmul.mubr.msk.bf16.gmra.mrb[4].mxu1 %vm2120_vm9, %v8883_v6  ;;  %v5263_v6 = vshll.u32 %v10853_v44, 16 }
 0x366   : > { %8286 = vmatprep.mubr.msk.bf16.mxu1 %vm2120_vm9, %v8884_v33  ;;  %v5180_v33 = vsel %vm9835_vm8, %v5175_v40, %v5179_v12  ;;  %v5225_v12 = vshll.u32 %v10875_v62, 16  ;;  %v5291_v40 = vshrl.u32 %v10878_v54, 16 }
 0x367   : > { %v10882_v8 = vcombine.low %v5170_v47, %v5180_v33  ;;  %v10885_v38 = vrot.slane %v5263_v6, 5  ;;  %v10900_v47 = vld [vmem:[#allocation2 + $0x74] sm:$0x1]  ;;  %v10904_v6 = vrot.slane %v5287_v5, 5  ;;  %v5204_v33 = vsel %vm9835_vm8, %v5199_v24, %v10873_v31 }
 0x368   : > { %v5227_v46 = vrot.slane %v5225_v12, 5  ;;  %v5293_v29 = vrot.slane %v5291_v40, 4  ;;  %v5297_v53 = vshll.u32 %v10900_v47, 16  ;;  %v5252_v31 = vsel %vm9835_vm8, %v5247_v58, %v5251_v61  ;;  %v10933_v40 = vld [vmem:[#allocation2 + $0x84] sm:$0xf] }
 0x369   : > { %v5270_v11 = vor.u32 %v5269_v21, %v10885_v38  ;;  %v8890_v21 = vld [vmem:[#allocation2 + $0xb4] sm:$0xff]   ;;  %v10929_v24 = vrot.slane %v5305_v48, 5  ;;  %v5311_v12 = vshll.u32 %v10910_v4, 16  ;;  %v5315_v5 = vshrl.u32 %v10910_v4, 16 }
 0x36a   : > { %v5294_v7 = vor.u32 %v5293_v29, %v10904_v6  ;;  %v10935_v18 = vcombine.low %v5194_v42, %v5204_v33  ;;  %v10953_v42 = vrot.slane %v5297_v53, 5  ;;  %v5802_v53 = vld [vmem:[#allocation2 + $0x3c] sm:$0xe] }
 0x36b   : > { %v10922_v2 = vrot.slane %v5270_v11, 4  ;;  %v10963_v11 = vld [vmem:[#allocation2 + $0x88] sm:$0xf]  ;;  %v10973_v48 = vrot.slane %v5311_v12, 5  ;;  %v10975_v33 = vrot.slane %v5315_v5, 4  ;;  %v7531_v58 = vrot.slane %v5802_v53, 9 }
 0x36c   : > { %v5805_v12 = vld [vmem:[#allocation2 + $0x60] sm:$0xe] }
 0x36d   : > { %8287 = vmatmul.mubr.msk.bf16.gmra.mrb[8].mxu1 %vm2120_vm9, %v8886_v60  ;;  %v5236_v60 = vor.u32 %v5235_v16, %v5232_v10  ;;  %v5228_v10 = vsel %vm9835_vm8, %v5223_v19, %v5227_v46  ;;  %v10914_v16 = vrot.slane %v5260_v41, 4  ;;  %v10969_v46 = vrot.slane %v5294_v7, 4  ;;  %v5809_v19 = vld [vmem:[#allocation2 + $0x90] sm:$0xe] }
 0x36e   : > { %8290 = vmatprep.mubr.msk.bf16.mxu1 %vm2120_vm9, %v8887_v15  ;;  %v5280_v15 = vrot.slane %v5278_v34, 4  ;;  %v5218_v34 = vsel %vm9835_vm8, %v5213_v51, %v10855_v37  ;;  %v8891_v37 = vld [vmem:[#allocation2 + $0xc0] sm:$0xff]   ;;  %v5886_v7 = vrot.slane %v10820_v59, 5  ;;  %v5804_v59 = vld [vmem:[#allocation2 + $0x54] sm:$0xe] }
 0x36f   : > { %v5237_v13 = vrot.slane %v5236_v60, 4  ;;  %v10942_v60 = vrot.slane %v5273_v43, 5  ;;  %v7533_v53 = vrot.slane %v5804_v59, 9  ;;  %v5807_v59 = vld [vmem:[#allocation2 + $0x78] sm:$0xe] }
 0x370   : > { %v5284_v27 = vor.u32 %v5283_v26, %v5280_v15  ;;  %v10955_v15 = vld [vmem:[#allocation2 + $0x90] sm:$0xf] }
 0x371   : > { %v5242_v51 = vsel %vm9835_vm8, %v5237_v13, %v10864_v35  ;;  %v5801_v26 = vld [vmem:[#allocation2 + $0x30] sm:$0xe]  ;;  %v5803_v13 = vld [vmem:[#allocation2 + $0x48] sm:$0xe]  ;;  %v5888_v35 = vrot.slane %v5886_v7, 4 }
 0x372   : > { %v10945_v52 = vcombine.low %v5242_v51, %v5252_v31  ;;  %v10951_v41 = vrot.slane %v5284_v27, 4  ;;  %v7530_v43 = vrot.slane %v5801_v26, 9  ;;  %v5882_v27 = vrot.slane %v10815_v49, 5  ;;  %v11054_v51 = vld [vmem:[#allocation2 + $0xac] sm:$0xf] }
 0x373   : > { %v5893_v49 = vrot.slane %v10827_v32, 5  ;;  %v7532_v29 = vrot.slane %v5803_v13, 9  ;;  %v11001_v32 = vsel %vm10553_vm15, %v7531_v58, %v5886_v7  ;;  %v5896_v13 = vrot.slane %v10875_v62, 5  ;;  %v5806_v7 = vld [vmem:[#allocation2 + $0x6c] sm:$0xe] }
 0x374   : > { %v10986_v5 = vsel %vm10553_vm15, %v7530_v43, %v5879_v0  ;;  %v5907_v58 = vrot.slane %v10853_v44, 5  ;;  %v5910_v44 = vrot.slane %v10896_v23, 5  ;;  %v11088_v31 = vld [vmem:[#allocation2 + $0xc4] sm:$0xf] }
 0x375   : > { %8291 = vmatmul.mubr.msk.bf16.gmra.mrb[12].mxu1 %vm2120_vm9, %v8888_v50  ;;  %v10924_v50 = vld [vmem:[#allocation2 + $0x80] sm:$0x1]  ;;  %v5895_v43 = vrot.slane %v5893_v49, 4 }
 0x376   : > { %8294 = vmatprep.mubr.msk.bf16.mxu1 %vm2120_vm9, %v8889_v30  ;;  %v10937_v30 = vcombine.low %v5218_v34, %v5228_v10  ;;  %v5881_v10 = vrot.slane %v5879_v0, 4  ;;  %v8892_v34 = vld [vmem:[#allocation2 + $0xcc] sm:$0xff]   ;;  %v5889_v0 = vrot.slane %v10842_v45, 5  ;;  %v5924_v26 = vrot.slane %v10924_v50, 5 }
 0x377   : > { %v11021_v62 = vsel %vm10553_vm15, %v5895_v43, %v5896_v13  ;;  %v5914_v13 = vrot.slane %v10878_v54, 5 }
 0x378   : > { %v11013_v45 = vsel %vm10553_vm15, %v5888_v35, %v5889_v0 }
 0x37d   : > { %8295 = vmatmul.mubr.msk.bf16.gmra.mrb[16].mxu1 %vm2120_vm9, %v8890_v21  ;;  %v11080_v21 = vld [vmem:[#allocation2 + $0xb0] sm:$0x1] }
 0x37e   : > { %8298 = vmatprep.mubr.msk.bf16.mxu1 %vm2120_vm9, %v8891_v37  ;;  %v10990_v37 = vsel %vm10553_vm15, %v5881_v10, %v5882_v27  ;;  %v11005_v10 = vsel %vm10553_vm15, %v7532_v29, %v5893_v49  ;;  %v5900_v27 = vrot.slane %v10835_v56, 5  ;;  %v7534_v49 = vrot.slane %v5805_v12, 9  ;;  %v11039_v29 = vld [vmem:[#allocation2 + $0x8c] sm:$0x1] }
 0x37f   : > { %v7535_v12 = vrot.slane %v5806_v7, 9  ;;  %v5916_v7 = vrot.slane %v5914_v13, 4  ;;  %v11815_v39 = vcombine.low %v11005_v10, %v11021_v62 }
 0x380   : > { %v5902_v56 = vrot.slane %v5900_v27, 4  ;;  %v11027_v35 = vsel %vm10553_vm15, %v7533_v53, %v5900_v27  ;;  %v11036_v43 = vsel %vm10553_vm15, %v7534_v49, %v5907_v58  ;;  %v11041_v27 = vld [vmem:[#allocation2 + $0x98] sm:$0x1]  ;;  %v7536_v49 = vrot.slane %v5807_v59, 9 }
 0x381   : > { %11786 = vst [vmem:[#allocation31_spill] sm:$0xff] %v11036_v43  ;;  %v11058_v23 = vsel %vm10553_vm15, %v7535_v12, %v5914_v13  ;;  %v5931_v12 = vrot.slane %v11039_v29, 5  ;;  %v5935_v13 = vrot.slane %v10966_v28, 5  ;;  %v5938_v61 = vrot.slane %v11041_v27, 5 }
 0x382   : > { %11788 = vst [vmem:[#allocation32_spill] sm:$0xff] %v11058_v23  ;;  %v5952_v23 = vrot.slane %v11080_v21, 5 }
 0x383   : > { %v5937_v55 = vrot.slane %v5935_v13, 4 }
 0x385   : > { %8299 = vmatmul.mubr.msk.bf16.gmra.mrb[20].mxu1 %vm2120_vm9, %v8892_v34  ;;  %v5903_v34 = vrot.slane %v10880_v1, 5  ;;  %v5909_v1 = vrot.slane %v5907_v58, 4  ;;  %v5921_v58 = vrot.slane %v10910_v4, 5  ;;  %v11063_v4 = vld [vmem:[#allocation2 + $0xa0] sm:$0xf] }
 0x386   : > { %8306 = vmatprep.mubr.msk.bf16.mxu1 %vm2120_vm9, %v10837_v63  ;;  %v5808_v63 = vld [vmem:[#allocation2 + $0x84] sm:$0xe] }
 0x387   : > { %v11032_v0 = vsel %vm10553_vm15, %v5902_v56, %v5903_v34  ;;  %v11047_v53 = vsel %vm10553_vm15, %v5909_v1, %v5910_v44  ;;  %v5917_v34 = vrot.slane %v10900_v47, 5  ;;  %v8894_v56 = vld [vmem:[#allocation11 + $0x88] sm:$0xff]   ;;  %v5923_v1 = vrot.slane %v5921_v58, 4 }
 0x388   : > { %11787 = vst [vmem:[#allocation33_spill] sm:$0xff] %v11047_v53  ;;  %v7537_v44 = vrot.slane %v5808_v63, 9  ;;  %v5928_v47 = vrot.slane %v10963_v11, 5  ;;  %v11071_v54 = vsel %vm10553_vm15, %v7536_v49, %v5921_v58  ;;  %v5810_v63 = vld [vmem:[#allocation2 + $0x9c] sm:$0xe]  ;;  %v7538_v49 = vrot.slane %v5809_v19, 9 }
 0x389   : > { %v11067_v59 = vsel %vm10553_vm15, %v5916_v7, %v5917_v34  ;;  %11790 = vst [vmem:[#allocation34_spill] sm:$0xff] %v11071_v54  ;;  %v11086_v58 = vsel %vm10553_vm15, %v5923_v1, %v5924_v26  ;;  %v5811_v34 = vld [vmem:[#allocation2 + $0xa8] sm:$0xe]  ;;  %v7539_v1 = vrot.slane %v5810_v63, 9  ;;  %v5813_v53 = vld [vmem:[#allocation2 + $0xc0] sm:$0xe]  ;;  %v11816_v9 = vcombine.low %v11027_v35, %v11032_v0 }
 0x38a   : > { %11789 = vst [vmem:[#allocation35_spill] sm:$0xff] %v11067_v59  ;;  %11791 = vst [vmem:[#allocation36_spill] sm:$0xff] %v11086_v58  ;;  %v5930_v7 = vrot.slane %v5928_v47, 4  ;;  %v11105_v19 = vsel %vm10553_vm15, %v7538_v49, %v5935_v13  ;;  %v5812_v58 = vld [vmem:[#allocation2 + $0xb4] sm:$0xe]  ;;  %v11116_v59 = vsel %vm10553_vm15, %v5937_v55, %v5938_v61  ;;  %v5949_v13 = vrot.slane %v11054_v51, 5 }
 0x38b   : > { %11794 = vst [vmem:[#allocation37_spill] sm:$0xff] %v11105_v19  ;;  %11795 = vst [vmem:[#allocation38_spill] sm:$0xff] %v11116_v59  ;;  %v7540_v49 = vrot.slane %v5811_v34, 9  ;;  %v7541_v61 = vrot.slane %v5812_v58, 9  ;;  %v5956_v55 = vrot.slane %v11097_v36, 5  ;;  %v5963_v59 = vrot.slane %v11088_v31, 5 }
 0x38c   : > { %v11101_v26 = vsel %vm10553_vm15, %v5930_v7, %v5931_v12 }
 0x38d   : > { %8307 = vmatmul.mubr.msk.bf16.vlgmr.msra.gmra.mrb[24].mxu1 %vm2120_vm9, %v10858_v14  ;;  %v11078_v14 = vld [vmem:[#allocation2 + $0xa4] sm:$0x1]  ;;  %11793 = vst [vmem:[#allocation30_spill] sm:$0xff] %v11101_v26  ;;  %v5951_v26 = vrot.slane %v5949_v13, 4  ;;  %v11134_v63 = vsel %vm10553_vm15, %v7540_v49, %v5949_v13  ;;  %v11150_v13 = vld [vmem:[#allocation2 + $0xd4] sm:$0x1]  ;;  %v11157_v58 = vsel %vm10553_vm15, %v7541_v61, %v5956_v55 }
 0x38e   : > { %8339 = vmatpush3.bf16.msra.mxu1 %v10784_v17  ;;  %8310 = vmatprep.mubr.msk.bf16.mxu1 %vm2120_vm9, %v10882_v8  ;;  %v11094_v8 = vsel %vm10553_vm15, %v7537_v44, %v5928_v47  ;;  %v5942_v17 = vrot.slane %v11063_v4, 5  ;;  %v11108_v44 = vld [vmem:[#allocation2 + $0xbc] sm:$0x1]  ;;  %v11110_v47 = vld [vmem:[#allocation2 + $0xc8] sm:$0x1]  ;;  %v5945_v12 = vrot.slane %v11078_v14, 5 }
 0x38f   : > { %8340 = vmatprep.subr.bf16.mxu1 %v8894_v56  ;;  %11792 = vst [vmem:[#allocation29_spill] sm:$0xff] %v11094_v8  ;;  %v5814_v8 = vld [vmem:[#allocation2 + $0xcc] sm:$0xe]  ;;  %v5959_v34 = vrot.slane %v11108_v44, 5  ;;  %v5966_v19 = vrot.slane %v11110_v47, 5  ;;  %11797 = vst [vmem:[#allocation40_spill] sm:$0xff] %v11157_v58 }
 0x390   : > { %v5944_v7 = vrot.slane %v5942_v17, 4  ;;  %v11125_v54 = vsel %vm10553_vm15, %v7539_v1, %v5942_v17  ;;  %v11140_v17 = vld [vmem:[#allocation2 + $0xd0] sm:$0xf]  ;;  %v11146_v1 = vsel %vm10553_vm15, %v5951_v26, %v5952_v23  ;;  %v7543_v43 = vrot.slane %v5814_v8, 9 }
 0x391   : > { %v11799_v26 = vshrl.u32 %v10933_v40, 16  ;;  %v11802_v49 = vshll.u32 %v10933_v40, 16  ;;  %v11808_v40 = vshrl.u32 %v10966_v28, 16 }
 0x392   : > { %8341 = vmatpush3.bf16.msra.mxu1 %v8894_v56  ;;  %v11130_v56 = vsel %vm10553_vm15, %v5944_v7, %v5945_v12  ;;  %v5958_v12 = vrot.slane %v5956_v55, 4  ;;  %v7542_v7 = vrot.slane %v5813_v53, 9  ;;  %v5970_v53 = vrot.slane %v11140_v17, 5  ;;  %v11829_v0 = vld [vmem:[#allocation37_spill] sm:$0xff] }
 0x393   : > { %11796 = vst [vmem:[#allocation39_spill] sm:$0xff] %v11130_v56  ;;  %v5328_v56 = vrot.slane %v11799_v26, 4  ;;  %v5318_v55 = vor.u32 %v10975_v33, %v10973_v48  ;;  %v11805_v33 = vshrl.u32 %v10955_v15, 16 }
 0x394   : > { %v11161_v23 = vsel %vm10553_vm15, %v5958_v12, %v5959_v34  ;;  %v11171_v8 = vsel %vm10553_vm15, %v7542_v7, %v5963_v59  ;;  %v11183_v12 = vsel %vm10553_vm15, %v7543_v43, %v5970_v53  ;;  %v5972_v26 = vrot.slane %v5970_v53, 4  ;;  %v5094_v53 = vld [vmem:[#allocation2 + $0x9c] sm:$0xf] }
 0x395   : > { %8311 = vmatmul.mubr.msk.bf16.gmra.mrb[28].mxu1 %vm2120_vm9, %v10935_v18  ;;  %v5965_v18 = vrot.slane %v5963_v59, 4  ;;  %11798 = vst [vmem:[#allocation41_spill] sm:$0xff] %v11161_v23  ;;  %11800 = vst [vmem:[#allocation42_spill] sm:$0xff] %v11171_v8  ;;  %v5331_v23 = vrot.slane %v11802_v49, 5  ;;  %v11803_v59 = vshll.u32 %v10963_v11, 16  ;;  %v5352_v58 = vrot.slane %v11805_v33, 4 }
 0x396   : > { %8314 = vmatprep.mubr.msk.bf16.mxu1 %vm2120_vm9, %v10937_v30  ;;  %v5973_v30 = vrot.slane %v11150_v13, 5  ;;  %v11806_v34 = vshll.u32 %v10955_v15, 16  ;;  %v11807_v43 = vshll.u32 %v10966_v28, 16  ;;  %v5365_v49 = vrot.slane %v11808_v40, 4  ;;  %v11826_v62 = vld [vmem:[#allocation29_spill] sm:$0xff] }
 0x397   : > { %v11175_v61 = vsel %vm10553_vm15, %v5965_v18, %v5966_v19  ;;  %v11189_v7 = vrot.slane %v11803_v59, 5  ;;  %v11804_v19 = vshrl.u32 %v10963_v11, 16  ;;  %v11809_v11 = vsel %vm9835_vm8, %v10922_v2, %v10942_v60 }
 0x398   : > { %11801 = vst [vmem:[#allocation43_spill] sm:$0xff] %v11175_v61  ;;  %v5355_v61 = vrot.slane %v11806_v34, 5  ;;  %v11199_v8 = vrot.slane %v11807_v43, 5  ;;  %v11205_v59 = vsel %vm10553_vm15, %v5972_v26, %v5973_v30  ;;  %v11810_v15 = vsel %vm9835_vm8, %v10914_v16, %v10885_v38 }
 0x399   : > { %v5341_v18 = vrot.slane %v11804_v19, 4  ;;  %v7500_v34 = vcombine.low %v11810_v15, %v11809_v11  ;;  %v5300_v28 = vsel %vm9835_vm8, %v10969_v46, %v10953_v42  ;;  %v11811_v30 = vor.u32 %v10929_v24, %v10926_v3 }
 0x39a   : > { %v7559_v19 = vcombine.low %v11183_v12, %v11205_v59  ;;  %v5290_v38 = vsel %vm9835_vm8, %v10951_v41, %v10904_v6  ;;  %v5319_v16 = vrot.slane %v5318_v55, 4  ;;  %v5332_v2 = vor.u32 %v5331_v23, %v5328_v56  ;;  %v5097_v23 = vld [vmem:[#allocation2 + $0xa8] sm:$0xf] }
 0x39b   : > { %v5309_v26 = vrot.slane %v11811_v30, 4  ;;  %v5342_v60 = vor.u32 %v5341_v18, %v11189_v7  ;;  %v5374_v42 = vshrl.u32 %v5094_v53, 16  ;;  %v5377_v3 = vshll.u32 %v5094_v53, 16 }
 0x39c   : > { %v7501_v24 = vcombine.low %v5290_v38, %v5300_v28  ;;  %v11812_v46 = vshll.u32 %v10924_v50, 16  ;;  %v5356_v43 = vor.u32 %v5355_v61, %v5352_v58  ;;  %v5345_v6 = vshll.u32 %v11039_v29, 16 }
 0x39d   : > { %8315 = vmatmul.mubr.msk.bf16.gmra.mrb[0].mxu1 %vm2120_vm9, %v10945_v52  ;;  %v5366_v52 = vor.u32 %v5365_v49, %v11199_v8  ;;  %v5314_v40 = vsel %vm9835_vm8, %v5309_v26, %v10973_v48  ;;  %v5383_v41 = vshll.u32 %v11063_v4, 16  ;;  %v5387_v56 = vshrl.u32 %v11063_v4, 16 }
 0x39e   : > { %8318 = vmatprep.mubr.msk.bf16.mxu1 %vm2120_vm9, %v7500_v34  ;;  %v5323_v33 = vrot.slane %v11812_v46, 5  ;;  %v5369_v50 = vshll.u32 %v11041_v27, 16  ;;  %v5407_v58 = vshll.u32 %v11054_v51, 16  ;;  %v5411_v61 = vshrl.u32 %v11054_v51, 16  ;;  %v5100_v51 = vld [vmem:[#allocation2 + $0xb4] sm:$0xf] }
 0x39f   : > { %v5333_v18 = vrot.slane %v5332_v2, 4  ;;  %v5343_v49 = vrot.slane %v5342_v60, 4  ;;  %v5376_v53 = vrot.slane %v5374_v42, 4  ;;  %v5379_v48 = vrot.slane %v5377_v3, 5 }
 0x3a0   : > { %v5324_v55 = vsel %vm9835_vm8, %v5319_v16, %v5323_v33  ;;  %v5357_v11 = vrot.slane %v5356_v43, 4  ;;  %v5367_v29 = vrot.slane %v5366_v52, 4  ;;  %v5398_v15 = vshrl.u32 %v5097_v23, 16 }
 0x3a1   : > { %v5401_v34 = vshll.u32 %v5097_v23, 16  ;;  %v7502_v28 = vcombine.low %v5314_v40, %v5324_v55  ;;  %v5347_v4 = vrot.slane %v5345_v6, 5  ;;  %v11248_v30 = vrot.slane %v5383_v41, 5  ;;  %v5103_v41 = vld [vmem:[#allocation2 + $0xc0] sm:$0xf] }
 0x3a2   : > { %v5389_v26 = vrot.slane %v5387_v56, 4  ;;  %v5371_v27 = vrot.slane %v5369_v50, 5  ;;  %v11251_v38 = vrot.slane %v5407_v58, 5  ;;  %v5413_v16 = vrot.slane %v5411_v61, 4 }
 0x3a3   : > { %v5338_v2 = vsel %vm9835_vm8, %v5333_v18, %v11189_v7  ;;  %v5348_v60 = vsel %vm9835_vm8, %v5343_v49, %v5347_v4  ;;  %v5380_v42 = vor.u32 %v5379_v48, %v5376_v53  ;;  %v5393_v3 = vshll.u32 %v11078_v14, 16 }
 0x3a4   : > { %v5372_v46 = vsel %vm9835_vm8, %v5367_v29, %v5371_v27  ;;  %v5400_v33 = vrot.slane %v5398_v15, 4  ;;  %v5403_v43 = vrot.slane %v5401_v34, 5  ;;  %v5390_v52 = vor.u32 %v5389_v26, %v11248_v30  ;;  %v8895_v29 = vld [vmem:[#allocation15] sm:$0xff]  }
 0x3a5   : > { %8319 = vmatmul.mubr.msk.bf16.gmra.mrb[4].mxu1 %vm2120_vm9, %v7501_v24  ;;  %v5362_v24 = vsel %vm9835_vm8, %v5357_v11, %v11199_v8  ;;  %v5422_v40 = vshrl.u32 %v5100_v51, 16  ;;  %v5431_v7 = vshll.u32 %v11097_v36, 16  ;;  %v5435_v6 = vshrl.u32 %v11097_v36, 16  ;;  %v5106_v11 = vld [vmem:[#allocation2 + $0xcc] sm:$0xf]  ;;  %8374 = vmatprep.subr.bf16.mxu0 %v8895_v29 }
 0x3a6   : > { %8322 = vmatprep.mubr.msk.bf16.mxu1 %vm2120_vm9, %v7502_v28  ;;  %v5414_v56 = vor.u32 %v5413_v16, %v11251_v38  ;;  %v5425_v14 = vshll.u32 %v5100_v51, 16  ;;  %v5455_v23 = vshll.u32 %v11088_v31, 16  ;;  %v5459_v8 = vshrl.u32 %v11088_v31, 16  ;;  %8375 = vmatpush3.bf16.msra.mxu0 %v8895_v29 }
 0x3a7   : > { %v7503_v55 = vcombine.low %v5338_v2, %v5348_v60  ;;  %v7504_v50 = vcombine.low %v5362_v24, %v5372_v46  ;;  %v5381_v58 = vrot.slane %v5380_v42, 4  ;;  %v5395_v61 = vrot.slane %v5393_v3, 5 }
 0x3a8   : > { %v5404_v18 = vor.u32 %v5403_v43, %v5400_v33  ;;  %v5417_v49 = vshll.u32 %v11080_v21, 16  ;;  %v5446_v53 = vshrl.u32 %v5103_v41, 16  ;;  %v5449_v48 = vshll.u32 %v5103_v41, 16 }
 0x3a9   : > { %v5391_v36 = vrot.slane %v5390_v52, 4  ;;  %v5424_v15 = vrot.slane %v5422_v40, 4  ;;  %v5433_v34 = vrot.slane %v5431_v7, 5  ;;  %v5437_v28 = vrot.slane %v5435_v6, 4 }
 0x3aa   : > { %v5415_v4 = vrot.slane %v5414_v56, 4  ;;  %v5427_v26 = vrot.slane %v5425_v14, 5  ;;  %v5457_v31 = vrot.slane %v5455_v23, 5  ;;  %v5461_v27 = vrot.slane %v5459_v8, 4 }
 0x3ab   : > { %v5470_v16 = vshrl.u32 %v5106_v11, 16  ;;  %v5473_v51 = vshll.u32 %v5106_v11, 16  ;;  %v5479_v21 = vshll.u32 %v11140_v17, 16  ;;  %v5483_v2 = vshrl.u32 %v11140_v17, 16 }
 0x3ac   : > { %v5405_v60 = vrot.slane %v5404_v18, 4  ;;  %v5419_v42 = vrot.slane %v5417_v49, 5  ;;  %v5448_v3 = vrot.slane %v5446_v53, 4  ;;  %v5451_v24 = vrot.slane %v5449_v48, 5 }
 0x3ad   : > { %8323 = vmatmul.mubr.msk.bf16.gmra.mrb[8].mxu1 %vm2120_vm9, %v7503_v55  ;;  %v5386_v46 = vsel %vm9835_vm8, %v5381_v58, %v11248_v30  ;;  %v5396_v33 = vsel %vm9835_vm8, %v5391_v36, %v5395_v61  ;;  %v5438_v43 = vor.u32 %v5437_v28, %v5433_v34  ;;  %v5428_v40 = vor.u32 %v5427_v26, %v5424_v15 }
 0x3ae   : > { %8326 = vmatprep.mubr.msk.bf16.mxu1 %vm2120_vm9, %v7504_v50  ;;  %v5420_v52 = vsel %vm9835_vm8, %v5415_v4, %v5419_v42  ;;  %v5441_v7 = vshll.u32 %v11108_v44, 16  ;;  %v5462_v17 = vor.u32 %v5461_v27, %v5457_v31  ;;  %v5472_v6 = vrot.slane %v5470_v16, 4 }
 0x3af   : > { %v5475_v41 = vrot.slane %v5473_v51, 5  ;;  %v5481_v56 = vrot.slane %v5479_v21, 5  ;;  %v5485_v14 = vrot.slane %v5483_v2, 4  ;;  %v7505_v23 = vcombine.low %v5386_v46, %v5396_v33 }
 0x3b0   : > { %v5410_v30 = vsel %vm9835_vm8, %v5405_v60, %v11251_v38  ;;  %v5452_v8 = vor.u32 %v5451_v24, %v5448_v3  ;;  %v5465_v55 = vshll.u32 %v11110_v47, 16  ;;  %v5439_v58 = vrot.slane %v5438_v43, 4  ;;  %v5800_v43 = vld [vmem:[#allocation2 + $0x24] sm:$0xe] }
 0x3b1   : > { %v7506_v50 = vcombine.low %v5410_v30, %v5420_v52  ;;  %v5443_v61 = vrot.slane %v5441_v7, 5  ;;  %v5463_v18 = vrot.slane %v5462_v17, 4  ;;  %v5429_v44 = vrot.slane %v5428_v40, 4  ;;  %v11830_v30 = vld [vmem:[#allocation38_spill] sm:$0xff] }
 0x3b2   : > { %v5476_v49 = vor.u32 %v5475_v41, %v5472_v6  ;;  %v5486_v53 = vor.u32 %v5485_v14, %v5481_v56  ;;  %v5489_v48 = vshll.u32 %v11150_v13, 16  ;;  %v5453_v11 = vrot.slane %v5452_v8, 4  ;;  %v11817_v6 = vld [vmem:[#allocation31_spill] sm:$0xff]  ;;  %v11818_v41 = vld [vmem:[#allocation33_spill] sm:$0xff]  ;;  %v11824_v14 = vld [vmem:[#allocation36_spill] sm:$0xff] }
 0x3b3   : > { %v5467_v29 = vrot.slane %v5465_v55, 5  ;;  %v5444_v38 = vsel %vm9835_vm8, %v5439_v58, %v5443_v61  ;;  %v5865_v36 = vrot.slane %v10786_v57, 5  ;;  %v5434_v15 = vsel %vm9835_vm8, %v5429_v44, %v5433_v34  ;;  %v5799_v34 = vld [vmem:[#allocation2 + $0x18] sm:$0xe] }
 0x3b4   : > { %v5477_v28 = vrot.slane %v5476_v49, 4  ;;  %v5487_v4 = vrot.slane %v5486_v53, 4  ;;  %v5491_v26 = vrot.slane %v5489_v48, 5  ;;  %v7507_v27 = vcombine.low %v5434_v15, %v5444_v38  ;;  %v11835_v38 = vld [vmem:[#allocation40_spill] sm:$0xff]  ;;  %v11839_v15 = vld [vmem:[#allocation43_spill] sm:$0xff] }
 0x3b5   : > { %8327 = vmatmul.mubr.msk.bf16.gmra.mrb[12].mxu1 %vm2120_vm9, %v7505_v23  ;;  %v5468_v47 = vsel %vm9835_vm8, %v5463_v18, %v5467_v29  ;;  %v5458_v13 = vsel %vm9835_vm8, %v5453_v11, %v5457_v31  ;;  %v5867_v51 = vrot.slane %v5865_v36, 4  ;;  %v5868_v2 = vrot.slane %v10798_v25, 5  ;;  %v11827_v23 = vld [vmem:[#allocation30_spill] sm:$0xff]  ;;  %v11832_v18 = vld [vmem:[#allocation39_spill] sm:$0xff] }
 0x3b6   : > { %8330 = vmatprep.mubr.msk.bf16.mxu1 %vm2120_vm9, %v7506_v50  ;;  %v7508_v16 = vcombine.low %v5458_v13, %v5468_v47  ;;  %v5482_v21 = vsel %vm9835_vm8, %v5477_v28, %v5481_v56  ;;  %v5492_v57 = vsel %vm9835_vm8, %v5487_v4, %v5491_v26  ;;  %v5872_v60 = vrot.slane %v10794_v22, 5  ;;  %v11821_v56 = vld [vmem:[#allocation35_spill] sm:$0xff]  ;;  %v11836_v47 = vld [vmem:[#allocation41_spill] sm:$0xff] }
 0x3b7   : > { %v7509_v42 = vcombine.low %v5482_v21, %v5492_v57  ;;  %v7528_v3 = vrot.slane %v5799_v34, 9  ;;  %v5869_v31 = vsel %vm10553_vm15, %v5867_v51, %v5868_v2  ;;  %v7529_v25 = vrot.slane %v5800_v43, 9 }
 0x3b8   : > { %v5874_v33 = vrot.slane %v5872_v60, 4  ;;  %v11813_v7 = vcombine.low %v10986_v5, %v10990_v37  ;;  %v11814_v17 = vcombine.low %v11001_v32, %v11013_v45  ;;  %v11819_v5 = vcombine.low %v11817_v6, %v11818_v41  ;;  %v11820_v37 = vld [vmem:[#allocation32_spill] sm:$0xff]  ;;  %v11823_v45 = vld [vmem:[#allocation34_spill] sm:$0xff] }
 0x3b9   : > { %v5866_v24 = vsel %vm10553_vm15, %v7528_v3, %v5865_v36  ;;  %v5873_v52 = vsel %vm10553_vm15, %v7529_v25, %v5872_v60  ;;  %v11822_v32 = vcombine.low %v11820_v37, %v11821_v56  ;;  %v11825_v10 = vcombine.low %v11823_v45, %v11824_v14  ;;  %v8896_v25 = vld [vmem:[#allocation15 + $0x8] sm:$0xff]  }
 0x3ba   : > { %v7544_v46 = vcombine.low %v5866_v24, %v5869_v31  ;;  %v5876_v22 = vsel %vm10553_vm15, %v5874_v33, %v5875_v20  ;;  %v11828_v35 = vcombine.low %v11826_v62, %v11827_v23  ;;  %v11831_v8 = vcombine.low %v11829_v0, %v11830_v30  ;;  %8376 = vmatprep.subr.bf16.mxu0 %v8896_v25 }
 0x3bb   : > { %v7545_v40 = vcombine.low %v5873_v52, %v5876_v22  ;;  %v11833_v44 = vcombine.low %v11125_v54, %v11832_v18  ;;  %v11834_v49 = vcombine.low %v11134_v63, %v11146_v1  ;;  %v11837_v36 = vcombine.low %v11835_v38, %v11836_v47  ;;  %v11838_v54 = vld [vmem:[#allocation42_spill] sm:$0xff]  ;;  %8377 = vmatpush3.bf16.msra.mxu0 %v8896_v25 }
 0x3bc   : > { %v11840_v28 = vcombine.low %v11838_v54, %v11839_v15  ;;  %v11424_v52 = vld [vmem:[#allocation12] ss:$0 sm:$0xff] }
 0x3bd   : > { %8331 = vmatmul.mubr.msk.bf16.gmra.mrb[16].mxu1 %vm2120_vm9, %v7507_v27 }
 0x3be   : > { %8334 = vmatprep.mubr.msk.bf16.mxu1 %vm2120_vm9, %v7508_v16 }
 0x3c5   : > { %8335 = vmatmul.mubr.msk.bf16.gmra.mrb[20].mxu1 %vm2120_vm9, %v7509_v42 }
 0x3c6   : > { %8342 = vmatprep.mubr.msk.bf16.mxu1 %vm2120_vm9, %v7544_v46 }
 0x3cd   : > { %8343 = vmatmul.mubr.msk.bf16.vlgmr.msra.gmra.mrb[24].mxu1 %vm2120_vm9, %v7545_v40 }
 0x3ce   : > { %8346 = vmatprep.mubr.msk.bf16.mxu1 %vm2120_vm9, %v11813_v7 }
 0x3d5   : > { %8347 = vmatmul.mubr.msk.bf16.gmra.mrb[28].mxu1 %vm2120_vm9, %v11814_v17  ;;  %v11426_v17 = vld [vmem:[#allocation14] ss:$0 sm:$0xff] }
 0x3d6   : > { %8350 = vmatprep.mubr.msk.bf16.mxu1 %vm2120_vm9, %v11815_v39 }
 0x3dd   : > { %8351 = vmatmul.mubr.msk.bf16.gmra.mrb[0].mxu1 %vm2120_vm9, %v11816_v9 }
 0x3de   : > { %8354 = vmatprep.mubr.msk.bf16.mxu1 %vm2120_vm9, %v11819_v5 }
 0x3e5   : > { %8355 = vmatmul.mubr.msk.bf16.gmra.mrb[4].mxu1 %vm2120_vm9, %v11822_v32 }
 0x3e6   : > { %8358 = vmatprep.mubr.msk.bf16.mxu1 %vm2120_vm9, %v11825_v10 }
 0x3ed   : > { %8359 = vmatmul.mubr.msk.bf16.gmra.mrb[8].mxu1 %vm2120_vm9, %v11828_v35 }
 0x3ee   : > { %8362 = vmatprep.mubr.msk.bf16.mxu1 %vm2120_vm9, %v11831_v8 }
 0x3ef   : > { %v11356_v55 = vpop.f32.mrb[40].mxu0 }
 0x3f0   : > { %v11358_v50 = vpop.f32.mrb[41].mxu0 }
 0x3f1   : > { %v11360_v58 = vpop.f32.mrb[42].mxu0 }
 0x3f2   : > { %v11362_v61 = vpop.f32.mrb[43].mxu0 }
 0x3f5   : > { %8363 = vmatmul.mubr.msk.bf16.gmra.mrb[12].mxu1 %vm2120_vm9, %v11833_v44 }
 0x3f6   : > { %8366 = vmatprep.mubr.msk.bf16.mxu1 %vm2120_vm9, %v11834_v49 }
 0x3f7   : > { %v11372_v53 = vpop.f32.mrb[44].mxu0 }
 0x3f8   : > { %v11374_v48 = vpop.f32.mrb[45].mxu0 }
 0x3f9   : > { %v11376_v11 = vpop.f32.mrb[46].mxu0 }
 0x3fa   : > { %v11378_v29 = vpop.f32.mrb[47].mxu0 }
 0x3fd   : > { %8367 = vmatmul.mubr.msk.bf16.gmra.mrb[16].mxu1 %vm2120_vm9, %v11837_v36 }
 0x3fe   : > { %8370 = vmatprep.mubr.msk.bf16.mxu1 %vm2120_vm9, %v11840_v28 }
 0x3ff   : > { %v11388_v63 = vpop.f32.mrb[48].mxu0 }
 0x400   : > { %v11390_v1 = vpop.f32.mrb[49].mxu0 }
 0x401   : > { %v11392_v4 = vpop.f32.mrb[50].mxu0 }
 0x402   : > { %v11394_v26 = vpop.f32.mrb[51].mxu0 }
 0x405   : > { %8371 = vmatmul.mubr.msk.bf16.gmra.mrb[20].mxu1 %vm2120_vm9, %v7559_v19 }
 0x407   : > { %v11400_v27 = vpop.f32.mrb[52].mxu0 }
 0x408   : > { %v11402_v13 = vpop.f32.mrb[53].mxu0 }
 0x409   : > { %v11404_v16 = vpop.f32.mrb[54].mxu0 }
 0x40a   : > { %v11406_v51 = vpop.f32.mrb[55].mxu0 }
 0x40f   : > { %v11408_v21 = vpop.f32.mrb[56].mxu0 }
 0x410   : > { %v11410_v57 = vpop.f32.mrb[57].mxu0 }
 0x411   : > { %v11412_v34 = vpop.f32.mrb[58].mxu0 }
 0x412   : > { %v11414_v2 = vpop.f32.mrb[59].mxu0 }
 0x417   : > { %v11416_v60 = vpop.f32.mrb[60].mxu0 }
 0x418   : > { %v11418_v12 = vpop.f32.mrb[61].mxu0 }
 0x419   : > { %v11420_v59 = vpop.f32.mrb[62].mxu0 }
 0x41a   : > { %v11422_v19 = vpop.f32.mrb[63].mxu0 }
 0x41f   : > { %v8164_v42 = vpop.f32.mrb[32].mxu0 }
 0x420   : > { %v3311_v3 = vpop.f32.mrb[33].mxu0 }
 0x421   : > { %v8165_v31 = vpop.f32.mrb[34].mxu0 }
 0x422   : > { %v3314_v24 = vpop.f32.mrb[35].mxu0 }
 0x427   : > { %v8168_v46 = vpop.f32.mrb[36].mxu0 }
 0x428   : > { %v3327_v33 = vpop.f32.mrb[37].mxu0 }
 0x429   : > { %v8169_v43 = vpop.f32.mrb[38].mxu0 }
 0x42a   : > { %v3330_v20 = vpop.f32.mrb[39].mxu0 }
 0x4a0   : > { %v8344_v22 = vpop.f32.mrb[24].mxu1 }
 0x4a1   : > { %v8414_v40 = vadd.f32 %v8344_v22, %v8164_v42  ;;  %v6122_v7 = vpop.f32.mrb[25].mxu1 }
 0x4a2   : > { %v8415_v39 = vadd.f32 %v6122_v7, %v3311_v3  ;;  %v8345_v9 = vpop.f32.mrb[26].mxu1 }
 0x4a3   : > { %v6290_v6 = vmul.f32 %v8414_v40, %v11424_v52  ;;  %v8416_v41 = vadd.f32 %v8345_v9, %v8165_v31  ;;  %v6125_v5 = vpop.f32.mrb[27].mxu1 }
 0x4a4   : > { %v6288_v37 = vmul.f32 %v8415_v39, %v11424_v52  ;;  %v8417_v56 = vadd.f32 %v6125_v5, %v3314_v24 }
 0x4a5   : > { %v6329_v32 = vadd.f32 %v11426_v17, %v6290_v6  ;;  %v6291_v45 = vmul.f32 %v8416_v41, %v11424_v52 }
 0x4a6   : > { %v6327_v14 = vadd.f32 %v11426_v17, %v6288_v37  ;;  %v6289_v10 = vmul.f32 %v8417_v56, %v11424_v52 }
 0x4a7   : > { %v6330_v62 = vadd.f32 %v11426_v17, %v6291_v45  ;;  %v6361_v0 = vmax.f32 %v6329_v32, 0.0 }
 0x4a8   : > { %v6328_v23 = vadd.f32 %v11426_v17, %v6289_v10  ;;  %v8348_v35 = vpop.f32.mrb[28].mxu1  ;;  %v6359_v44 = vmax.f32 %v6327_v14, 0.0 }
 0x4a9   : > { %v6362_v30 = vmax.f32 %v6330_v62, 0.0  ;;  %v8418_v8 = vadd.f32 %v8348_v35, %v8168_v46  ;;  %v6138_v18 = vpop.f32.mrb[29].mxu1 }
 0x4aa   : > { %v6360_v49 = vmax.f32 %v6328_v23, 0.0  ;;  %v8419_v38 = vadd.f32 %v6138_v18, %v3327_v33  ;;  %v8349_v47 = vpop.f32.mrb[30].mxu1 }
 0x4ab   : > { %v6392_v36 = vpack.c.bf16 %v6362_v30, %v6361_v0  ;;  %v6294_v54 = vmul.f32 %v8418_v8, %v11424_v52  ;;  %v8420_v15 = vadd.f32 %v8349_v47, %v8169_v43  ;;  %v6141_v28 = vpop.f32.mrb[31].mxu1 }
 0x4ac   : > { %v6391_v42 = vpack.c.bf16 %v6360_v49, %v6359_v44  ;;  %v6292_v3 = vmul.f32 %v8419_v38, %v11424_v52  ;;  %v8421_v31 = vadd.f32 %v6141_v28, %v3330_v20 }
 0x4ad   : > { %v6333_v24 = vadd.f32 %v11426_v17, %v6294_v54  ;;  %v6295_v25 = vmul.f32 %v8420_v15, %v11424_v52 }
 0x4ae   : > { %v6331_v46 = vadd.f32 %v11426_v17, %v6292_v3  ;;  %v6293_v22 = vmul.f32 %v8421_v31, %v11424_v52  ;;  %8378 = vmatprep.mubr.msk.bf16.mxu0 %vm2120_vm9, %v6391_v42 }
 0x4af   : > { %v6334_v33 = vadd.f32 %v11426_v17, %v6295_v25  ;;  %8379 = vmatmul.mubr.msk.bf16.vlgmr.msra.gmra.mrb[64].mxu0 %vm2120_vm9, %v6392_v36  ;;  %v6365_v7 = vmax.f32 %v6333_v24, 0.0 }
 0x4b0   : > { %v6332_v43 = vadd.f32 %v11426_v17, %v6293_v22  ;;  %v8352_v40 = vpop.f32.mrb[0].mxu1  ;;  %v6363_v6 = vmax.f32 %v6331_v46, 0.0 }
 0x4b1   : > { %v6366_v39 = vmax.f32 %v6334_v33, 0.0  ;;  %v8422_v20 = vadd.f32 %v8352_v40, %v11356_v55  ;;  %v6154_v9 = vpop.f32.mrb[1].mxu1 }
 0x4b2   : > { %v6364_v41 = vmax.f32 %v6332_v43, 0.0  ;;  %v8423_v5 = vadd.f32 %v6154_v9, %v11358_v50  ;;  %v8353_v37 = vpop.f32.mrb[2].mxu1 }
 0x4b3   : > { %v6394_v56 = vpack.c.bf16 %v6366_v39, %v6365_v7  ;;  %v6298_v32 = vmul.f32 %v8422_v20, %v11424_v52  ;;  %v8424_v45 = vadd.f32 %v8353_v37, %v11360_v58  ;;  %v6157_v14 = vpop.f32.mrb[3].mxu1 }
 0x4b4   : > { %v6393_v10 = vpack.c.bf16 %v6364_v41, %v6363_v6  ;;  %v6296_v62 = vmul.f32 %v8423_v5, %v11424_v52  ;;  %v8425_v23 = vadd.f32 %v6157_v14, %v11362_v61 }
 0x4b5   : > { %v6337_v35 = vadd.f32 %v11426_v17, %v6298_v32  ;;  %v6299_v55 = vmul.f32 %v8424_v45, %v11424_v52 }
 0x4b6   : > { %v6335_v0 = vadd.f32 %v11426_v17, %v6296_v62  ;;  %v6297_v50 = vmul.f32 %v8425_v23, %v11424_v52  ;;  %8382 = vmatprep.mubr.msk.bf16.mxu0 %vm2120_vm9, %v6393_v10 }
 0x4b7   : > { %v6338_v30 = vadd.f32 %v11426_v17, %v6299_v55  ;;  %8383 = vmatmul.mubr.msk.bf16.gmra.mrb[68].mxu0 %vm2120_vm9, %v6394_v56  ;;  %v6369_v18 = vmax.f32 %v6337_v35, 0.0 }
 0x4b8   : > { %v6336_v58 = vadd.f32 %v11426_v17, %v6297_v50  ;;  %v8356_v8 = vpop.f32.mrb[4].mxu1  ;;  %v6367_v38 = vmax.f32 %v6335_v0, 0.0 }
 0x4b9   : > { %v6370_v44 = vmax.f32 %v6338_v30, 0.0  ;;  %v8426_v61 = vadd.f32 %v8356_v8, %v11372_v53  ;;  %v6170_v49 = vpop.f32.mrb[5].mxu1 }
 0x4ba   : > { %v6368_v47 = vmax.f32 %v6336_v58, 0.0  ;;  %v8427_v36 = vadd.f32 %v6170_v49, %v11374_v48  ;;  %v8357_v54 = vpop.f32.mrb[6].mxu1 }
 0x4bb   : > { %v6396_v15 = vpack.c.bf16 %v6370_v44, %v6369_v18  ;;  %v6302_v28 = vmul.f32 %v8426_v61, %v11424_v52  ;;  %v8428_v42 = vadd.f32 %v8357_v54, %v11376_v11  ;;  %v6173_v3 = vpop.f32.mrb[7].mxu1 }
 0x4bc   : > { %v6395_v31 = vpack.c.bf16 %v6368_v47, %v6367_v38  ;;  %v6300_v24 = vmul.f32 %v8427_v36, %v11424_v52  ;;  %v8429_v25 = vadd.f32 %v6173_v3, %v11378_v29 }
 0x4bd   : > { %v6341_v46 = vadd.f32 %v11426_v17, %v6302_v28  ;;  %v6303_v53 = vmul.f32 %v8428_v42, %v11424_v52 }
 0x4be   : > { %v6339_v22 = vadd.f32 %v11426_v17, %v6300_v24  ;;  %v6301_v48 = vmul.f32 %v8429_v25, %v11424_v52  ;;  %8386 = vmatprep.mubr.msk.bf16.mxu0 %vm2120_vm9, %v6395_v31 }
 0x4bf   : > { %v6342_v33 = vadd.f32 %v11426_v17, %v6303_v53  ;;  %8387 = vmatmul.mubr.msk.bf16.gmra.mrb[72].mxu0 %vm2120_vm9, %v6396_v15  ;;  %v6373_v40 = vmax.f32 %v6341_v46, 0.0 }
 0x4c0   : > { %v6340_v11 = vadd.f32 %v11426_v17, %v6301_v48  ;;  %v8360_v43 = vpop.f32.mrb[8].mxu1  ;;  %v6371_v20 = vmax.f32 %v6339_v22, 0.0 }
 0x4c1   : > { %v6374_v7 = vmax.f32 %v6342_v33, 0.0  ;;  %v8430_v29 = vadd.f32 %v8360_v43, %v11388_v63  ;;  %v6186_v39 = vpop.f32.mrb[9].mxu1 }
 0x4c2   : > { %v6372_v9 = vmax.f32 %v6340_v11, 0.0  ;;  %v8431_v6 = vadd.f32 %v6186_v39, %v11390_v1  ;;  %v8361_v41 = vpop.f32.mrb[10].mxu1 }
 0x4c3   : > { %v6398_v5 = vpack.c.bf16 %v6374_v7, %v6373_v40  ;;  %v6306_v37 = vmul.f32 %v8430_v29, %v11424_v52  ;;  %v8432_v56 = vadd.f32 %v8361_v41, %v11392_v4  ;;  %v6189_v32 = vpop.f32.mrb[11].mxu1 }
 0x4c4   : > { %v6397_v45 = vpack.c.bf16 %v6372_v9, %v6371_v20  ;;  %v6304_v14 = vmul.f32 %v8431_v6, %v11424_v52  ;;  %v8433_v10 = vadd.f32 %v6189_v32, %v11394_v26 }
 0x4c5   : > { %v6345_v62 = vadd.f32 %v11426_v17, %v6306_v37  ;;  %v6307_v63 = vmul.f32 %v8432_v56, %v11424_v52 }
 0x4c6   : > { %v6343_v23 = vadd.f32 %v11426_v17, %v6304_v14  ;;  %v6305_v1 = vmul.f32 %v8433_v10, %v11424_v52  ;;  %8390 = vmatprep.mubr.msk.bf16.mxu0 %vm2120_vm9, %v6397_v45 }
 0x4c7   : > { %v6346_v35 = vadd.f32 %v11426_v17, %v6307_v63  ;;  %8391 = vmatmul.mubr.msk.bf16.gmra.mrb[76].mxu0 %vm2120_vm9, %v6398_v5  ;;  %v6377_v0 = vmax.f32 %v6345_v62, 0.0 }
 0x4c8   : > { %v6344_v4 = vadd.f32 %v11426_v17, %v6305_v1  ;;  %v8364_v55 = vpop.f32.mrb[12].mxu1  ;;  %v6375_v58 = vmax.f32 %v6343_v23, 0.0 }
 0x4c9   : > { %v6378_v50 = vmax.f32 %v6346_v35, 0.0  ;;  %v8434_v26 = vadd.f32 %v8364_v55, %v11400_v27  ;;  %v6202_v30 = vpop.f32.mrb[13].mxu1 }
 0x4ca   : > { %v6376_v8 = vmax.f32 %v6344_v4, 0.0  ;;  %v8435_v18 = vadd.f32 %v6202_v30, %v11402_v13  ;;  %v8365_v44 = vpop.f32.mrb[14].mxu1 }
 0x4cb   : > { %v6400_v61 = vpack.c.bf16 %v6378_v50, %v6377_v0  ;;  %v6310_v49 = vmul.f32 %v8434_v26, %v11424_v52  ;;  %v8436_v38 = vadd.f32 %v8365_v44, %v11404_v16  ;;  %v6205_v47 = vpop.f32.mrb[15].mxu1 }
 0x4cc   : > { %v6399_v36 = vpack.c.bf16 %v6376_v8, %v6375_v58  ;;  %v6308_v54 = vmul.f32 %v8435_v18, %v11424_v52  ;;  %v8437_v15 = vadd.f32 %v6205_v47, %v11406_v51  ;;  %v8957_v47 = vld [vmem:[%s9737_s11 + $0x8] sm:$0xff]  }
 0x4cd   : > { %v6349_v28 = vadd.f32 %v11426_v17, %v6310_v49  ;;  %v6311_v27 = vmul.f32 %v8436_v38, %v11424_v52  ;;  %v11534_v38 = vld [vmem:[#allocation18] ss:$0 sm:$0xff] }
 0x4ce   : > { %v6347_v42 = vadd.f32 %v11426_v17, %v6308_v54  ;;  %v6309_v13 = vmul.f32 %v8437_v15, %v11424_v52  ;;  %8394 = vmatprep.mubr.msk.bf16.mxu0 %vm2120_vm9, %v6399_v36  ;;  %v6712_v36 = vunpack.c.l.bf16 %v8957_v47  ;;  %v8958_v15 = vld [vmem:[%s9737_s11] sm:$0xff]  }
 0x4cf   : > { %v6350_v3 = vadd.f32 %v11426_v17, %v6311_v27  ;;  %8395 = vmatmul.mubr.msk.bf16.gmra.mrb[80].mxu0 %vm2120_vm9, %v6400_v61  ;;  %v6381_v24 = vmax.f32 %v6349_v28, 0.0  ;;  %v6710_v28 = vunpack.c.l.bf16 %v8958_v15 }
 0x4d0   : > { %v6348_v16 = vadd.f32 %v11426_v17, %v6309_v13  ;;  %v8368_v31 = vpop.f32.mrb[16].mxu1  ;;  %v6379_v53 = vmax.f32 %v6347_v42, 0.0  ;;  %v6713_v13 = vunpack.c.h.bf16 %v8957_v47 }
 0x4d1   : > { %v6382_v25 = vmax.f32 %v6350_v3, 0.0  ;;  %v8438_v51 = vadd.f32 %v8368_v31, %v11408_v21  ;;  %v6218_v46 = vpop.f32.mrb[17].mxu1 }
 0x4d2   : > { %v6380_v22 = vmax.f32 %v6348_v16, 0.0  ;;  %v8439_v48 = vadd.f32 %v6218_v46, %v11410_v57  ;;  %v8369_v33 = vpop.f32.mrb[18].mxu1 }
 0x4d3   : > { %v6402_v11 = vpack.c.bf16 %v6382_v25, %v6381_v24  ;;  %v6314_v43 = vmul.f32 %v8438_v51, %v11424_v52  ;;  %v8440_v40 = vadd.f32 %v8369_v33, %v11412_v34  ;;  %v6221_v7 = vpop.f32.mrb[19].mxu1  ;;  %v6711_v24 = vunpack.c.h.bf16 %v8958_v15 }
 0x4d4   : > { %v6401_v29 = vpack.c.bf16 %v6380_v22, %v6379_v53  ;;  %v6312_v39 = vmul.f32 %v8439_v48, %v11424_v52  ;;  %v8441_v20 = vadd.f32 %v6221_v7, %v11414_v2 }
 0x4d5   : > { %v6353_v9 = vadd.f32 %v11426_v17, %v6314_v43  ;;  %v6315_v21 = vmul.f32 %v8440_v40, %v11424_v52  ;;  %v8959_v40 = vld [vmem:[%s9737_s11 + $0x18] sm:$0xff]  }
 0x4d6   : > { %v6351_v6 = vadd.f32 %v11426_v17, %v6312_v39  ;;  %v6313_v57 = vmul.f32 %v8441_v20, %v11424_v52  ;;  %8398 = vmatprep.mubr.msk.bf16.mxu0 %vm2120_vm9, %v6401_v29  ;;  %v6716_v7 = vunpack.c.l.bf16 %v8959_v40 }
 0x4d7   : > { %v6354_v41 = vadd.f32 %v11426_v17, %v6315_v21  ;;  %8399 = vmatmul.mubr.msk.bf16.gmra.mrb[84].mxu0 %vm2120_vm9, %v6402_v11  ;;  %v6385_v37 = vmax.f32 %v6353_v9, 0.0  ;;  %v8960_v21 = vld [vmem:[%s9737_s11 + $0x10] sm:$0xff]  }
 0x4d8   : > { %v6352_v34 = vadd.f32 %v11426_v17, %v6313_v57  ;;  %v8372_v5 = vpop.f32.mrb[20].mxu1  ;;  %v6383_v45 = vmax.f32 %v6351_v6, 0.0  ;;  %v6714_v6 = vunpack.c.l.bf16 %v8960_v21 }
 0x4d9   : > { %v6386_v56 = vmax.f32 %v6354_v41, 0.0  ;;  %v8442_v2 = vadd.f32 %v8372_v5, %v11416_v60  ;;  %v6234_v32 = vpop.f32.mrb[21].mxu1 }
 0x4da   : > { %v6384_v14 = vmax.f32 %v6352_v34, 0.0  ;;  %v8443_v10 = vadd.f32 %v6234_v32, %v11418_v12  ;;  %v8373_v62 = vpop.f32.mrb[22].mxu1 }
 0x4db   : > { %v6404_v63 = vpack.c.bf16 %v6386_v56, %v6385_v37  ;;  %v6318_v23 = vmul.f32 %v8442_v2, %v11424_v52  ;;  %v8444_v1 = vadd.f32 %v8373_v62, %v11420_v59  ;;  %v6237_v35 = vpop.f32.mrb[23].mxu1  ;;  %v6717_v37 = vunpack.c.h.bf16 %v8959_v40  ;;  %v8964_v40 = vld [vmem:[%s9737_s11 + $0x30] sm:$0xff]  }
 0x4dc   : > { %v6403_v4 = vpack.c.bf16 %v6384_v14, %v6383_v45  ;;  %v6316_v55 = vmul.f32 %v8443_v10, %v11424_v52  ;;  %v8445_v0 = vadd.f32 %v6237_v35, %v11422_v19  ;;  %v6715_v14 = vunpack.c.h.bf16 %v8960_v21 }
 0x4dd   : > { %v6357_v50 = vadd.f32 %v11426_v17, %v6318_v23  ;;  %v6319_v60 = vmul.f32 %v8444_v1, %v11424_v52 }
 0x4de   : > { %v6355_v26 = vadd.f32 %v11426_v17, %v6316_v55  ;;  %v6317_v12 = vmul.f32 %v8445_v0, %v11424_v52  ;;  %8402 = vmatprep.mubr.msk.bf16.mxu0 %vm2120_vm9, %v6403_v4  ;;  %v11532_v52 = vld [vmem:[#allocation17] ss:$0 sm:$0xff] }
 0x4df   : > { %v6358_v30 = vadd.f32 %v11426_v17, %v6319_v60  ;;  %8403 = vmatmul.mubr.msk.bf16.gmra.mrb[88].mxu0 %vm2120_vm9, %v6404_v63  ;;  %v6389_v58 = vmax.f32 %v6357_v50, 0.0  ;;  %v8961_v60 = vld [vmem:[%s9737_s11 + $0x28] sm:$0xff]  }
 0x4e0   : > { %v6356_v59 = vadd.f32 %v11426_v17, %v6317_v12  ;;  %v6387_v8 = vmax.f32 %v6355_v26, 0.0  ;;  %v6720_v26 = vunpack.c.l.bf16 %v8961_v60  ;;  %v6721_v47 = vunpack.c.h.bf16 %v8961_v60  ;;  %v8966_v60 = vld [vmem:[%s9737_s11 + $0x40] sm:$0xff]  }
 0x4e1   : > { %v6390_v19 = vmax.f32 %v6358_v30, 0.0 }
 0x4e2   : > { %v6388_v18 = vmax.f32 %v6356_v59, 0.0 }
 0x4e3   : > { %v6406_v44 = vpack.c.bf16 %v6390_v19, %v6389_v58  ;;  %v8962_v19 = vld [vmem:[%s9737_s11 + $0x20] sm:$0xff]  }
 0x4e4   : > { %v6405_v61 = vpack.c.bf16 %v6388_v18, %v6387_v8  ;;  %v6718_v8 = vunpack.c.l.bf16 %v8962_v19 }
 0x4e6   : > { %8406 = vmatprep.mubr.msk.bf16.mxu0 %vm2120_vm9, %v6405_v61 }
 0x4e7   : > { %8407 = vmatmul.mubr.msk.bf16.gmra.mrb[92].mxu0 %vm2120_vm9, %v6406_v44 }
 0x582   : > { %v8380_v49 = vpop.f32.mrb[64].mxu0 }
 0x583   : > { %v6641_v17 = vmul.f32 %v8380_v49, %v11532_v52  ;;  %v6505_v54 = vpop.f32.mrb[65].mxu0 }
 0x584   : > { %v6639_v27 = vmul.f32 %v11532_v52, %v6505_v54  ;;  %v8381_v42 = vpop.f32.mrb[66].mxu0 }
 0x585   : > { %v6680_v3 = vadd.f32 %v11534_v38, %v6641_v17  ;;  %v6642_v16 = vmul.f32 %v8381_v42, %v11532_v52  ;;  %v6508_v31 = vpop.f32.mrb[67].mxu0 }
 0x586   : > { %v6678_v25 = vadd.f32 %v11534_v38, %v6639_v27  ;;  %v6640_v51 = vmul.f32 %v11532_v52, %v6508_v31 }
 0x587   : > { %v6744_v46 = vadd.f32 %v6712_v36, %v6680_v3  ;;  %v6681_v53 = vadd.f32 %v11534_v38, %v6642_v16 }
 0x588   : > { %v6742_v22 = vadd.f32 %v6710_v28, %v6678_v25  ;;  %v6679_v48 = vadd.f32 %v11534_v38, %v6640_v51  ;;  %v6719_v28 = vunpack.c.h.bf16 %v8962_v19 }
 0x589   : > { %v6745_v33 = vadd.f32 %v6713_v13, %v6681_v53  ;;  %v6776_v29 = vmax.f32 %v6744_v46, 0.0  ;;  %v8963_v53 = vld [vmem:[%s9737_s11 + $0x38] sm:$0xff]  }
 0x58a   : > { %v6743_v11 = vadd.f32 %v6711_v24, %v6679_v48  ;;  %v8384_v43 = vpop.f32.mrb[68].mxu0  ;;  %v6774_v57 = vmax.f32 %v6742_v22, 0.0  ;;  %v6724_v22 = vunpack.c.l.bf16 %v8963_v53  ;;  %v6725_v21 = vunpack.c.h.bf16 %v8963_v53  ;;  %v8968_v53 = vld [vmem:[%s9737_s11 + $0x50] sm:$0xff]  }
 0x58b   : > { %v6777_v39 = vmax.f32 %v6745_v33, 0.0  ;;  %v6645_v20 = vmul.f32 %v8384_v43, %v11532_v52  ;;  %v6521_v9 = vpop.f32.mrb[69].mxu0 }
 0x58c   : > { %v6775_v41 = vmax.f32 %v6743_v11, 0.0  ;;  %v6643_v34 = vmul.f32 %v11532_v52, %v6521_v9  ;;  %v8385_v5 = vpop.f32.mrb[70].mxu0 }
 0x58d   : > { %v7711_v56 = vpack.c.bf16 %v6777_v39, %v6776_v29  ;;  %v6684_v2 = vadd.f32 %v11534_v38, %v6645_v20  ;;  %v6646_v32 = vmul.f32 %v8385_v5, %v11532_v52  ;;  %v6524_v45 = vpop.f32.mrb[71].mxu0  ;;  %v6723_v5 = vunpack.c.h.bf16 %v8964_v40 }
 0x58e   : > { %v7706_v10 = vpack.c.bf16 %v6775_v41, %v6774_v57  ;;  %v6682_v62 = vadd.f32 %v11534_v38, %v6643_v34  ;;  %v6644_v63 = vmul.f32 %v11532_v52, %v6524_v45 }
 0x58f   : > { %7783 = vst [vmem:[%s11556_s20 + $0x8] sm:$0xff] %v7711_v56   ;;  %v6748_v23 = vadd.f32 %v6716_v7, %v6684_v2  ;;  %v6685_v1 = vadd.f32 %v11534_v38, %v6646_v32  ;;  %v6722_v7 = vunpack.c.l.bf16 %v8964_v40 }
 0x590   : > { %7707 = vst [vmem:[%s11556_s20] sm:$0xff] %v7706_v10   ;;  %v6746_v35 = vadd.f32 %v6714_v6, %v6682_v62  ;;  %v6683_v4 = vadd.f32 %v11534_v38, %v6644_v63 }
 0x591   : > { %v6749_v55 = vadd.f32 %v6717_v37, %v6685_v1  ;;  %v6780_v12 = vmax.f32 %v6748_v23, 0.0  ;;  %v8965_v1 = vld [vmem:[%s9737_s11 + $0x48] sm:$0xff]  }
 0x592   : > { %v6747_v0 = vadd.f32 %v6715_v14, %v6683_v4  ;;  %v8388_v50 = vpop.f32.mrb[72].mxu0  ;;  %v6778_v18 = vmax.f32 %v6746_v35, 0.0  ;;  %v6728_v35 = vunpack.c.l.bf16 %v8965_v1  ;;  %v6729_v19 = vunpack.c.h.bf16 %v8965_v1  ;;  %v8970_v1 = vld [vmem:[%s9737_s11 + $0x60] sm:$0xff]  }
 0x593   : > { %v6781_v30 = vmax.f32 %v6749_v55, 0.0  ;;  %v6649_v59 = vmul.f32 %v8388_v50, %v11532_v52  ;;  %v6537_v58 = vpop.f32.mrb[73].mxu0 }
 0x594   : > { %v6779_v44 = vmax.f32 %v6747_v0, 0.0  ;;  %v6647_v61 = vmul.f32 %v11532_v52, %v6537_v58  ;;  %v8389_v49 = vpop.f32.mrb[74].mxu0 }
 0x595   : > { %v7721_v36 = vpack.c.bf16 %v6781_v30, %v6780_v12  ;;  %v6688_v17 = vadd.f32 %v11534_v38, %v6649_v59  ;;  %v6650_v54 = vmul.f32 %v8389_v49, %v11532_v52  ;;  %v6540_v15 = vpop.f32.mrb[75].mxu0  ;;  %v6727_v49 = vunpack.c.h.bf16 %v8966_v60 }
 0x596   : > { %v7716_v27 = vpack.c.bf16 %v6779_v44, %v6778_v18  ;;  %v6686_v42 = vadd.f32 %v11534_v38, %v6647_v61  ;;  %v6648_v13 = vmul.f32 %v11532_v52, %v6540_v15 }
 0x597   : > { %7785 = vst [vmem:[%s11556_s20 + $0x18] sm:$0xff] %v7721_v36   ;;  %v6752_v3 = vadd.f32 %v6720_v26, %v6688_v17  ;;  %v6689_v16 = vadd.f32 %v11534_v38, %v6650_v54  ;;  %v6726_v26 = vunpack.c.l.bf16 %v8966_v60 }
 0x598   : > { %7784 = vst [vmem:[%s11556_s20 + $0x10] sm:$0xff] %v7716_v27   ;;  %v6750_v31 = vadd.f32 %v6718_v8, %v6686_v42  ;;  %v6687_v24 = vadd.f32 %v11534_v38, %v6648_v13 }
 0x599   : > { %v6753_v25 = vadd.f32 %v6721_v47, %v6689_v16  ;;  %v6784_v48 = vmax.f32 %v6752_v3, 0.0  ;;  %v8967_v16 = vld [vmem:[%s9737_s11 + $0x58] sm:$0xff]  }
 0x59a   : > { %v6751_v51 = vadd.f32 %v6719_v28, %v6687_v24  ;;  %v8392_v46 = vpop.f32.mrb[76].mxu0  ;;  %v6782_v29 = vmax.f32 %v6750_v31, 0.0  ;;  %v6732_v31 = vunpack.c.l.bf16 %v8967_v16  ;;  %v6733_v40 = vunpack.c.h.bf16 %v8967_v16  ;;  %v8972_v16 = vld [vmem:[%s9737_s11 + $0x70] sm:$0xff]  }
 0x59b   : > { %v6785_v33 = vmax.f32 %v6753_v25, 0.0  ;;  %v6653_v11 = vmul.f32 %v8392_v46, %v11532_v52  ;;  %v6553_v43 = vpop.f32.mrb[77].mxu0 }
 0x59c   : > { %v6783_v39 = vmax.f32 %v6751_v51, 0.0  ;;  %v6651_v20 = vmul.f32 %v11532_v52, %v6553_v43  ;;  %v8393_v9 = vpop.f32.mrb[78].mxu0 }
 0x59d   : > { %v7731_v6 = vpack.c.bf16 %v6785_v33, %v6784_v48  ;;  %v6692_v57 = vadd.f32 %v11534_v38, %v6653_v11  ;;  %v6654_v41 = vmul.f32 %v8393_v9, %v11532_v52  ;;  %v6556_v34 = vpop.f32.mrb[79].mxu0  ;;  %v6731_v9 = vunpack.c.h.bf16 %v8968_v53 }
 0x59e   : > { %v7726_v37 = vpack.c.bf16 %v6783_v39, %v6782_v29  ;;  %v6690_v56 = vadd.f32 %v11534_v38, %v6651_v20  ;;  %v6652_v2 = vmul.f32 %v11532_v52, %v6556_v34 }
 0x59f   : > { %7787 = vst [vmem:[%s11556_s20 + $0x28] sm:$0xff] %v7731_v6   ;;  %v6756_v32 = vadd.f32 %v6724_v22, %v6692_v57  ;;  %v6693_v45 = vadd.f32 %v11534_v38, %v6654_v41  ;;  %v6730_v22 = vunpack.c.l.bf16 %v8968_v53 }
 0x5a0   : > { %7786 = vst [vmem:[%s11556_s20 + $0x20] sm:$0xff] %v7726_v37   ;;  %v6754_v14 = vadd.f32 %v6722_v7, %v6690_v56  ;;  %v6691_v10 = vadd.f32 %v11534_v38, %v6652_v2 }
 0x5a1   : > { %v6757_v62 = vadd.f32 %v6725_v21, %v6693_v45  ;;  %v6788_v4 = vmax.f32 %v6756_v32, 0.0  ;;  %v8969_v45 = vld [vmem:[%s9737_s11 + $0x68] sm:$0xff]  }
 0x5a2   : > { %v6755_v63 = vadd.f32 %v6723_v5, %v6691_v10  ;;  %v8396_v23 = vpop.f32.mrb[80].mxu0  ;;  %v6786_v12 = vmax.f32 %v6754_v14, 0.0  ;;  %v6736_v14 = vunpack.c.l.bf16 %v8969_v45  ;;  %v6737_v60 = vunpack.c.h.bf16 %v8969_v45 }
 0x5a3   : > { %v6789_v55 = vmax.f32 %v6757_v62, 0.0  ;;  %v6657_v0 = vmul.f32 %v8396_v23, %v11532_v52  ;;  %v6569_v50 = vpop.f32.mrb[81].mxu0 }
 0x5a4   : > { %v6787_v30 = vmax.f32 %v6755_v63, 0.0  ;;  %v6655_v59 = vmul.f32 %v11532_v52, %v6569_v50  ;;  %v8397_v58 = vpop.f32.mrb[82].mxu0 }
 0x5a5   : > { %v7741_v8 = vpack.c.bf16 %v6789_v55, %v6788_v4  ;;  %v6696_v18 = vadd.f32 %v11534_v38, %v6657_v0  ;;  %v6658_v44 = vmul.f32 %v8397_v58, %v11532_v52  ;;  %v6572_v61 = vpop.f32.mrb[83].mxu0  ;;  %v6735_v58 = vunpack.c.h.bf16 %v8970_v1 }
 0x5a6   : > { %v7736_v47 = vpack.c.bf16 %v6787_v30, %v6786_v12  ;;  %v6694_v36 = vadd.f32 %v11534_v38, %v6655_v59  ;;  %v6656_v17 = vmul.f32 %v11532_v52, %v6572_v61 }
 0x5a7   : > { %7789 = vst [vmem:[%s11556_s20 + $0x38] sm:$0xff] %v7741_v8   ;;  %v6760_v54 = vadd.f32 %v6728_v35, %v6696_v18  ;;  %v6697_v15 = vadd.f32 %v11534_v38, %v6658_v44  ;;  %v6734_v35 = vunpack.c.l.bf16 %v8970_v1 }
 0x5a8   : > { %7788 = vst [vmem:[%s11556_s20 + $0x30] sm:$0xff] %v7736_v47   ;;  %v6758_v28 = vadd.f32 %v6726_v26, %v6694_v36  ;;  %v6695_v27 = vadd.f32 %v11534_v38, %v6656_v17 }
 0x5a9   : > { %v6761_v42 = vadd.f32 %v6729_v19, %v6697_v15  ;;  %v6792_v24 = vmax.f32 %v6760_v54, 0.0  ;;  %v8971_v15 = vld [vmem:[%s9737_s11 + $0x78] sm:$0xff]  }
 0x5aa   : > { %v6759_v13 = vadd.f32 %v6727_v49, %v6695_v27  ;;  %v8400_v3 = vpop.f32.mrb[84].mxu0  ;;  %v6790_v48 = vmax.f32 %v6758_v28, 0.0  ;;  %v6740_v28 = vunpack.c.l.bf16 %v8971_v15  ;;  %v6741_v53 = vunpack.c.h.bf16 %v8971_v15 }
 0x5ab   : > { %v6793_v25 = vmax.f32 %v6761_v42, 0.0  ;;  %v6661_v51 = vmul.f32 %v8400_v3, %v11532_v52  ;;  %v6585_v46 = vpop.f32.mrb[85].mxu0 }
 0x5ac   : > { %v6791_v33 = vmax.f32 %v6759_v13, 0.0  ;;  %v6659_v11 = vmul.f32 %v11532_v52, %v6585_v46  ;;  %v8401_v43 = vpop.f32.mrb[86].mxu0 }
 0x5ad   : > { %v7751_v7 = vpack.c.bf16 %v6793_v25, %v6792_v24  ;;  %v6700_v29 = vadd.f32 %v11534_v38, %v6661_v51  ;;  %v6662_v39 = vmul.f32 %v8401_v43, %v11532_v52  ;;  %v6588_v20 = vpop.f32.mrb[87].mxu0  ;;  %v6739_v43 = vunpack.c.h.bf16 %v8972_v16 }
 0x5ae   : > { %v7746_v21 = vpack.c.bf16 %v6791_v33, %v6790_v48  ;;  %v6698_v6 = vadd.f32 %v11534_v38, %v6659_v11  ;;  %v6660_v57 = vmul.f32 %v11532_v52, %v6588_v20 }
 0x5af   : > { %7791 = vst [vmem:[%s11556_s20 + $0x48] sm:$0xff] %v7751_v7   ;;  %v6764_v41 = vadd.f32 %v6732_v31, %v6700_v29  ;;  %v6701_v34 = vadd.f32 %v11534_v38, %v6662_v39  ;;  %v6738_v31 = vunpack.c.l.bf16 %v8972_v16 }
 0x5b0   : > { %7790 = vst [vmem:[%s11556_s20 + $0x40] sm:$0xff] %v7746_v21   ;;  %v6762_v5 = vadd.f32 %v6730_v22, %v6698_v6  ;;  %v6699_v37 = vadd.f32 %v11534_v38, %v6660_v57 }
 0x5b1   : > { %v6765_v56 = vadd.f32 %v6733_v40, %v6701_v34  ;;  %v6796_v10 = vmax.f32 %v6764_v41, 0.0 }
 0x5b2   : > { %v6763_v2 = vadd.f32 %v6731_v9, %v6699_v37  ;;  %v8404_v32 = vpop.f32.mrb[88].mxu0  ;;  %v6794_v4 = vmax.f32 %v6762_v5, 0.0 }
 0x5b3   : > { %v6797_v62 = vmax.f32 %v6765_v56, 0.0  ;;  %v6665_v63 = vmul.f32 %v8404_v32, %v11532_v52  ;;  %v6601_v23 = vpop.f32.mrb[89].mxu0 }
 0x5b4   : > { %v6795_v55 = vmax.f32 %v6763_v2, 0.0  ;;  %v6663_v0 = vmul.f32 %v11532_v52, %v6601_v23  ;;  %v8405_v50 = vpop.f32.mrb[90].mxu0 }
 0x5b5   : > { %v7761_v26 = vpack.c.bf16 %v6797_v62, %v6796_v10  ;;  %v6704_v12 = vadd.f32 %v11534_v38, %v6665_v63  ;;  %v6666_v30 = vmul.f32 %v8405_v50, %v11532_v52  ;;  %v6604_v59 = vpop.f32.mrb[91].mxu0 }
 0x5b6   : > { %v7756_v19 = vpack.c.bf16 %v6795_v55, %v6794_v4  ;;  %v6702_v8 = vadd.f32 %v11534_v38, %v6663_v0  ;;  %v6664_v18 = vmul.f32 %v11532_v52, %v6604_v59 }
 0x5b7   : > { %7793 = vst [vmem:[%s11556_s20 + $0x58] sm:$0xff] %v7761_v26   ;;  %v6768_v44 = vadd.f32 %v6736_v14, %v6704_v12  ;;  %v6705_v61 = vadd.f32 %v11534_v38, %v6666_v30 }
 0x5b8   : > { %7792 = vst [vmem:[%s11556_s20 + $0x50] sm:$0xff] %v7756_v19   ;;  %v6766_v49 = vadd.f32 %v6734_v35, %v6702_v8  ;;  %v6703_v47 = vadd.f32 %v11534_v38, %v6664_v18 }
 0x5b9   : > { %v6769_v36 = vadd.f32 %v6737_v60, %v6705_v61  ;;  %v6800_v27 = vmax.f32 %v6768_v44, 0.0 }
 0x5ba   : > { %v6767_v17 = vadd.f32 %v6735_v58, %v6703_v47  ;;  %v8408_v54 = vpop.f32.mrb[92].mxu0  ;;  %v6798_v24 = vmax.f32 %v6766_v49, 0.0 }
 0x5bb   : > { %v6801_v42 = vmax.f32 %v6769_v36, 0.0  ;;  %v6669_v13 = vmul.f32 %v8408_v54, %v11532_v52  ;;  %v6617_v3 = vpop.f32.mrb[93].mxu0 }
 0x5bc   : > { %v6799_v25 = vmax.f32 %v6767_v17, 0.0  ;;  %v6667_v51 = vmul.f32 %v11532_v52, %v6617_v3  ;;  %v8409_v46 = vpop.f32.mrb[94].mxu0 }
 0x5bd   : > { %v7771_v22 = vpack.c.bf16 %v6801_v42, %v6800_v27  ;;  %v6708_v48 = vadd.f32 %v11534_v38, %v6669_v13  ;;  %v6670_v33 = vmul.f32 %v8409_v46, %v11532_v52  ;;  %v6620_v11 = vpop.f32.mrb[95].mxu0 }
 0x5be   : > { %v7766_v40 = vpack.c.bf16 %v6799_v25, %v6798_v24  ;;  %v6706_v7 = vadd.f32 %v11534_v38, %v6667_v51  ;;  %v6668_v29 = vmul.f32 %v11532_v52, %v6620_v11 }
 0x5bf   : > { %7795 = vst [vmem:[%s11556_s20 + $0x68] sm:$0xff] %v7771_v22   ;;  %v6772_v39 = vadd.f32 %v6740_v28, %v6708_v48  ;;  %v6709_v20 = vadd.f32 %v11534_v38, %v6670_v33 }
 0x5c0   : > { %7794 = vst [vmem:[%s11556_s20 + $0x60] sm:$0xff] %v7766_v40   ;;  %v6770_v9 = vadd.f32 %v6738_v31, %v6706_v7  ;;  %v6707_v21 = vadd.f32 %v11534_v38, %v6668_v29 }
 0x5c1   : > { %v6773_v6 = vadd.f32 %v6741_v53, %v6709_v20  ;;  %v6804_v41 = vmax.f32 %v6772_v39, 0.0 }
 0x5c2   : > { %v6771_v57 = vadd.f32 %v6739_v43, %v6707_v21  ;;  %v6802_v5 = vmax.f32 %v6770_v9, 0.0 }
 0x5c3   : > { %v6805_v34 = vmax.f32 %v6773_v6, 0.0 }
 0x5c4   : > { %v6803_v52 = vmax.f32 %v6771_v57, 0.0 }
 0x5c5   : > { %v7781_v37 = vpack.c.bf16 %v6805_v34, %v6804_v41 }
 0x5c6   : > { %v7776_v38 = vpack.c.bf16 %v6803_v52, %v6802_v5 }
 0x5c7   : > { %7797 = vst [vmem:[%s11556_s20 + $0x78] sm:$0xff] %v7781_v37  }
 0x5c8   : > { %7796 = vst [vmem:[%s11556_s20 + $0x70] sm:$0xff] %v7776_v38  }
 0x5c9   : > { %9268 = shalt.err (!%p9265_p3)
}
 0x5ca   : > { %s9269_s24 = scalar_lea.hbm %s11639_s17, 2048  ;;  %s9273_s28 = scalar_lea.hbm %s11841_s1, 4096 }
 0x5cb   : > { %p9270_p5 = scmp.ne.s32.totalorder %s11639_s17, %s9269_s24  ;;  %p9274_p4 = scmp.lt.u32.totalorder %s11639_s17, %s11841_s1 }
 0x5cc   : > { %p9275_p12 = scmp.lt.u32.totalorder %s9273_s28, %s9269_s24  ;;  %p9277_p13 = scmp.lt.u32.totalorder %s9269_s24, %s11639_s17 }
 0x5cd   : > { %p9271_p9 = pnand %p9270_p5, %p11842_p0 }
 0x5ce   : > { %p9276_p1 = por %p9275_p12, %p9274_p4 }
 0x5cf   : > { %p9272_p7 = pneg %p9271_p9 }
 0x5d0   : > { %p9278_p2 = por %p9277_p13, %p9276_p1 }
 0x5d2   : > { %p9279_p8 = pnand %p9278_p2, %p9272_p7 }
 0x5d4   : > { %9282 = shalt.err (!%p9279_p8)
}
 0x5d5   : > { %s9357_s26 = smov 64   ;;  %s9358_s22 = smov 4  }
 0x5d6   : > { %8708 = dma.vmem_to_hbm [thread:$0]  (%p11842_p0), %s11641_s29, 2048, %s11639_s17, %s6967_s19, %s9357_s26, %s9357_s26, %s9358_s22  }
 0x5d7 PF: > { %s6995_s2 = sand.u32 1, %s9329_s13   ;;  %p11843_p6 = scmp.ne.s32.totalorder %s11744_s12, 0 }
 0x5d8   : > { %p11844_p10 = scmp.ge.s32.totalorder %s9341_s16, 2  ;;  %s6996_s21 = scalar_lea.sflag [#allocation5], %s6995_s2 }
 0x5da   : > { %p8743_p11 = pnand %p11844_p10, %p11843_p6 }
 0x5dc   : > { %9324 = dma.done.wait (!%p8743_p11), %s6996_s21, 2048  }
 0x5dd   : > { %9326 = vsyncadd (!%p8743_p11), %s6996_s21, 4294965248  ;;  %p28_p3 = scmp.ge.s32.totalorder %s9655_s23, 4   ;;  %s11845_s13 = smov %s9333_s14 }
 0x5de   : > { %s11846_s14 = smov %s9337_s15  ;;  %s11847_s15 = smov %s9667_s25 }
 0x5df   : > { %s11848_s16 = smov %s9655_s23  ;;  %30 = sbr.rel (!%p28_p3) target bundleno = 14 (0xe), region = 152 }
 0x5e6   :  { %7001 = vsyncpa [#allocation4], 1 }
 0x5e7   :  { %7003 = vsyncpa [#allocation4 + $0x1], 1 }
 0x5e8   :  { %7004 = vsyncpa [#allocation7], 1 }
 0x5e9   :  { %7005 = vsyncpa [#allocation10], 1 }
 0x5ea   :  { %7006 = vsyncpa [#allocation13], 1 }
 0x5eb   :  { %7007 = vsyncpa [#allocation16], 1 }
 0x5ec   :  { %7008 = vsyncpa [#allocation19], 1 }
 0x5ed   :  { %7009 = vsyncpa [#allocation5], 1 }
 0x5ee   :  { %7011 = vsyncpa [#allocation5 + $0x1], 1 }

</bundles_post_ra>
